<compile_context>
chip_gen: v7x
topology: tpu7x:2x2x1
jax: 0.10.0
libtpu: 0.0.40
codegen_flags: <defaults>
</compile_context>

<pallas_src>
import jax
import jax.numpy as jnp
from jax.experimental import pallas as pl
from jax.experimental.pallas import tpu as pltpu


def _gram_kernel(pi_ref, o_ref, eye_ref, out_ref):
    """One grid step computes TK class grams with a single dense matmul.

    pi_ref : (tk, m)    per-class membership rows, ALREADY multiplied by their
                        scalar p/((trPi_j + 1e-8)*eps) (or gam1*p/(m*eps) for
                        the fused discriminative "class"; zeros for padding)
    o_ref  : (m, p*p)   row-wise outer products vec(x_a x_a^T), resident
    eye_ref: (1, p*p)   vec(I_p), f32
    out_ref: (tk, p*p)  row j holds vec(I + scalar_j * W diag(Pi_j) W^T)
    """
    grams = jnp.dot(pi_ref[...], o_ref[...],
                    preferred_element_type=jnp.float32)       # MXU, f32 accum
    # Fused "+ I": VPU broadcast-add hidden under MXU slack.
    out_ref[...] = grams + eye_ref[...]


def maximal_coding_rate_reduction(X, A, *, gam1=1.0, gam2=1.0, eps=0.01,
                                  num_samples=768, num_steps=2,
                                  use_bf16=False, key=None):
    """JAX/Pallas port of MaximalCodingRateReduction.forward(X, A).

    X: (m, p) float32 features, A: (n, m) float32 membership rows.
    Returns the scalar total loss (same semantics as the torch module).
    """
    if key is None:
        key = jax.random.PRNGKey(0)
    # original: i = np.random.randint(A.shape[0], size=768); A = A[i, :]
    # (deterministic jax PRNG here instead of np.random)
    idx = jax.random.randint(key, (num_samples,), 0, A.shape[0])
    Pi = A[idx, :].astype(jnp.float32)                    # (k, m)
    Xf = X.astype(jnp.float32)                            # (m, p)
    m, p = Xf.shape
    k = Pi.shape[0]

    # ---- per-class scalars precomputed once (not 768x inside the kernel) ----
    trPi = jnp.sum(Pi, axis=1) + 1e-8                     # (k,)
    sum_trPi = jnp.sum(Pi)
    comp_scale = p / (trPi * eps)                         # (k,)
    Pi_scaled = Pi * comp_scale[:, None]                  # (k, m)
    # Discriminative gram fused as one extra "class": row = gam1*p/(m*eps)*ones
    # (gam1 inside the logdet, exactly as in the torch module).
    disc_row = jnp.full((1, m), gam1 * float(p) / (float(m) * eps),
                        dtype=jnp.float32)

    k_tot = k + 1
    # Smallest tk (multiple of 8, to satisfy the sublane constraint on the
    # blocked class axis) such that num_steps * tk covers k_tot.
    tk = -(-k_tot // (8 * num_steps)) * 8
    k_pad = tk * num_steps                                # 784 for k_tot=769
    pad = jnp.zeros((k_pad - k_tot, m), dtype=jnp.float32)
    Pi_all = jnp.concatenate([Pi_scaled, disc_row, pad], axis=0)   # (k_pad, m)

    # Row-wise outer products: O[a, b*p+c] = X[a,b]*X[a,c]  -> (m, p*p).
    # (m*p*p f32 = 1 MiB for the test shapes; computed once in the wrapper.)
    O = (Xf[:, :, None] * Xf[:, None, :]).reshape(m, p * p)
    eye_vec = jnp.eye(p, dtype=jnp.float32).reshape(1, p * p)

    # Optional bf16 matmul operands (f32 accumulation). Default off: logdet of
    # I + large-scaled grams is accuracy sensitive; validate before enabling.
    mat_dtype = jnp.bfloat16 if use_bf16 else jnp.float32
    Pi_in = Pi_all.astype(mat_dtype)
    O_in = O.astype(mat_dtype)

    grams = pl.pallas_call(
        _gram_kernel,
        out_shape=jax.ShapeDtypeStruct((k_pad, p * p), jnp.float32),
        grid=(num_steps,),
        in_specs=[
            pl.BlockSpec((tk, m), lambda j: (j, 0)),       # tk class rows/step
            pl.BlockSpec((m, p * p), lambda j: (0, 0)),    # O resident
            pl.BlockSpec((1, p * p), lambda j: (0, 0)),    # vec(I) resident
        ],
        out_specs=pl.BlockSpec((tk, p * p), lambda j: (j, 0)),
        compiler_params=pltpu.CompilerParams(
            # 2 independent ("parallel") steps so both v7x TensorCores get
            # work; neutral on single-TC v5e/v6e.  Per-step VMEM is ~6 MiB
            # (double-buffered), under v5e's 16 MiB scoped default and well
            # under v7x's 32 MiB scoped / 64 MiB physical VMEM.
            dimension_semantics=("parallel",)),
    )(Pi_in, O_in, eye_vec)

    # "+ I" already applied in-kernel; just reshape to a batch of (p, p) mats.
    mats = grams.reshape(k_pad, p, p)

    # ---- log-determinants + final reduction (plain JAX glue) ----
    # TODO(synk): batched dense log-determinant has no clean Pallas
    # equivalent; done here with a Cholesky-based logdet (mats are SPD:
    # I + nonnegatively-weighted gram, eigenvalues >= 1), which is cheaper and
    # more stable than torch.logdet's LU for 769 tiny 32x32 factorizations.
    def _spd_logdet(ms):
        chol = jnp.linalg.cholesky(ms)
        diag = jnp.diagonal(chol, axis1=-2, axis2=-1)
        return 2.0 * jnp.sum(jnp.log(diag), axis=-1)

    discrimn_loss = _spd_logdet(mats[k]) / 2.0            # fused disc "class"
    logdets = _spd_logdet(mats[:k])                       # (k,)
    compress_loss = jnp.sum(logdets * trPi) / m
    compress_loss = compress_loss / 2.0 * (p / sum_trPi)

    total_loss = -gam2 * discrimn_loss + compress_loss
    return total_loss


if __name__ == "__main__":
    key = jax.random.PRNGKey(0)
    kx, ka, ks = jax.random.split(key, 3)

    # small but representative shapes: m=256 samples, p=32 features, n=10 rows
    m, p, n = 256, 32, 10
    X = jax.random.normal(kx, (m, p), dtype=jnp.float32)
    A = jax.random.uniform(ka, (n, m), dtype=jnp.float32)

    # num_samples=768 matches the hard-coded sample count in the torch forward
    loss = maximal_coding_rate_reduction(X, A, gam1=1.0, gam2=1.0, eps=0.01,
                                         num_samples=768, key=ks)
    loss = jax.block_until_ready(loss)
    assert jnp.isfinite(loss), f"non-finite loss: {loss}"
    print("KERNEL_OK")
</pallas_src>

<mosaic_0001>
module attributes {stable_mosaic.version = 11 : i64} {
  func.func @_gram_kernel(%arg0: i32, %arg1: memref<392x256xf32, #tpu.memory_space<vmem>>, %arg2: memref<256x1024xf32, #tpu.memory_space<vmem>>, %arg3: memref<1x1024xf32, #tpu.memory_space<vmem>>, %arg4: memref<392x1024xf32, #tpu.memory_space<vmem>>) attributes {dimension_semantics = [#tpu.dimension_semantics<parallel>], iteration_bounds = array<i64: 2>, scalar_prefetch = 0 : i64, scratch_operands = 0 : i64, tpu.core_type = #tpu.core_type<tc>, window_params = [{transform_indices = @transform_0, window_bounds = array<i64: 392, 256>}, {pipeline_mode = #tpu.pipeline_mode<synchronous>, transform_indices = @transform_1, window_bounds = array<i64: 256, 1024>}, {pipeline_mode = #tpu.pipeline_mode<synchronous>, transform_indices = @transform_2, window_bounds = array<i64: 1, 1024>}, {transform_indices = @transform_3, window_bounds = array<i64: 392, 1024>}]} {
    %c0 = arith.constant 0 : index
    %c0_0 = arith.constant 0 : index
    %0 = vector.load %arg1[%c0, %c0_0] : memref<392x256xf32, #tpu.memory_space<vmem>>, vector<392x256xf32>
    %c0_1 = arith.constant 0 : index
    %c0_2 = arith.constant 0 : index
    %1 = vector.load %arg2[%c0_1, %c0_2] : memref<256x1024xf32, #tpu.memory_space<vmem>>, vector<256x1024xf32>
    %cst = arith.constant dense<0.000000e+00> : vector<392x1024xf32>
    %2 = tpu.matmul %0, %1, %cst {dimension_numbers = #tpu.dot_dimension_numbers<[1], [0], [0], [1], [0, 0, 1, 1], [], []>} : vector<392x256xf32>, vector<256x1024xf32>, vector<392x1024xf32> -> vector<392x1024xf32>
    %c0_3 = arith.constant 0 : index
    %c0_4 = arith.constant 0 : index
    %3 = vector.load %arg3[%c0_3, %c0_4] : memref<1x1024xf32, #tpu.memory_space<vmem>>, vector<1x1024xf32>
    %4 = vector.broadcast %3 : vector<1x1024xf32> to vector<392x1024xf32>
    %5 = arith.addf %2, %4 : vector<392x1024xf32>
    %c0_5 = arith.constant 0 : index
    %c0_6 = arith.constant 0 : index
    %6 = vector.load %arg4[%c0_5, %c0_6] : memref<392x1024xf32, #tpu.memory_space<vmem>>, vector<392x1024xf32>
    tpu.vector_store %arg4[%c0_5, %c0_6], %5 {strides = array<i32>} : memref<392x1024xf32, #tpu.memory_space<vmem>>, vector<392x1024xf32>,
    return
  }
  func.func @transform_0(%arg0: i32) -> (i32, i32) {
    %c0_i32 = arith.constant 0 : i32
    %c0_i32_0 = arith.constant 0 : i32
    return %arg0, %c0_i32 : i32, i32
  }
  func.func @transform_1(%arg0: i32) -> (i32, i32) {
    %c0_i32 = arith.constant 0 : i32
    %c0_i32_0 = arith.constant 0 : i32
    %c0_i32_1 = arith.constant 0 : i32
    return %c0_i32, %c0_i32_0 : i32, i32
  }
  func.func @transform_2(%arg0: i32) -> (i32, i32) {
    %c0_i32 = arith.constant 0 : i32
    %c0_i32_0 = arith.constant 0 : i32
    %c0_i32_1 = arith.constant 0 : i32
    return %c0_i32, %c0_i32_0 : i32, i32
  }
  func.func @transform_3(%arg0: i32) -> (i32, i32) {
    %c0_i32 = arith.constant 0 : i32
    %c0_i32_0 = arith.constant 0 : i32
    return %arg0, %c0_i32 : i32, i32
  }
}

</mosaic_0001>

<bundles_post_ra>
// kernel: tpu_custom_call.1
= control target key start
LH: loop header
LB: loop body
LE: loop exit
PB: predicated region body
PF: predicated region fallthrough
CT: control target
= control target key end

     0   :  { %8 = vsyncpa [#allocation3], 0  ;;  %s4619_s0 = inlined_call_operand.hbm [shape: f32[784,256], index: 0, kind: input, shape index: {}]   ;;  %s4620_s1 = inlined_call_operand.hbm [shape: f32[256,1024], index: 1, kind: input, shape index: {}]   ;;  %s4621_s2 = inlined_call_operand.hbm [shape: f32[1,1024], index: 2, kind: input, shape index: {}]   ;;  %s4622_s3 = inlined_call_operand.hbm [shape: f32[784,1024], index: 3, kind: output, shape index: {}]  }
   0x1   :  { %10 = vsyncpa [#allocation3 + $0x1], 0 }
   0x2   :  { %11 = vsyncpa [#allocation6], 0 }
   0x3   :  { %12 = vsyncpa [#allocation4], 0 }
   0x4   :  { %14 = vsyncpa [#allocation4 + $0x1], 0  ;;  %s3143_s12 = smov 0   ;;  %s3145_s13 = smov 0  }
   0x5   :  { %s3147_s14 = smov 0   ;;  %s3149_s15 = smov 0  }
   0x6 LB: > { %s3164_s16 = sadd.s32 4294967295, %s3111_s15   ;;  %s2550_s17 = sadd.s32 4294967294, %s3111_s15   ;;  %s3111_s15 = sphi %s3149_s15, %s4642_s15   ;;  %s3107_s14 = sphi %s3147_s14, %s4641_s14   ;;  %s3103_s13 = sphi %s3145_s13, %s4640_s13   ;;  %s3099_s12 = sphi %s3143_s12, %s4639_s12  }
   0x7   : > { %p40_p0 = scmp.ne.s32.totalorder %s3103_s13, %s3099_s12  ;;  %p4623_p1 = scmp.eq.s32.totalorder %s3164_s16, 0 }
   0x8   : > { %p112_p3 = scmp.eq.s32.totalorder %s2550_s17, 1  ;;  %p2551_p5 = scmp.ge.s32.totalorder %s3111_s15, 1 }
   0x9   : > { %p3173_p4 = por %p4623_p1, %p40_p0  ;;  %p119_p7 = scmp.lt.s32.totalorder %s3111_s15, 3 }
   0xa   : > { %p3178_p6 = por %p112_p3, %p40_p0  ;;  %s3113_s21 = smov [#allocation5]  }
   0xb   : > { %s4626_s18 = scalar_select %p3173_p4, 1, 0 }
   0xc   : > { %s4627_s19 = scalar_select %p3178_p6, 1, 0 }
   0xd   : > { %p3183_p8 = pnand %p2551_p5, %p119_p7  ;;  %s131_s22 = sshll.u32 %s3113_s21, 4  ;;  %s3187_s22 = int_to_ptr.vmem [resolvable:$true] %s131_s22 }
   0xe   : > { %s3114_s24 = smov [#allocation7]   ;;  %s2955_s28 = scalar_lea.hbm %s4620_s1, 32768 }
   0xf   : > { %p2841_p9 = pneg %p3183_p8  ;;  %s145_s25 = sshll.u32 %s3114_s24, 4  ;;  %s3198_s25 = int_to_ptr.vmem [resolvable:$true] %s145_s25 }
  0x10   : > { %p2956_p12 = scmp.ne.s32.totalorder %s4620_s1, %s2955_s28  ;;  %p2962_p5 = scmp.lt.u32.totalorder %s2955_s28, %s4620_s1 }
  0x11   : > { %p3194_p11 = pnand %p2841_p9, %p4623_p1 }
  0x13   : > { %p2957_p13 = pneg %p3194_p11 }
  0x15   : > { %p2958_p0 = pnand %p2957_p13, %p2956_p12 }
  0x17   : > { %p2959_p3 = pneg %p2958_p0 }
  0x19   : > { %p2964_p7 = pnand %p2962_p5, %p2959_p3 }
  0x1b   : > { %2967 = shalt.err (!%p2964_p7)
}
  0x1c   : > { %s2968_s6 = scalar_lea.vmem %s3187_s22, 32768  ;;  %p2976_p2 = scmp.lt.s32.totalorder %s3187_s22, %s3187_s22 }
  0x1d   : > { %p2969_p9 = scmp.ne.s32.totalorder %s3187_s22, %s2968_s6  ;;  %p2977_p12 = scmp.lt.s32.totalorder %s2968_s6, %s2968_s6 }
  0x1f   : > { %p2971_p10 = pnand %p2969_p9, %p2957_p13  ;;  %p2978_p0 = por %p2977_p12, %p2976_p2 }
  0x21   : > { %p2972_p1 = pneg %p2971_p10 }
  0x23   : > { %p2979_p6 = pnand %p2978_p0, %p2972_p1 }
  0x25   : > { %2982 = shalt.err (!%p2979_p6)
}
  0x26   : > { %s3115_s7 = smov 1024   ;;  %s3116_s8 = smov 64  }
  0x27   : > { %2844 = dma.hbm_to_vmem [thread:$0]  (!%p3194_p11), %s4620_s1, 32768, %s3187_s22, [#allocation6], %s3115_s7, %s3115_s7, %s3116_s8  }
  0x28   : > { %s2983_s21 = scalar_lea.hbm %s4621_s2, 128 }
  0x29   : > { %p2984_p2 = scmp.ne.s32.totalorder %s4621_s2, %s2983_s21  ;;  %p2990_p10 = scmp.lt.u32.totalorder %s2983_s21, %s4621_s2 }
  0x2b   : > { %p2986_p1 = pnand %p2984_p2, %p2957_p13 }
  0x2d   : > { %p2987_p6 = pneg %p2986_p1 }
  0x2f   : > { %p2992_p3 = pnand %p2990_p10, %p2987_p6 }
  0x31   : > { %2995 = shalt.err (!%p2992_p3)
}
  0x32   : > { %s2996_s22 = scalar_lea.vmem %s3198_s25, 128  ;;  %p3004_p12 = scmp.lt.s32.totalorder %s3198_s25, %s3198_s25 }
  0x33   : > { %p2997_p5 = scmp.ne.s32.totalorder %s3198_s25, %s2996_s22  ;;  %p3005_p0 = scmp.lt.s32.totalorder %s2996_s22, %s2996_s22 }
  0x35   : > { %p2999_p7 = pnand %p2997_p5, %p2957_p13  ;;  %p3006_p2 = por %p3005_p0, %p3004_p12 }
  0x37   : > { %p3000_p9 = pneg %p2999_p7 }
  0x39   : > { %p3007_p1 = pnand %p3006_p2, %p3000_p9 }
  0x3b   : > { %3010 = shalt.err (!%p3007_p1)
}
  0x3c   : > { %2847 = dma.hbm_to_vmem [thread:$0]  (!%p3194_p11), %s4621_s2, 128, %s3198_s25, [#allocation6]  }
  0x3d   : > { %s3253_s4 = sadd.s32 1, %s3111_s15   ;;  %s27_s23 = sadd.s32 1, %s3107_s14 }
  0x3e   : > { %s24_s5 = ssub.s32 %s3111_s15, %s3253_s4  ;;  %p34_p13 = scmp.ne.s32.totalorder %s3107_s14, %s3103_s13 }
  0x3f   : > { %p25_p6 = scmp.eq.s32.totalorder %s24_s5, 0  ;;  %p35_p10 = scmp.eq.s32.totalorder %s3111_s15, 0 }
  0x40   : > { %p4630_p3 = scmp.eq.s32.totalorder %s3164_s16, 1  ;;  %p2858_p7 = scmp.lt.s32.totalorder %s3111_s15, 2 }
  0x41   : > { %s3269_s7 = scalar_select %p25_p6, %s3107_s14, %s27_s23  }
  0x42   : > { %p3263_p5 = por %p4630_p3, %p34_p13  ;;  %p36_p9 = por %p35_p10, %p34_p13 }
  0x43   : > { %s156_s8 = sand.u32 1, %s3107_s14   ;;  %s2568_s25 = smul.u32 12544, %s3111_s15 }
  0x44   : > { %s4631_s6 = scalar_select %p3263_p5, 1, 0 }
  0x45   : > { %s2826_s9 = smul.u32 784, %s156_s8  ;;  %p3273_p11 = pnand %p2858_p7, %p36_p9 }
  0x46   : > { %s3280_s21 = scalar_lea.hbm %s4619_s0, %s2568_s25  ;;  %s3284_s27 = scalar_lea.sflag [#allocation3], %s156_s8 }
  0x47   : > { %s160_s24 = scalar_lea.vmem [#allocation2], %s2826_s9  ;;  %s3011_s28 = scalar_lea.hbm %s3280_s21, 12544 }
  0x48   : > { %s168_s26 = sshll.u32 %s160_s24, 4  ;;  %p3012_p12 = scmp.ne.s32.totalorder %s3280_s21, %s3011_s28  ;;  %s3282_s26 = int_to_ptr.vmem [resolvable:$true] %s168_s26 }
  0x49   : > { %p3013_p0 = pneg %p3273_p11  ;;  %s3016_s30 = scalar_lea.hbm %s4619_s0, 25088 }
  0x4a   : > { %p3017_p13 = scmp.lt.u32.totalorder %s3280_s21, %s4619_s0  ;;  %p3018_p6 = scmp.lt.u32.totalorder %s3016_s30, %s3011_s28 }
  0x4b   : > { %p3014_p2 = pnand %p3013_p0, %p3012_p12  ;;  %p3020_p3 = scmp.lt.u32.totalorder %s3011_s28, %s3280_s21 }
  0x4c   : > { %p3019_p10 = por %p3018_p6, %p3017_p13 }
  0x4d   : > { %p3015_p1 = pneg %p3014_p2 }
  0x4e   : > { %p3021_p7 = por %p3020_p3, %p3019_p10 }
  0x50   : > { %p3022_p9 = pnand %p3021_p7, %p3015_p1 }
  0x52   : > { %3025 = shalt.err (!%p3022_p9)
}
  0x53   : > { %s3026_s8 = scalar_lea.vmem %s3282_s26, 12544  ;;  %s3117_s9 = smov [#allocation2]  }
  0x54   : > { %p3027_p12 = scmp.ne.s32.totalorder %s3282_s26, %s3026_s8  ;;  %s3031_s25 = sshll.u32 %s3117_s9, 4  ;;  %s3032_s25 = int_to_ptr.vmem [resolvable:$false] %s3031_s25 }
  0x55   : > { %s3033_s11 = scalar_lea.vmem %s3032_s25, 25088  ;;  %p3034_p4 = scmp.lt.s32.totalorder %s3282_s26, %s3032_s25 }
  0x56   : > { %p3029_p2 = pnand %p3027_p12, %p3013_p0  ;;  %p3035_p13 = scmp.lt.s32.totalorder %s3033_s11, %s3026_s8 }
  0x58   : > { %p3030_p5 = pneg %p3029_p2  ;;  %p3036_p6 = por %p3035_p13, %p3034_p4 }
  0x5a   : > { %p3037_p10 = pnand %p3036_p6, %p3030_p5 }
  0x5c   : > { %3040 = shalt.err (!%p3037_p10)
}
  0x5d   : > { %s3118_s17 = smov 256   ;;  %s3119_s24 = smov 16  }
  0x5e   : > { %2851 = dma.hbm_to_vmem [thread:$0]  (!%p3273_p11), %s3280_s21, 12544, %s3282_s26, %s3284_s27, %s3118_s17, %s3118_s17, %s3119_s24  }
  0x5f   : > { %180 = sbr.rel (%p3183_p8) target bundleno = 793 (0x319), region = 32  ;;  %s3315_s28 = sand.u32 (!%p3183_p8), 1, %s3103_s13  }
  0x60   : > { %s2827_s22 = smul.u32 (!%p3183_p8), 784, %s3315_s28  ;;  %s183_s29 = scalar_lea.sflag (!%p3183_p8), [#allocation3], %s3315_s28 }
  0x61   : > { %p4633_p4 = scmp.ne.s32.totalorder (!%p3183_p8), %s4626_s18, 0 }
  0x62   : > { %s3319_s30 = scalar_lea.vmem (!%p3183_p8), [#allocation2], %s2827_s22 }
  0x66   : > { %3086 = dma.done.wait (%p4633_p4), %s183_s29, 12544  }
  0x67   : > { %3088 = vsyncadd (%p4633_p4), %s183_s29, 4294954752  ;;  %p4634_p5 = scmp.eq.s32.totalorder %s3164_s16, 0 }
  0x69   : > { %3090 = dma.done.wait (%p4634_p5), [#allocation6], 32896   ;;  %p4635_p8 = pmov %p4634_p5 }
  0x6a   : > { %v318_v0 = vld [vmem:[#allocation5 + $0x8] sm:$0xff]  ;;  %v320_v2 = vld [vmem:[#allocation5 + $0x18] sm:$0xff]  ;;  %v317_v5 = vld [vmem:[#allocation5] sm:$0xff]  ;;  %s2828_s18 = smul.u32 3136, %s3315_s28  ;;  %s2444_s23 = scalar_lea.sflag [#allocation4], %s3315_s28 }
  0x6b   : > { %3092 = vsyncadd (%p4635_p8), [#allocation6], 4294934400  ;;  %v326_v1 = vld [vmem:[#allocation5 + $0x48] sm:$0xff]  ;;  %v328_v4 = vld [vmem:[#allocation5 + $0x58] sm:$0xff]  ;;  %s2569_s10 = smul.u32 50176, %s3164_s16  ;;  %p4636_p0 = scmp.ne.s32.totalorder %s4631_s6, 0 }
  0x6c   : > { %v2570_v3 = vpack.c.bf16 %v326_v1, %v318_v0  ;;  %v325_v6 = vld [vmem:[#allocation5 + $0x40] sm:$0xff]  ;;  %v2634_v7 = vpack.c.bf16 %v328_v4, %v320_v2  ;;  %v319_v9 = vld [vmem:[#allocation5 + $0x10] sm:$0xff]  ;;  %v334_v11 = vld [vmem:[#allocation5 + $0x88] sm:$0xff]  ;;  %s3645_s20 = scalar_lea.vmem [#allocation8], %s2828_s18  ;;  %s3120_s8 = smov [#allocation8]  }
  0x6d   : > { %v2572_v8 = vpack.c.bf16 %v325_v6, %v317_v5  ;;  %v327_v10 = vld [vmem:[#allocation5 + $0x50] sm:$0xff]  ;;  %v342_v13 = vld [vmem:[#allocation5 + $0xc8] sm:$0xff]  ;;  %v336_v14 = vld [vmem:[#allocation5 + $0x98] sm:$0xff]  ;;  %s2458_s21 = sshll.u32 %s3645_s20, 4  ;;  %s4568_s27 = scalar_lea.hbm %s4622_s3, %s2569_s10  ;;  %s4570_s21 = int_to_ptr.vmem [resolvable:$true] %s2458_s21 }
  0x6e   : > { %2571 = vmatprep.subr.bf16.mxu0 %v2570_v3  ;;  %v2636_v12 = vpack.c.bf16 %v327_v10, %v319_v9  ;;  %v344_v15 = vld [vmem:[#allocation5 + $0xd8] sm:$0xff]  ;;  %2635 = vmatprep.subr.bf16.mxu1 %v2634_v7  ;;  %v2574_v16 = vpack.c.bf16 %v342_v13, %v334_v11  ;;  %v333_v18 = vld [vmem:[#allocation5 + $0x80] sm:$0xff]  ;;  %v335_v20 = vld [vmem:[#allocation5 + $0x90] sm:$0xff]  ;;  %s3041_s5 = scalar_lea.vmem %s4570_s21, 50176  ;;  %s3045_s9 = sshll.u32 %s3120_s8, 4  ;;  %s3046_s9 = int_to_ptr.vmem [resolvable:$false] %s3045_s9 }
  0x6f   : > { %2573 = vmatpush1.bf16.msra.mxu0 %v2572_v8  ;;  %v2638_v17 = vpack.c.bf16 %v344_v15, %v336_v14  ;;  %v341_v19 = vld [vmem:[#allocation5 + $0xc0] sm:$0xff]  ;;  %v343_v22 = vld [vmem:[#allocation5 + $0xd0] sm:$0xff]  ;;  %v350_v23 = vld [vmem:[#allocation5 + $0x108] sm:$0xff]  ;;  %p3042_p11 = scmp.ne.s32.totalorder %s4570_s21, %s3041_s5  ;;  %s3047_s25 = scalar_lea.vmem %s3046_s9, 100352 }
  0x70   : > { %2637 = vmatpush1.bf16.msra.mxu1 %v2636_v12  ;;  %v2576_v21 = vpack.c.bf16 %v341_v19, %v333_v18  ;;  %v358_v24 = vld [vmem:[#allocation5 + $0x148] sm:$0xff]  ;;  %2575 = vmatprep.subr.bf16.mxu0 %v2574_v16  ;;  %v2640_v25 = vpack.c.bf16 %v343_v22, %v335_v20  ;;  %v352_v27 = vld [vmem:[#allocation5 + $0x118] sm:$0xff]  ;;  %v349_v29 = vld [vmem:[#allocation5 + $0x100] sm:$0xff]  ;;  %p3048_p7 = scmp.lt.s32.totalorder %s4570_s21, %s3046_s9  ;;  %p3049_p9 = scmp.lt.s32.totalorder %s3047_s25, %s3041_s5 }
  0x71   : > { %2639 = vmatprep.subr.bf16.mxu1 %v2638_v17  ;;  %v2578_v26 = vpack.c.bf16 %v358_v24, %v350_v23  ;;  %v360_v28 = vld [vmem:[#allocation5 + $0x158] sm:$0xff]  ;;  %v357_v31 = vld [vmem:[#allocation5 + $0x140] sm:$0xff]  ;;  %v351_v32 = vld [vmem:[#allocation5 + $0x110] sm:$0xff]  ;;  %p3043_p1 = pnand %p3042_p11, %p4636_p0 }
  0x72   : > { %v2642_v30 = vpack.c.bf16 %v360_v28, %v352_v27  ;;  %v359_v33 = vld [vmem:[#allocation5 + $0x150] sm:$0xff]  ;;  %v2580_v34 = vpack.c.bf16 %v357_v31, %v349_v29  ;;  %v366_v35 = vld [vmem:[#allocation5 + $0x188] sm:$0xff]  ;;  %v368_v37 = vld [vmem:[#allocation5 + $0x198] sm:$0xff]  ;;  %p3050_p12 = por %p3049_p9, %p3048_p7 }
  0x73   : > { %2577 = vmatpush1.bf16.msra.mxu0 %v2576_v21  ;;  %v374_v36 = vld [vmem:[#allocation5 + $0x1c8] sm:$0xff]  ;;  %v2644_v38 = vpack.c.bf16 %v359_v33, %v351_v32  ;;  %v376_v40 = vld [vmem:[#allocation5 + $0x1d8] sm:$0xff]  ;;  %v365_v41 = vld [vmem:[#allocation5 + $0x180] sm:$0xff]  ;;  %p3044_p3 = pneg %p3043_p1 }
  0x74   : > { %2641 = vmatpush1.bf16.msra.mxu1 %v2640_v25  ;;  %2579 = vmatprep.subr.bf16.mxu0 %v2578_v26  ;;  %v2582_v39 = vpack.c.bf16 %v374_v36, %v366_v35  ;;  %v373_v42 = vld [vmem:[#allocation5 + $0x1c0] sm:$0xff]  ;;  %v2646_v43 = vpack.c.bf16 %v376_v40, %v368_v37  ;;  %v367_v44 = vld [vmem:[#allocation5 + $0x190] sm:$0xff]  ;;  %v382_v46 = vld [vmem:[#allocation5 + $0x208] sm:$0xff] }
  0x75   : > { %2643 = vmatprep.subr.bf16.mxu1 %v2642_v30  ;;  %v375_v45 = vld [vmem:[#allocation5 + $0x1d0] sm:$0xff]  ;;  %v390_v47 = vld [vmem:[#allocation5 + $0x248] sm:$0xff]  ;;  %v384_v48 = vld [vmem:[#allocation5 + $0x218] sm:$0xff]  ;;  %v2584_v50 = vpack.c.bf16 %v373_v42, %v365_v41  ;;  %p3051_p2 = pnand %p3050_p12, %p3044_p3 }
  0x76   : > { %v392_v49 = vld [vmem:[#allocation5 + $0x258] sm:$0xff]  ;;  %v2648_v51 = vpack.c.bf16 %v375_v45, %v367_v44  ;;  %v2586_v52 = vpack.c.bf16 %v390_v47, %v382_v46  ;;  %v381_v53 = vld [vmem:[#allocation5 + $0x200] sm:$0xff]  ;;  %v383_v55 = vld [vmem:[#allocation5 + $0x210] sm:$0xff] }
  0x77   : > { %2581 = vmatpush1.bf16.msra.mxu0 %v2580_v34  ;;  %v389_v54 = vld [vmem:[#allocation5 + $0x240] sm:$0xff]  ;;  %v2650_v56 = vpack.c.bf16 %v392_v49, %v384_v48  ;;  %v391_v57 = vld [vmem:[#allocation5 + $0x250] sm:$0xff]  ;;  %v398_v58 = vld [vmem:[#allocation5 + $0x288] sm:$0xff] }
  0x78   : > { %2645 = vmatpush1.bf16.msra.mxu1 %v2644_v38  ;;  %2583 = vmatprep.subr.bf16.mxu0 %v2582_v39  ;;  %v406_v59 = vld [vmem:[#allocation5 + $0x2c8] sm:$0xff]  ;;  %v400_v60 = vld [vmem:[#allocation5 + $0x298] sm:$0xff]  ;;  %v2588_v62 = vpack.c.bf16 %v389_v54, %v381_v53  ;;  %v2652_v63 = vpack.c.bf16 %v391_v57, %v383_v55  ;;  %v397_v1 = vld [vmem:[#allocation5 + $0x280] sm:$0xff] }
  0x79   : > { %2647 = vmatprep.subr.bf16.mxu1 %v2646_v43  ;;  %v408_v61 = vld [vmem:[#allocation5 + $0x2d8] sm:$0xff]  ;;  %v2590_v0 = vpack.c.bf16 %v406_v59, %v398_v58  ;;  %v405_v2 = vld [vmem:[#allocation5 + $0x2c0] sm:$0xff]  ;;  %v399_v3 = vld [vmem:[#allocation5 + $0x290] sm:$0xff] }
  0x7a   : > { %v2654_v4 = vpack.c.bf16 %v408_v61, %v400_v60  ;;  %v407_v5 = vld [vmem:[#allocation5 + $0x2d0] sm:$0xff]  ;;  %v414_v6 = vld [vmem:[#allocation5 + $0x308] sm:$0xff]  ;;  %v416_v8 = vld [vmem:[#allocation5 + $0x318] sm:$0xff]  ;;  %v2592_v10 = vpack.c.bf16 %v405_v2, %v397_v1 }
  0x7b   : > { %2585 = vmatpush1.bf16.msra.mxu0 %v2584_v50  ;;  %v422_v7 = vld [vmem:[#allocation5 + $0x348] sm:$0xff]  ;;  %v424_v9 = vld [vmem:[#allocation5 + $0x358] sm:$0xff]  ;;  %v2656_v11 = vpack.c.bf16 %v407_v5, %v399_v3  ;;  %v413_v13 = vld [vmem:[#allocation5 + $0x300] sm:$0xff] }
  0x7c   : > { %2649 = vmatpush1.bf16.msra.mxu1 %v2648_v51  ;;  %2587 = vmatprep.subr.bf16.mxu0 %v2586_v52  ;;  %v2594_v12 = vpack.c.bf16 %v422_v7, %v414_v6  ;;  %v421_v14 = vld [vmem:[#allocation5 + $0x340] sm:$0xff]  ;;  %v415_v15 = vld [vmem:[#allocation5 + $0x310] sm:$0xff]  ;;  %v2658_v16 = vpack.c.bf16 %v424_v9, %v416_v8  ;;  %v430_v18 = vld [vmem:[#allocation5 + $0x388] sm:$0xff] }
  0x7d   : > { %2651 = vmatprep.subr.bf16.mxu1 %v2650_v56  ;;  %v423_v17 = vld [vmem:[#allocation5 + $0x350] sm:$0xff]  ;;  %v438_v19 = vld [vmem:[#allocation5 + $0x3c8] sm:$0xff]  ;;  %v432_v20 = vld [vmem:[#allocation5 + $0x398] sm:$0xff]  ;;  %v2596_v22 = vpack.c.bf16 %v421_v14, %v413_v13 }
  0x7e   : > { %v440_v21 = vld [vmem:[#allocation5 + $0x3d8] sm:$0xff]  ;;  %v2660_v23 = vpack.c.bf16 %v423_v17, %v415_v15  ;;  %v2598_v24 = vpack.c.bf16 %v438_v19, %v430_v18  ;;  %v429_v25 = vld [vmem:[#allocation5 + $0x380] sm:$0xff]  ;;  %v431_v27 = vld [vmem:[#allocation5 + $0x390] sm:$0xff] }
  0x7f   : > { %2589 = vmatpush1.bf16.msra.mxu0 %v2588_v62  ;;  %v437_v26 = vld [vmem:[#allocation5 + $0x3c0] sm:$0xff]  ;;  %v2662_v28 = vpack.c.bf16 %v440_v21, %v432_v20  ;;  %v439_v29 = vld [vmem:[#allocation5 + $0x3d0] sm:$0xff]  ;;  %v446_v30 = vld [vmem:[#allocation5 + $0x408] sm:$0xff] }
  0x80   : > { %2653 = vmatpush1.bf16.msra.mxu1 %v2652_v63  ;;  %2591 = vmatprep.subr.bf16.mxu0 %v2590_v0  ;;  %v454_v31 = vld [vmem:[#allocation5 + $0x448] sm:$0xff]  ;;  %v448_v32 = vld [vmem:[#allocation5 + $0x418] sm:$0xff]  ;;  %v2600_v34 = vpack.c.bf16 %v437_v26, %v429_v25  ;;  %v2664_v35 = vpack.c.bf16 %v439_v29, %v431_v27  ;;  %v445_v37 = vld [vmem:[#allocation5 + $0x400] sm:$0xff] }
  0x81   : > { %2655 = vmatprep.subr.bf16.mxu1 %v2654_v4  ;;  %v456_v33 = vld [vmem:[#allocation5 + $0x458] sm:$0xff]  ;;  %v2602_v36 = vpack.c.bf16 %v454_v31, %v446_v30  ;;  %v453_v38 = vld [vmem:[#allocation5 + $0x440] sm:$0xff]  ;;  %v447_v39 = vld [vmem:[#allocation5 + $0x410] sm:$0xff] }
  0x82   : > { %v2666_v40 = vpack.c.bf16 %v456_v33, %v448_v32  ;;  %v455_v41 = vld [vmem:[#allocation5 + $0x450] sm:$0xff]  ;;  %v462_v42 = vld [vmem:[#allocation5 + $0x488] sm:$0xff]  ;;  %v464_v44 = vld [vmem:[#allocation5 + $0x498] sm:$0xff]  ;;  %v2604_v46 = vpack.c.bf16 %v453_v38, %v445_v37 }
  0x83   : > { %2593 = vmatpush1.bf16.msra.mxu0 %v2592_v10  ;;  %v470_v43 = vld [vmem:[#allocation5 + $0x4c8] sm:$0xff]  ;;  %v472_v45 = vld [vmem:[#allocation5 + $0x4d8] sm:$0xff]  ;;  %v2668_v47 = vpack.c.bf16 %v455_v41, %v447_v39  ;;  %v461_v49 = vld [vmem:[#allocation5 + $0x480] sm:$0xff] }
  0x84   : > { %2657 = vmatpush1.bf16.msra.mxu1 %v2656_v11  ;;  %2595 = vmatprep.subr.bf16.mxu0 %v2594_v12  ;;  %v2606_v48 = vpack.c.bf16 %v470_v43, %v462_v42  ;;  %v469_v50 = vld [vmem:[#allocation5 + $0x4c0] sm:$0xff]  ;;  %v463_v51 = vld [vmem:[#allocation5 + $0x490] sm:$0xff]  ;;  %v2670_v52 = vpack.c.bf16 %v472_v45, %v464_v44  ;;  %v478_v54 = vld [vmem:[#allocation5 + $0x508] sm:$0xff] }
  0x85   : > { %2659 = vmatprep.subr.bf16.mxu1 %v2658_v16  ;;  %v471_v53 = vld [vmem:[#allocation5 + $0x4d0] sm:$0xff]  ;;  %v486_v55 = vld [vmem:[#allocation5 + $0x548] sm:$0xff]  ;;  %v480_v56 = vld [vmem:[#allocation5 + $0x518] sm:$0xff]  ;;  %v2608_v58 = vpack.c.bf16 %v469_v50, %v461_v49 }
  0x86   : > { %v488_v57 = vld [vmem:[#allocation5 + $0x558] sm:$0xff]  ;;  %v2672_v59 = vpack.c.bf16 %v471_v53, %v463_v51  ;;  %v2610_v60 = vpack.c.bf16 %v486_v55, %v478_v54  ;;  %v477_v61 = vld [vmem:[#allocation5 + $0x500] sm:$0xff]  ;;  %v479_v63 = vld [vmem:[#allocation5 + $0x510] sm:$0xff] }
  0x87   : > { %2597 = vmatpush1.bf16.msra.mxu0 %v2596_v22  ;;  %v485_v62 = vld [vmem:[#allocation5 + $0x540] sm:$0xff]  ;;  %v2674_v0 = vpack.c.bf16 %v488_v57, %v480_v56  ;;  %v487_v1 = vld [vmem:[#allocation5 + $0x550] sm:$0xff]  ;;  %v494_v2 = vld [vmem:[#allocation5 + $0x588] sm:$0xff] }
  0x88   : > { %2661 = vmatpush1.bf16.msra.mxu1 %v2660_v23  ;;  %2599 = vmatprep.subr.bf16.mxu0 %v2598_v24  ;;  %v502_v3 = vld [vmem:[#allocation5 + $0x5c8] sm:$0xff]  ;;  %v496_v4 = vld [vmem:[#allocation5 + $0x598] sm:$0xff]  ;;  %v2612_v6 = vpack.c.bf16 %v485_v62, %v477_v61  ;;  %v493_v7 = vld [vmem:[#allocation5 + $0x580] sm:$0xff]  ;;  %v2676_v8 = vpack.c.bf16 %v487_v1, %v479_v63 }
  0x89   : > { %2663 = vmatprep.subr.bf16.mxu1 %v2662_v28  ;;  %v504_v5 = vld [vmem:[#allocation5 + $0x5d8] sm:$0xff]  ;;  %v2614_v9 = vpack.c.bf16 %v502_v3, %v494_v2  ;;  %v501_v10 = vld [vmem:[#allocation5 + $0x5c0] sm:$0xff]  ;;  %v495_v11 = vld [vmem:[#allocation5 + $0x590] sm:$0xff] }
  0x8a   : > { %v503_v12 = vld [vmem:[#allocation5 + $0x5d0] sm:$0xff]  ;;  %v2678_v13 = vpack.c.bf16 %v504_v5, %v496_v4  ;;  %v510_v14 = vld [vmem:[#allocation5 + $0x608] sm:$0xff]  ;;  %v512_v17 = vld [vmem:[#allocation5 + $0x618] sm:$0xff]  ;;  %v2616_v19 = vpack.c.bf16 %v501_v10, %v493_v7 }
  0x8b   : > { %2601 = vmatpush1.bf16.msra.mxu0 %v2600_v34  ;;  %v518_v15 = vld [vmem:[#allocation5 + $0x648] sm:$0xff]  ;;  %v520_v18 = vld [vmem:[#allocation5 + $0x658] sm:$0xff]  ;;  %v2680_v20 = vpack.c.bf16 %v503_v12, %v495_v11  ;;  %v509_v22 = vld [vmem:[#allocation5 + $0x600] sm:$0xff] }
  0x8c   : > { %2665 = vmatpush1.bf16.msra.mxu1 %v2664_v35  ;;  %2603 = vmatprep.subr.bf16.mxu0 %v2602_v36  ;;  %v220_v16 = vld [vmem:[%s3319_s30 + $0x8] sm:$0xff]  ;;  %v2618_v21 = vpack.c.bf16 %v518_v15, %v510_v14  ;;  %v517_v23 = vld [vmem:[#allocation5 + $0x640] sm:$0xff]  ;;  %v511_v24 = vld [vmem:[#allocation5 + $0x610] sm:$0xff]  ;;  %v2682_v25 = vpack.c.bf16 %v520_v18, %v512_v17 }
  0x8d   : > { %2667 = vmatprep.subr.bf16.mxu1 %v2666_v40  ;;  %679 = vmatprep.mubr.f32.mxu0 %v220_v16  ;;  %v519_v26 = vld [vmem:[#allocation5 + $0x650] sm:$0xff]  ;;  %v526_v27 = vld [vmem:[#allocation5 + $0x688] sm:$0xff]  ;;  %v528_v29 = vld [vmem:[#allocation5 + $0x698] sm:$0xff]  ;;  %v2620_v31 = vpack.c.bf16 %v517_v23, %v509_v22 }
  0x8e   : > { %1038 = vmatprep.mubr.f32.mxu1 %v220_v16  ;;  %v534_v28 = vld [vmem:[#allocation5 + $0x6c8] sm:$0xff]  ;;  %v536_v30 = vld [vmem:[#allocation5 + $0x6d8] sm:$0xff]  ;;  %v2684_v32 = vpack.c.bf16 %v519_v26, %v511_v24  ;;  %v525_v34 = vld [vmem:[#allocation5 + $0x680] sm:$0xff] }
  0x8f   : > { %2605 = vmatpush1.bf16.msra.mxu0 %v2604_v46  ;;  %v2622_v33 = vpack.c.bf16 %v534_v28, %v526_v27  ;;  %v533_v35 = vld [vmem:[#allocation5 + $0x6c0] sm:$0xff]  ;;  %v527_v36 = vld [vmem:[#allocation5 + $0x690] sm:$0xff]  ;;  %v2686_v37 = vpack.c.bf16 %v536_v30, %v528_v29  ;;  %v542_v39 = vld [vmem:[#allocation5 + $0x708] sm:$0xff] }
  0x90   : > { %2669 = vmatpush1.bf16.msra.mxu1 %v2668_v47  ;;  %2607 = vmatprep.subr.bf16.mxu0 %v2606_v48  ;;  %v535_v38 = vld [vmem:[#allocation5 + $0x6d0] sm:$0xff]  ;;  %v550_v40 = vld [vmem:[#allocation5 + $0x748] sm:$0xff]  ;;  %v544_v41 = vld [vmem:[#allocation5 + $0x718] sm:$0xff]  ;;  %v2624_v43 = vpack.c.bf16 %v533_v35, %v525_v34 }
  0x91   : > { %2671 = vmatprep.subr.bf16.mxu1 %v2670_v52  ;;  %v552_v42 = vld [vmem:[#allocation5 + $0x758] sm:$0xff]  ;;  %v2688_v44 = vpack.c.bf16 %v535_v38, %v527_v36  ;;  %v2626_v45 = vpack.c.bf16 %v550_v40, %v542_v39  ;;  %v541_v46 = vld [vmem:[#allocation5 + $0x700] sm:$0xff]  ;;  %v543_v48 = vld [vmem:[#allocation5 + $0x710] sm:$0xff] }
  0x92   : > { %v549_v47 = vld [vmem:[#allocation5 + $0x740] sm:$0xff]  ;;  %v2690_v49 = vpack.c.bf16 %v552_v42, %v544_v41  ;;  %v551_v50 = vld [vmem:[#allocation5 + $0x750] sm:$0xff]  ;;  %v558_v51 = vld [vmem:[#allocation5 + $0x788] sm:$0xff] }
  0x93   : > { %2609 = vmatpush1.bf16.msra.mxu0 %v2608_v58  ;;  %v566_v52 = vld [vmem:[#allocation5 + $0x7c8] sm:$0xff]  ;;  %v560_v53 = vld [vmem:[#allocation5 + $0x798] sm:$0xff]  ;;  %v2628_v55 = vpack.c.bf16 %v549_v47, %v541_v46  ;;  %v2692_v56 = vpack.c.bf16 %v551_v50, %v543_v48  ;;  %v557_v58 = vld [vmem:[#allocation5 + $0x780] sm:$0xff] }
  0x94   : > { %2673 = vmatpush1.bf16.msra.mxu1 %v2672_v59  ;;  %2611 = vmatprep.subr.bf16.mxu0 %v2610_v60  ;;  %v568_v54 = vld [vmem:[#allocation5 + $0x7d8] sm:$0xff]  ;;  %v2630_v57 = vpack.c.bf16 %v566_v52, %v558_v51  ;;  %v565_v59 = vld [vmem:[#allocation5 + $0x7c0] sm:$0xff]  ;;  %v559_v60 = vld [vmem:[#allocation5 + $0x790] sm:$0xff] }
  0x95   : > { %2675 = vmatprep.subr.bf16.mxu1 %v2674_v0  ;;  %v2694_v61 = vpack.c.bf16 %v568_v54, %v560_v53  ;;  %v567_v62 = vld [vmem:[#allocation5 + $0x7d0] sm:$0xff]  ;;  %v322_v63 = vld [vmem:[#allocation5 + $0x28] sm:$0xff]  ;;  %v324_v1 = vld [vmem:[#allocation5 + $0x38] sm:$0xff]  ;;  %v2632_v3 = vpack.c.bf16 %v565_v59, %v557_v58 }
  0x96   : > { %v330_v0 = vld [vmem:[#allocation5 + $0x68] sm:$0xff]  ;;  %v332_v2 = vld [vmem:[#allocation5 + $0x78] sm:$0xff]  ;;  %v2696_v4 = vpack.c.bf16 %v567_v62, %v559_v60  ;;  %v329_v7 = vld [vmem:[#allocation5 + $0x60] sm:$0xff] }
  0x97   : > { %2613 = vmatpush1.bf16.msra.mxu0 %v2612_v6  ;;  %v2698_v5 = vpack.c.bf16 %v330_v0, %v322_v63  ;;  %v321_v6 = vld [vmem:[#allocation5 + $0x20] sm:$0xff]  ;;  %v331_v10 = vld [vmem:[#allocation5 + $0x70] sm:$0xff]  ;;  %v338_v11 = vld [vmem:[#allocation5 + $0xa8] sm:$0xff] }
  0x98   : > { %2677 = vmatpush1.bf16.msra.mxu1 %v2676_v8  ;;  %2615 = vmatprep.subr.bf16.mxu0 %v2614_v9  ;;  %v2762_v8 = vpack.c.bf16 %v332_v2, %v324_v1  ;;  %v323_v9 = vld [vmem:[#allocation5 + $0x30] sm:$0xff]  ;;  %v346_v12 = vld [vmem:[#allocation5 + $0xe8] sm:$0xff]  ;;  %v2700_v14 = vpack.c.bf16 %v329_v7, %v321_v6  ;;  %v340_v15 = vld [vmem:[#allocation5 + $0xb8] sm:$0xff] }
  0x99   : > { %2679 = vmatprep.subr.bf16.mxu1 %v2678_v13  ;;  %v219_v13 = vld [vmem:[%s3319_s30] sm:$0xff]  ;;  %v348_v16 = vld [vmem:[#allocation5 + $0xf8] sm:$0xff]  ;;  %v2764_v17 = vpack.c.bf16 %v331_v10, %v323_v9  ;;  %v362_v26 = vld [vmem:[#allocation5 + $0x168] sm:$0xff] }
  0x9a   : > { %v222_v18 = vld [vmem:[%s3319_s30 + $0x18] sm:$0xff]  ;;  %v339_v22 = vld [vmem:[#allocation5 + $0xb0] sm:$0xff]  ;;  %v2766_v23 = vpack.c.bf16 %v348_v16, %v340_v15  ;;  %v224_v30 = vld [vmem:[%s3319_s30 + $0x28] sm:$0xff] }
  0x9b   : > { %2617 = vmatpush1.bf16.msra.mxu0 %v2616_v19  ;;  %v2702_v19 = vpack.c.bf16 %v346_v12, %v338_v11  ;;  %v347_v24 = vld [vmem:[#allocation5 + $0xf0] sm:$0xff]  ;;  %v356_v28 = vld [vmem:[#allocation5 + $0x138] sm:$0xff]  ;;  %v353_v34 = vld [vmem:[#allocation5 + $0x120] sm:$0xff] }
  0x9c   : > { %2681 = vmatpush1.bf16.msra.mxu1 %v2680_v20  ;;  %2619 = vmatprep.subr.bf16.mxu0 %v2618_v21  ;;  %v337_v20 = vld [vmem:[#allocation5 + $0xa0] sm:$0xff]  ;;  %v364_v29 = vld [vmem:[#allocation5 + $0x178] sm:$0xff]  ;;  %v355_v36 = vld [vmem:[#allocation5 + $0x130] sm:$0xff] }
  0x9d   : > { %2683 = vmatprep.subr.bf16.mxu1 %v2682_v25  ;;  %v345_v21 = vld [vmem:[#allocation5 + $0xe0] sm:$0xff]  ;;  %v354_v25 = vld [vmem:[#allocation5 + $0x128] sm:$0xff]  ;;  %v363_v38 = vld [vmem:[#allocation5 + $0x170] sm:$0xff] }
  0x9e   : > { %v221_v27 = vld [vmem:[%s3319_s30 + $0x10] sm:$0xff]  ;;  %v370_v39 = vld [vmem:[#allocation5 + $0x1a8] sm:$0xff]  ;;  %v3335_v41 = vld [vmem:[%s3319_s30 + $0x20] sm:$0xff]  ;;  %v2772_v46 = vpack.c.bf16 %v363_v38, %v355_v36 }
  0x9f   : > { %2621 = vmatpush1.bf16.msra.mxu0 %v2620_v31  ;;  %v2704_v31 = vpack.c.bf16 %v345_v21, %v337_v20  ;;  %v361_v35 = vld [vmem:[#allocation5 + $0x160] sm:$0xff]  ;;  %v378_v40 = vld [vmem:[#allocation5 + $0x1e8] sm:$0xff]  ;;  %v372_v42 = vld [vmem:[#allocation5 + $0x1b8] sm:$0xff] }
  0xa0   : > { %2685 = vmatpush1.bf16.msra.mxu1 %v2684_v32  ;;  %2623 = vmatprep.subr.bf16.mxu0 %v2622_v33  ;;  %v2768_v32 = vpack.c.bf16 %v347_v24, %v339_v22  ;;  %v2706_v33 = vpack.c.bf16 %v362_v26, %v354_v25  ;;  %v2710_v47 = vpack.c.bf16 %v378_v40, %v370_v39  ;;  %v369_v48 = vld [vmem:[#allocation5 + $0x1a0] sm:$0xff]  ;;  %v371_v50 = vld [vmem:[#allocation5 + $0x1b0] sm:$0xff]  ;;  %v386_v53 = vld [vmem:[#allocation5 + $0x228] sm:$0xff] }
  0xa1   : > { %2687 = vmatprep.subr.bf16.mxu1 %v2686_v37  ;;  %v2770_v37 = vpack.c.bf16 %v364_v29, %v356_v28  ;;  %v379_v52 = vld [vmem:[#allocation5 + $0x1f0] sm:$0xff]  ;;  %v394_v54 = vld [vmem:[#allocation5 + $0x268] sm:$0xff]  ;;  %v385_v62 = vld [vmem:[#allocation5 + $0x220] sm:$0xff] }
  0xa2   : > { %v3348_v58 = vld [vmem:[%s3319_s30 + $0x48] sm:$0xff]  ;;  %v2776_v60 = vpack.c.bf16 %v379_v52, %v371_v50  ;;  %v393_v63 = vld [vmem:[#allocation5 + $0x260] sm:$0xff]  ;;  %v387_v0 = vld [vmem:[#allocation5 + $0x230] sm:$0xff] }
  0xa3   : > { %2625 = vmatpush1.bf16.msra.mxu0 %v2624_v43  ;;  %v380_v43 = vld [vmem:[#allocation5 + $0x1f8] sm:$0xff]  ;;  %v395_v2 = vld [vmem:[#allocation5 + $0x270] sm:$0xff]  ;;  %v2716_v9 = vpack.c.bf16 %v393_v63, %v385_v62  ;;  %v401_v12 = vld [vmem:[#allocation5 + $0x2a0] sm:$0xff] }
  0xa4   : > { %2689 = vmatpush1.bf16.msra.mxu1 %v2688_v44  ;;  %2627 = vmatprep.subr.bf16.mxu0 %v2626_v45  ;;  %v3338_v44 = vld [vmem:[%s3319_s30 + $0x38] sm:$0xff]  ;;  %v2708_v45 = vpack.c.bf16 %v361_v35, %v353_v34  ;;  %v2774_v51 = vpack.c.bf16 %v380_v43, %v372_v42  ;;  %v2780_v10 = vpack.c.bf16 %v395_v2, %v387_v0  ;;  %v411_v16 = vld [vmem:[#allocation5 + $0x2f0] sm:$0xff]  ;;  %v3368_v22 = vld [vmem:[%s3319_s30 + $0x68] sm:$0xff] }
  0xa5   : > { %2691 = vmatprep.subr.bf16.mxu1 %v2690_v49  ;;  %v377_v49 = vld [vmem:[#allocation5 + $0x1e0] sm:$0xff]  ;;  %v404_v6 = vld [vmem:[#allocation5 + $0x2b8] sm:$0xff]  ;;  %v419_v28 = vld [vmem:[#allocation5 + $0x330] sm:$0xff] }
  0xa6   : > { %v2712_v59 = vpack.c.bf16 %v377_v49, %v369_v48  ;;  %v412_v7 = vld [vmem:[#allocation5 + $0x2f8] sm:$0xff]  ;;  %v417_v26 = vld [vmem:[#allocation5 + $0x320] sm:$0xff]  ;;  %v435_v43 = vld [vmem:[#allocation5 + $0x3b0] sm:$0xff] }
  0xa7   : > { %2629 = vmatpush1.bf16.msra.mxu0 %v2628_v55  ;;  %v3344_v55 = vld [vmem:[%s3319_s30 + $0x30] sm:$0xff]  ;;  %v2782_v15 = vpack.c.bf16 %v412_v7, %v404_v6  ;;  %v420_v20 = vld [vmem:[#allocation5 + $0x338] sm:$0xff]  ;;  %v458_v48 = vld [vmem:[#allocation5 + $0x468] sm:$0xff] }
  0xa8   : > { %2693 = vmatpush1.bf16.msra.mxu1 %v2692_v56  ;;  %2631 = vmatprep.subr.bf16.mxu0 %v2630_v57  ;;  %v388_v56 = vld [vmem:[#allocation5 + $0x238] sm:$0xff]  ;;  %v433_v40 = vld [vmem:[#allocation5 + $0x3a0] sm:$0xff]  ;;  %v459_v62 = vld [vmem:[#allocation5 + $0x470] sm:$0xff] }
  0xa9   : > { %2695 = vmatprep.subr.bf16.mxu1 %v2694_v61  ;;  %v396_v57 = vld [vmem:[#allocation5 + $0x278] sm:$0xff]  ;;  %v2714_v61 = vpack.c.bf16 %v394_v54, %v386_v53  ;;  %v441_v42 = vld [vmem:[#allocation5 + $0x3e0] sm:$0xff]  ;;  %v466_v63 = vld [vmem:[#allocation5 + $0x4a8] sm:$0xff] }
  0xaa   : > { %v2778_v1 = vpack.c.bf16 %v396_v57, %v388_v56  ;;  %v428_v21 = vld [vmem:[#allocation5 + $0x378] sm:$0xff]  ;;  %v3384_v49 = vld [vmem:[%s3319_s30 + $0x70] sm:$0xff]  ;;  %v2728_v53 = vpack.c.bf16 %v441_v42, %v433_v40  ;;  %v474_v0 = vld [vmem:[#allocation5 + $0x4e8] sm:$0xff] }
  0xab   : > { %2633 = vmatpush1.bf16.msra.mxu0 %v2632_v3  ;;  %v402_v3 = vld [vmem:[#allocation5 + $0x2a8] sm:$0xff]  ;;  %v2786_v29 = vpack.c.bf16 %v428_v21, %v420_v20  ;;  %v436_v34 = vld [vmem:[#allocation5 + $0x3b8] sm:$0xff]  ;;  %v449_v57 = vld [vmem:[#allocation5 + $0x420] sm:$0xff] }
  0xac   : > { %2697 = vmatpush1.bf16.msra.mxu1 %v2696_v4  ;;  %2699 = vmatprep.subr.bf16.mxu0 %v2698_v5  ;;  %v410_v4 = vld [vmem:[#allocation5 + $0x2e8] sm:$0xff]  ;;  %v3354_v5 = vld [vmem:[%s3319_s30 + $0x40] sm:$0xff]  ;;  %v444_v35 = vld [vmem:[#allocation5 + $0x3f8] sm:$0xff] }
  0xad   : > { %2763 = vmatprep.subr.bf16.mxu1 %v2762_v8  ;;  %v3358_v8 = vld [vmem:[%s3319_s30 + $0x58] sm:$0xff]  ;;  %v2718_v11 = vpack.c.bf16 %v410_v4, %v402_v3  ;;  %v3388_v52 = vld [vmem:[%s3319_s30 + $0x88] sm:$0xff] }
  0xae   : > { %680 = vmatmul.mubr.f32.vlgmr.msra.gmra.mrb[0].mxu0 %v219_v13  ;;  %v3378_v36 = vld [vmem:[%s3319_s30 + $0x78] sm:$0xff]  ;;  %v3408_v21 = vld [vmem:[%s3319_s30 + $0xa8] sm:$0xff] }
  0xaf   : > { %1039 = vmatmul.mubr.f32.vlgmr.msra.gmra.mrb[0].mxu1 %v219_v13  ;;  %2701 = vmatpush1.bf16.msra.mxu0 %v2700_v14  ;;  %v409_v13 = vld [vmem:[#allocation5 + $0x2e0] sm:$0xff]  ;;  %v403_v14 = vld [vmem:[#allocation5 + $0x2b0] sm:$0xff]  ;;  %v452_v50 = vld [vmem:[#allocation5 + $0x438] sm:$0xff] }
  0xb0   : > { %2765 = vmatpush1.bf16.msra.mxu1 %v2764_v17  ;;  %685 = vmatprep.mubr.f32.mxu0 %v222_v18  ;;  %v418_v17 = vld [vmem:[#allocation5 + $0x328] sm:$0xff]  ;;  %v2784_v24 = vpack.c.bf16 %v411_v16, %v403_v14  ;;  %v468_v2 = vld [vmem:[#allocation5 + $0x4b8] sm:$0xff]  ;;  %v475_v14 = vld [vmem:[#allocation5 + $0x4f0] sm:$0xff] }
  0xb1   : > { %1044 = vmatprep.mubr.f32.mxu1 %v222_v18  ;;  %2703 = vmatprep.subr.bf16.mxu0 %v2702_v19  ;;  %v426_v18 = vld [vmem:[#allocation5 + $0x368] sm:$0xff]  ;;  %v3364_v19 = vld [vmem:[%s3319_s30 + $0x50] sm:$0xff]  ;;  %v476_v3 = vld [vmem:[#allocation5 + $0x4f8] sm:$0xff] }
  0xb2   : > { %686 = vmatmul.mubr.f32.gmra.mrb[2].mxu0 %v221_v27  ;;  %2767 = vmatprep.subr.bf16.mxu1 %v2766_v23  ;;  %v2720_v23 = vpack.c.bf16 %v409_v13, %v401_v12  ;;  %v2722_v25 = vpack.c.bf16 %v426_v18, %v418_v17  ;;  %v3398_v4 = vld [vmem:[%s3319_s30 + $0x98] sm:$0xff]  ;;  %v467_v12 = vld [vmem:[#allocation5 + $0x4b0] sm:$0xff]  ;;  %v2798_v13 = vpack.c.bf16 %v476_v3, %v468_v2 }
  0xb3   : > { %1045 = vmatmul.mubr.f32.gmra.mrb[2].mxu1 %v221_v27  ;;  %691 = vmatprep.mubr.f32.mxu0 %v224_v30  ;;  %v425_v27 = vld [vmem:[#allocation5 + $0x360] sm:$0xff]  ;;  %v490_v16 = vld [vmem:[#allocation5 + $0x568] sm:$0xff]  ;;  %v484_v18 = vld [vmem:[#allocation5 + $0x538] sm:$0xff] }
  0xb4   : > { %1050 = vmatprep.mubr.f32.mxu1 %v224_v30  ;;  %2705 = vmatpush1.bf16.msra.mxu0 %v2704_v31  ;;  %v427_v30 = vld [vmem:[#allocation5 + $0x370] sm:$0xff]  ;;  %v434_v31 = vld [vmem:[#allocation5 + $0x3a8] sm:$0xff]  ;;  %v492_v20 = vld [vmem:[#allocation5 + $0x578] sm:$0xff] }
  0xb5   : > { %2769 = vmatpush1.bf16.msra.mxu1 %v2768_v32  ;;  %2707 = vmatprep.subr.bf16.mxu0 %v2706_v33  ;;  %v442_v32 = vld [vmem:[#allocation5 + $0x3e8] sm:$0xff]  ;;  %v3374_v33 = vld [vmem:[%s3319_s30 + $0x60] sm:$0xff]  ;;  %v2788_v38 = vpack.c.bf16 %v427_v30, %v419_v28  ;;  %v3404_v17 = vld [vmem:[%s3319_s30 + $0x90] sm:$0xff] }
  0xb6   : > { %692 = vmatmul.mubr.f32.gmra.mrb[4].mxu0 %v3335_v41  ;;  %2771 = vmatprep.subr.bf16.mxu1 %v2770_v37  ;;  %v2724_v37 = vpack.c.bf16 %v425_v27, %v417_v26  ;;  %v2726_v39 = vpack.c.bf16 %v442_v32, %v434_v31  ;;  %v481_v26 = vld [vmem:[#allocation5 + $0x520] sm:$0xff]  ;;  %v483_v28 = vld [vmem:[#allocation5 + $0x530] sm:$0xff]  ;;  %v498_v31 = vld [vmem:[#allocation5 + $0x5a8] sm:$0xff] }
  0xb7   : > { %1051 = vmatmul.mubr.f32.gmra.mrb[4].mxu1 %v3335_v41  ;;  %697 = vmatprep.mubr.f32.mxu0 %v3338_v44  ;;  %v489_v27 = vld [vmem:[#allocation5 + $0x560] sm:$0xff]  ;;  %v491_v30 = vld [vmem:[#allocation5 + $0x570] sm:$0xff]  ;;  %v506_v32 = vld [vmem:[#allocation5 + $0x5e8] sm:$0xff] }
  0xb8   : > { %1056 = vmatprep.mubr.f32.mxu1 %v3338_v44  ;;  %2709 = vmatpush1.bf16.msra.mxu0 %v2708_v45  ;;  %v2790_v45 = vpack.c.bf16 %v444_v35, %v436_v34  ;;  %v3414_v34 = vld [vmem:[%s3319_s30 + $0xa0] sm:$0xff]  ;;  %v500_v35 = vld [vmem:[#allocation5 + $0x5b8] sm:$0xff]  ;;  %v2804_v40 = vpack.c.bf16 %v491_v30, %v483_v28  ;;  %v2742_v42 = vpack.c.bf16 %v506_v32, %v498_v31 }
  0xb9   : > { %2773 = vmatpush1.bf16.msra.mxu1 %v2772_v46  ;;  %2711 = vmatprep.subr.bf16.mxu0 %v2710_v47  ;;  %v443_v46 = vld [vmem:[#allocation5 + $0x3f0] sm:$0xff]  ;;  %v450_v47 = vld [vmem:[#allocation5 + $0x428] sm:$0xff]  ;;  %v548_v28 = vld [vmem:[#allocation5 + $0x738] sm:$0xff] }
  0xba   : > { %698 = vmatmul.mubr.f32.gmra.mrb[6].mxu0 %v3344_v55  ;;  %2775 = vmatprep.subr.bf16.mxu1 %v2774_v51  ;;  %v460_v51 = vld [vmem:[#allocation5 + $0x478] sm:$0xff]  ;;  %v2792_v54 = vpack.c.bf16 %v443_v46, %v435_v43  ;;  %v2730_v56 = vpack.c.bf16 %v458_v48, %v450_v47  ;;  %v497_v43 = vld [vmem:[#allocation5 + $0x5a0] sm:$0xff]  ;;  %v499_v46 = vld [vmem:[#allocation5 + $0x5b0] sm:$0xff] }
  0xbb   : > { %1057 = vmatmul.mubr.f32.gmra.mrb[6].mxu1 %v3344_v55  ;;  %703 = vmatprep.mubr.f32.mxu0 %v3348_v58  ;;  %v507_v48 = vld [vmem:[#allocation5 + $0x5f0] sm:$0xff]  ;;  %v3448_v30 = vld [vmem:[%s3319_s30 + $0xe8] sm:$0xff] }
  0xbc   : > { %1062 = vmatprep.mubr.f32.mxu1 %v3348_v58  ;;  %2713 = vmatpush1.bf16.msra.mxu0 %v2712_v59  ;;  %v457_v59 = vld [vmem:[#allocation5 + $0x460] sm:$0xff]  ;;  %v523_v3 = vld [vmem:[#allocation5 + $0x670] sm:$0xff] }
  0xbd   : > { %2777 = vmatpush1.bf16.msra.mxu1 %v2776_v60  ;;  %2715 = vmatprep.subr.bf16.mxu0 %v2714_v61  ;;  %v451_v60 = vld [vmem:[#allocation5 + $0x430] sm:$0xff]  ;;  %v2794_v61 = vpack.c.bf16 %v460_v51, %v452_v50  ;;  %v2732_v6 = vpack.c.bf16 %v457_v59, %v449_v57  ;;  %v514_v50 = vld [vmem:[#allocation5 + $0x628] sm:$0xff] }
  0xbe   : > { %704 = vmatmul.mubr.f32.gmra.mrb[8].mxu0 %v3354_v5  ;;  %2779 = vmatprep.subr.bf16.mxu1 %v2778_v1  ;;  %v3394_v1 = vld [vmem:[%s3319_s30 + $0x80] sm:$0xff]  ;;  %v2796_v7 = vpack.c.bf16 %v459_v62, %v451_v60  ;;  %v522_v51 = vld [vmem:[#allocation5 + $0x668] sm:$0xff]  ;;  %v2808_v60 = vpack.c.bf16 %v507_v48, %v499_v46 }
  0xbf   : > { %1063 = vmatmul.mubr.f32.gmra.mrb[8].mxu1 %v3354_v5  ;;  %709 = vmatprep.mubr.f32.mxu0 %v3358_v8  ;;  %v3428_v57 = vld [vmem:[%s3319_s30 + $0xc8] sm:$0xff]  ;;  %v513_v62 = vld [vmem:[#allocation5 + $0x620] sm:$0xff]  ;;  %v3458_v46 = vld [vmem:[%s3319_s30 + $0xf8] sm:$0xff] }
  0xc0   : > { %1068 = vmatprep.mubr.f32.mxu1 %v3358_v8  ;;  %2717 = vmatpush1.bf16.msra.mxu0 %v2716_v9  ;;  %v2734_v9 = vpack.c.bf16 %v474_v0, %v466_v63  ;;  %v521_v63 = vld [vmem:[#allocation5 + $0x660] sm:$0xff]  ;;  %v515_v0 = vld [vmem:[#allocation5 + $0x630] sm:$0xff] }
  0xc1   : > { %2781 = vmatpush1.bf16.msra.mxu1 %v2780_v10  ;;  %2719 = vmatprep.subr.bf16.mxu0 %v2718_v11  ;;  %v465_v10 = vld [vmem:[#allocation5 + $0x4a0] sm:$0xff] }
  0xc2   : > { %710 = vmatmul.mubr.f32.gmra.mrb[10].mxu0 %v3364_v19  ;;  %2783 = vmatprep.subr.bf16.mxu1 %v2782_v15  ;;  %v473_v11 = vld [vmem:[#allocation5 + $0x4e0] sm:$0xff]  ;;  %v482_v15 = vld [vmem:[#allocation5 + $0x528] sm:$0xff] }
  0xc3   : > { %1069 = vmatmul.mubr.f32.gmra.mrb[10].mxu1 %v3364_v19  ;;  %715 = vmatprep.mubr.f32.mxu0 %v3368_v22 }
  0xc4   : > { %1074 = vmatprep.mubr.f32.mxu1 %v3368_v22  ;;  %2721 = vmatpush1.bf16.msra.mxu0 %v2720_v23  ;;  %v2736_v23 = vpack.c.bf16 %v473_v11, %v465_v10  ;;  %v532_v10 = vld [vmem:[#allocation5 + $0x6b8] sm:$0xff] }
  0xc5   : > { %2785 = vmatpush1.bf16.msra.mxu1 %v2784_v24  ;;  %2723 = vmatprep.subr.bf16.mxu0 %v2722_v25  ;;  %v2800_v24 = vpack.c.bf16 %v475_v14, %v467_v12  ;;  %v2738_v25 = vpack.c.bf16 %v490_v16, %v482_v15  ;;  %v540_v11 = vld [vmem:[#allocation5 + $0x6f8] sm:$0xff]  ;;  %v2812_v14 = vpack.c.bf16 %v523_v3, %v515_v0  ;;  %v529_v16 = vld [vmem:[#allocation5 + $0x6a0] sm:$0xff]  ;;  %v563_v3 = vld [vmem:[#allocation5 + $0x7b0] sm:$0xff] }
  0xc6   : > { %716 = vmatmul.mubr.f32.gmra.mrb[12].mxu0 %v3374_v33  ;;  %2787 = vmatprep.subr.bf16.mxu1 %v2786_v29  ;;  %v2802_v29 = vpack.c.bf16 %v492_v20, %v484_v18  ;;  %v3438_v12 = vld [vmem:[%s3319_s30 + $0xd8] sm:$0xff]  ;;  %v537_v18 = vld [vmem:[#allocation5 + $0x6e0] sm:$0xff]  ;;  %v531_v20 = vld [vmem:[#allocation5 + $0x6b0] sm:$0xff] }
  0xc7   : > { %1075 = vmatmul.mubr.f32.gmra.mrb[12].mxu1 %v3374_v33  ;;  %721 = vmatprep.mubr.f32.mxu0 %v3378_v36  ;;  %v2752_v31 = vpack.c.bf16 %v537_v18, %v529_v16  ;;  %v3498_v16 = vld [vmem:[%s3319_s30 + $0x138] sm:$0xff]  ;;  %v3504_v18 = vld [vmem:[%s3319_s30 + $0x130] sm:$0xff] }
  0xc8   : > { %1080 = vmatprep.mubr.f32.mxu1 %v3378_v36  ;;  %2725 = vmatpush1.bf16.msra.mxu0 %v2724_v37  ;;  %v508_v37 = vld [vmem:[#allocation5 + $0x5f8] sm:$0xff] }
  0xc9   : > { %2789 = vmatpush1.bf16.msra.mxu1 %v2788_v38  ;;  %2727 = vmatprep.subr.bf16.mxu0 %v2726_v39  ;;  %v3418_v38 = vld [vmem:[%s3319_s30 + $0xb8] sm:$0xff]  ;;  %v2740_v39 = vpack.c.bf16 %v489_v27, %v481_v26  ;;  %v2806_v47 = vpack.c.bf16 %v508_v37, %v500_v35  ;;  %v3444_v27 = vld [vmem:[%s3319_s30 + $0xd0] sm:$0xff] }
  0xca   : > { %722 = vmatmul.mubr.f32.gmra.mrb[14].mxu0 %v3384_v49  ;;  %2791 = vmatprep.subr.bf16.mxu1 %v2790_v45  ;;  %v505_v45 = vld [vmem:[#allocation5 + $0x5e0] sm:$0xff]  ;;  %v554_v26 = vld [vmem:[#allocation5 + $0x768] sm:$0xff] }
  0xcb   : > { %1081 = vmatmul.mubr.f32.gmra.mrb[14].mxu1 %v3384_v49  ;;  %727 = vmatprep.mubr.f32.mxu0 %v3388_v52  ;;  %v2744_v59 = vpack.c.bf16 %v505_v45, %v497_v43  ;;  %v545_v37 = vld [vmem:[#allocation5 + $0x720] sm:$0xff]  ;;  %v555_v43 = vld [vmem:[#allocation5 + $0x770] sm:$0xff] }
  0xcc   : > { %1086 = vmatprep.mubr.f32.mxu1 %v3388_v52  ;;  %2729 = vmatpush1.bf16.msra.mxu0 %v2728_v53  ;;  %v3424_v53 = vld [vmem:[%s3319_s30 + $0xb0] sm:$0xff]  ;;  %v3454_v45 = vld [vmem:[%s3319_s30 + $0xe0] sm:$0xff] }
  0xcd   : > { %2793 = vmatpush1.bf16.msra.mxu1 %v2792_v54  ;;  %2731 = vmatprep.subr.bf16.mxu0 %v2730_v56  ;;  %v516_v54 = vld [vmem:[#allocation5 + $0x638] sm:$0xff] }
  0xce   : > { %728 = vmatmul.mubr.f32.gmra.mrb[16].mxu0 %v3394_v1  ;;  %2795 = vmatprep.subr.bf16.mxu1 %v2794_v61  ;;  %v524_v56 = vld [vmem:[#allocation5 + $0x678] sm:$0xff]  ;;  %v2746_v61 = vpack.c.bf16 %v522_v51, %v514_v50  ;;  %v3462_v50 = vld [vmem:[%s3319_s30 + $0xf0] sm:$0xff] }
  0xcf   : > { %1087 = vmatmul.mubr.f32.gmra.mrb[16].mxu1 %v3394_v1  ;;  %733 = vmatprep.mubr.f32.mxu0 %v3398_v4  ;;  %v2810_v2 = vpack.c.bf16 %v524_v56, %v516_v54  ;;  %v3465_v51 = vld [vmem:[%s3319_s30 + $0x108] sm:$0xff] }
  0xd0   : > { %1092 = vmatprep.mubr.f32.mxu1 %v3398_v4  ;;  %2733 = vmatpush1.bf16.msra.mxu0 %v2732_v6  ;;  %v530_v6 = vld [vmem:[#allocation5 + $0x6a8] sm:$0xff] }
  0xd1   : > { %2797 = vmatpush1.bf16.msra.mxu1 %v2796_v7  ;;  %2735 = vmatprep.subr.bf16.mxu0 %v2734_v9  ;;  %v538_v7 = vld [vmem:[#allocation5 + $0x6e8] sm:$0xff]  ;;  %v3434_v9 = vld [vmem:[%s3319_s30 + $0xc0] sm:$0xff] }
  0xd2   : > { %734 = vmatmul.mubr.f32.gmra.mrb[18].mxu0 %v3404_v17  ;;  %2799 = vmatprep.subr.bf16.mxu1 %v2798_v13  ;;  %v2748_v13 = vpack.c.bf16 %v521_v63, %v513_v62  ;;  %v2750_v15 = vpack.c.bf16 %v538_v7, %v530_v6  ;;  %v562_v54 = vld [vmem:[#allocation5 + $0x7a8] sm:$0xff]  ;;  %v561_v62 = vld [vmem:[#allocation5 + $0x7a0] sm:$0xff]  ;;  %v571_v6 = vld [vmem:[#allocation5 + $0x7f0] sm:$0xff] }
  0xd3   : > { %1093 = vmatmul.mubr.f32.gmra.mrb[18].mxu1 %v3404_v17  ;;  %739 = vmatprep.mubr.f32.mxu0 %v3408_v21  ;;  %v570_v56 = vld [vmem:[#allocation5 + $0x7e8] sm:$0xff]  ;;  %v569_v63 = vld [vmem:[#allocation5 + $0x7e0] sm:$0xff]  ;;  %v2824_v7 = vpack.c.bf16 %v571_v6, %v563_v3 }
  0xd4   : > { %1098 = vmatprep.mubr.f32.mxu1 %v3408_v21  ;;  %2737 = vmatpush1.bf16.msra.mxu0 %v2736_v23  ;;  %v2814_v23 = vpack.c.bf16 %v540_v11, %v532_v10  ;;  %v3474_v10 = vld [vmem:[%s3319_s30 + $0x100] sm:$0xff]  ;;  %v3478_v11 = vld [vmem:[%s3319_s30 + $0x118] sm:$0xff]  ;;  %v285_v6 = vld [vmem:[%s3319_s30 + $0x210] sm:$0xff] }
  0xd5   : > { %2801 = vmatpush1.bf16.msra.mxu1 %v2800_v24  ;;  %2739 = vmatprep.subr.bf16.mxu0 %v2738_v25  ;;  %v539_v24 = vld [vmem:[#allocation5 + $0x6f0] sm:$0xff]  ;;  %v546_v25 = vld [vmem:[#allocation5 + $0x728] sm:$0xff] }
  0xd6   : > { %740 = vmatmul.mubr.f32.gmra.mrb[20].mxu0 %v3414_v34  ;;  %2803 = vmatprep.subr.bf16.mxu1 %v2802_v29  ;;  %v556_v29 = vld [vmem:[#allocation5 + $0x778] sm:$0xff]  ;;  %v2816_v32 = vpack.c.bf16 %v539_v24, %v531_v20  ;;  %v2754_v35 = vpack.c.bf16 %v554_v26, %v546_v25  ;;  %v3524_v25 = vld [vmem:[%s3319_s30 + $0x150] sm:$0xff] }
  0xd7   : > { %1099 = vmatmul.mubr.f32.gmra.mrb[20].mxu1 %v3414_v34  ;;  %745 = vmatprep.mubr.f32.mxu0 %v3418_v38  ;;  %v3508_v20 = vld [vmem:[%s3319_s30 + $0x148] sm:$0xff]  ;;  %v3518_v24 = vld [vmem:[%s3319_s30 + $0x158] sm:$0xff] }
  0xd8   : > { %1104 = vmatprep.mubr.f32.mxu1 %v3418_v38  ;;  %2741 = vmatpush1.bf16.msra.mxu0 %v2740_v39  ;;  %v553_v39 = vld [vmem:[#allocation5 + $0x760] sm:$0xff]  ;;  %v3528_v26 = vld [vmem:[%s3319_s30 + $0x168] sm:$0xff]  ;;  %v286_v3 = vld [vmem:[%s3319_s30 + $0x218] sm:$0xff] }
  0xd9   : > { %2805 = vmatpush1.bf16.msra.mxu1 %v2804_v40  ;;  %2743 = vmatprep.subr.bf16.mxu0 %v2742_v42  ;;  %v2818_v40 = vpack.c.bf16 %v556_v29, %v548_v28  ;;  %v547_v42 = vld [vmem:[#allocation5 + $0x730] sm:$0xff]  ;;  %v3538_v29 = vld [vmem:[%s3319_s30 + $0x178] sm:$0xff] }
  0xda   : > { %746 = vmatmul.mubr.f32.gmra.mrb[22].mxu0 %v3424_v53  ;;  %2807 = vmatprep.subr.bf16.mxu1 %v2806_v47  ;;  %v2756_v47 = vpack.c.bf16 %v553_v39, %v545_v37  ;;  %v2820_v48 = vpack.c.bf16 %v555_v43, %v547_v42  ;;  %v3534_v28 = vld [vmem:[%s3319_s30 + $0x160] sm:$0xff]  ;;  %v3558_v37 = vld [vmem:[%s3319_s30 + $0x198] sm:$0xff]  ;;  %v269_v39 = vld [vmem:[%s3319_s30 + $0x190] sm:$0xff] }
  0xdb   : > { %1105 = vmatmul.mubr.f32.gmra.mrb[22].mxu1 %v3424_v53  ;;  %751 = vmatprep.mubr.f32.mxu0 %v3428_v57  ;;  %v271_v42 = vld [vmem:[%s3319_s30 + $0x1a0] sm:$0xff]  ;;  %v274_v43 = vld [vmem:[%s3319_s30 + $0x1b8] sm:$0xff] }
  0xdc   : > { %1110 = vmatprep.mubr.f32.mxu1 %v3428_v57  ;;  %2745 = vmatpush1.bf16.msra.mxu0 %v2744_v59  ;;  %v564_v59 = vld [vmem:[#allocation5 + $0x7b8] sm:$0xff] }
  0xdd   : > { %2809 = vmatpush1.bf16.msra.mxu1 %v2808_v60  ;;  %2747 = vmatprep.subr.bf16.mxu0 %v2746_v61  ;;  %v2758_v60 = vpack.c.bf16 %v570_v56, %v562_v54  ;;  %v572_v61 = vld [vmem:[#allocation5 + $0x7f8] sm:$0xff]  ;;  %v275_v54 = vld [vmem:[%s3319_s30 + $0x1c0] sm:$0xff] }
  0xde   : > { %752 = vmatmul.mubr.f32.gmra.mrb[24].mxu0 %v3434_v9  ;;  %2811 = vmatprep.subr.bf16.mxu1 %v2810_v2  ;;  %v2822_v0 = vpack.c.bf16 %v572_v61, %v564_v59  ;;  %v2760_v2 = vpack.c.bf16 %v569_v63, %v561_v62  ;;  %v278_v56 = vld [vmem:[%s3319_s30 + $0x1d8] sm:$0xff]  ;;  %v277_v59 = vld [vmem:[%s3319_s30 + $0x1d0] sm:$0xff]  ;;  %v279_v61 = vld [vmem:[%s3319_s30 + $0x1e0] sm:$0xff] }
  0xdf   : > { %1111 = vmatmul.mubr.f32.gmra.mrb[24].mxu1 %v3434_v9  ;;  %757 = vmatprep.mubr.f32.mxu0 %v3438_v12  ;;  %v282_v62 = vld [vmem:[%s3319_s30 + $0x1f8] sm:$0xff]  ;;  %v281_v63 = vld [vmem:[%s3319_s30 + $0x1f0] sm:$0xff] }
  0xe0   : > { %1116 = vmatprep.mubr.f32.mxu1 %v3438_v12  ;;  %2749 = vmatpush1.bf16.msra.mxu0 %v2748_v13  ;;  %v3484_v13 = vld [vmem:[%s3319_s30 + $0x110] sm:$0xff] }
  0xe1   : > { %2813 = vmatpush1.bf16.msra.mxu1 %v2812_v14  ;;  %2751 = vmatprep.subr.bf16.mxu0 %v2750_v15  ;;  %v3488_v14 = vld [vmem:[%s3319_s30 + $0x128] sm:$0xff]  ;;  %v3494_v15 = vld [vmem:[%s3319_s30 + $0x120] sm:$0xff] }
  0xe2   : > { %758 = vmatmul.mubr.f32.gmra.mrb[26].mxu0 %v3444_v27  ;;  %2815 = vmatprep.subr.bf16.mxu1 %v2814_v23  ;;  %v3514_v23 = vld [vmem:[%s3319_s30 + $0x140] sm:$0xff] }
  0xe3   : > { %1117 = vmatmul.mubr.f32.gmra.mrb[26].mxu1 %v3444_v27  ;;  %763 = vmatprep.mubr.f32.mxu0 %v3448_v30 }
  0xe4   : > { %1122 = vmatprep.mubr.f32.mxu1 %v3448_v30  ;;  %2753 = vmatpush1.bf16.msra.mxu0 %v2752_v31  ;;  %v3544_v31 = vld [vmem:[%s3319_s30 + $0x170] sm:$0xff] }
  0xe5   : > { %2817 = vmatpush1.bf16.msra.mxu1 %v2816_v32  ;;  %2755 = vmatprep.subr.bf16.mxu0 %v2754_v35  ;;  %v3548_v32 = vld [vmem:[%s3319_s30 + $0x188] sm:$0xff]  ;;  %v3554_v35 = vld [vmem:[%s3319_s30 + $0x180] sm:$0xff] }
  0xe6   : > { %764 = vmatmul.mubr.f32.gmra.mrb[28].mxu0 %v3454_v45  ;;  %2819 = vmatprep.subr.bf16.mxu1 %v2818_v40  ;;  %v272_v40 = vld [vmem:[%s3319_s30 + $0x1a8] sm:$0xff] }
  0xe7   : > { %1123 = vmatmul.mubr.f32.gmra.mrb[28].mxu1 %v3454_v45  ;;  %769 = vmatprep.mubr.f32.mxu0 %v3458_v46 }
  0xe8   : > { %1128 = vmatprep.mubr.f32.mxu1 %v3458_v46  ;;  %2757 = vmatpush1.bf16.msra.mxu0 %v2756_v47  ;;  %v273_v47 = vld [vmem:[%s3319_s30 + $0x1b0] sm:$0xff] }
  0xe9   : > { %2821 = vmatpush1.bf16.msra.mxu1 %v2820_v48  ;;  %2759 = vmatprep.subr.bf16.mxu0 %v2758_v60  ;;  %v276_v48 = vld [vmem:[%s3319_s30 + $0x1c8] sm:$0xff] }
  0xea   : > { %770 = vmatmul.mubr.f32.gmra.mrb[30].mxu0 %v3462_v50  ;;  %2823 = vmatprep.subr.bf16.mxu1 %v2822_v0  ;;  %v280_v60 = vld [vmem:[%s3319_s30 + $0x1e8] sm:$0xff] }
  0xeb   : > { %1129 = vmatmul.mubr.f32.gmra.mrb[30].mxu1 %v3462_v50  ;;  %775 = vmatprep.mubr.f32.mxu0 %v3465_v51  ;;  %v284_v0 = vld [vmem:[%s3319_s30 + $0x208] sm:$0xff] }
  0xec   : > { %1134 = vmatprep.mubr.f32.mxu1 %v3465_v51  ;;  %2761 = vmatpush1.bf16.msra.mxu0 %v2760_v2  ;;  %v283_v2 = vld [vmem:[%s3319_s30 + $0x200] sm:$0xff] }
  0xed   : > { %2825 = vmatpush1.bf16.msra.mxu1 %v2824_v7  ;;  %v288_v7 = vld [vmem:[%s3319_s30 + $0x228] sm:$0xff] }
  0xee   : > { %776 = vmatmul.mubr.f32.gmra.mrb[32].mxu0 %v3474_v10 }
  0xef   : > { %1135 = vmatmul.mubr.f32.gmra.mrb[32].mxu1 %v3474_v10  ;;  %781 = vmatprep.mubr.f32.mxu0 %v3478_v11 }
  0xf0   : > { %1140 = vmatprep.mubr.f32.mxu1 %v3478_v11 }
  0xf2   : > { %782 = vmatmul.mubr.f32.gmra.mrb[34].mxu0 %v3484_v13 }
  0xf3   : > { %1141 = vmatmul.mubr.f32.gmra.mrb[34].mxu1 %v3484_v13  ;;  %787 = vmatprep.mubr.f32.mxu0 %v3488_v14 }
  0xf4   : > { %1146 = vmatprep.mubr.f32.mxu1 %v3488_v14 }
  0xf6   : > { %788 = vmatmul.mubr.f32.gmra.mrb[36].mxu0 %v3494_v15 }
  0xf7   : > { %1147 = vmatmul.mubr.f32.gmra.mrb[36].mxu1 %v3494_v15  ;;  %793 = vmatprep.mubr.f32.mxu0 %v3498_v16 }
  0xf8   : > { %1152 = vmatprep.mubr.f32.mxu1 %v3498_v16 }
  0xfa   : > { %794 = vmatmul.mubr.f32.gmra.mrb[38].mxu0 %v3504_v18 }
  0xfb   : > { %1153 = vmatmul.mubr.f32.gmra.mrb[38].mxu1 %v3504_v18  ;;  %799 = vmatprep.mubr.f32.mxu0 %v3508_v20 }
  0xfc   : > { %1158 = vmatprep.mubr.f32.mxu1 %v3508_v20 }
  0xfe   : > { %800 = vmatmul.mubr.f32.gmra.mrb[40].mxu0 %v3514_v23 }
  0xff   : > { %1159 = vmatmul.mubr.f32.gmra.mrb[40].mxu1 %v3514_v23  ;;  %805 = vmatprep.mubr.f32.mxu0 %v3518_v24 }
 0x100   : > { %1164 = vmatprep.mubr.f32.mxu1 %v3518_v24 }
 0x102   : > { %806 = vmatmul.mubr.f32.gmra.mrb[42].mxu0 %v3524_v25 }
 0x103   : > { %1165 = vmatmul.mubr.f32.gmra.mrb[42].mxu1 %v3524_v25  ;;  %811 = vmatprep.mubr.f32.mxu0 %v3528_v26 }
 0x104   : > { %1170 = vmatprep.mubr.f32.mxu1 %v3528_v26 }
 0x106   : > { %812 = vmatmul.mubr.f32.gmra.mrb[44].mxu0 %v3534_v28 }
 0x107   : > { %1171 = vmatmul.mubr.f32.gmra.mrb[44].mxu1 %v3534_v28  ;;  %817 = vmatprep.mubr.f32.mxu0 %v3538_v29 }
 0x108   : > { %1176 = vmatprep.mubr.f32.mxu1 %v3538_v29 }
 0x10a   : > { %818 = vmatmul.mubr.f32.gmra.mrb[46].mxu0 %v3544_v31 }
 0x10b   : > { %1177 = vmatmul.mubr.f32.gmra.mrb[46].mxu1 %v3544_v31  ;;  %823 = vmatprep.mubr.f32.mxu0 %v3548_v32 }
 0x10c   : > { %1182 = vmatprep.mubr.f32.mxu1 %v3548_v32 }
 0x10e   : > { %824 = vmatmul.mubr.f32.gmra.mrb[48].mxu0 %v3554_v35 }
 0x10f   : > { %1183 = vmatmul.mubr.f32.gmra.mrb[48].mxu1 %v3554_v35  ;;  %829 = vmatprep.mubr.f32.mxu0 %v3558_v37 }
 0x110   : > { %1188 = vmatprep.mubr.f32.mxu1 %v3558_v37 }
 0x112   : > { %830 = vmatmul.mubr.f32.gmra.mrb[50].mxu0 %v269_v39 }
 0x113   : > { %1189 = vmatmul.mubr.f32.gmra.mrb[50].mxu1 %v269_v39  ;;  %835 = vmatprep.mubr.f32.mxu0 %v272_v40  ;;  %v287_v39 = vld [vmem:[%s3319_s30 + $0x220] sm:$0xff] }
 0x114   : > { %1194 = vmatprep.mubr.f32.mxu1 %v272_v40  ;;  %v290_v40 = vld [vmem:[%s3319_s30 + $0x238] sm:$0xff] }
 0x116   : > { %836 = vmatmul.mubr.f32.gmra.mrb[52].mxu0 %v271_v42 }
 0x117   : > { %1195 = vmatmul.mubr.f32.gmra.mrb[52].mxu1 %v271_v42  ;;  %841 = vmatprep.mubr.f32.mxu0 %v274_v43  ;;  %v289_v42 = vld [vmem:[%s3319_s30 + $0x230] sm:$0xff] }
 0x118   : > { %1200 = vmatprep.mubr.f32.mxu1 %v274_v43  ;;  %v292_v43 = vld [vmem:[%s3319_s30 + $0x248] sm:$0xff] }
 0x11a   : > { %842 = vmatmul.mubr.f32.gmra.mrb[54].mxu0 %v273_v47 }
 0x11b   : > { %1201 = vmatmul.mubr.f32.gmra.mrb[54].mxu1 %v273_v47  ;;  %847 = vmatprep.mubr.f32.mxu0 %v276_v48  ;;  %v291_v47 = vld [vmem:[%s3319_s30 + $0x240] sm:$0xff] }
 0x11c   : > { %1206 = vmatprep.mubr.f32.mxu1 %v276_v48  ;;  %v294_v48 = vld [vmem:[%s3319_s30 + $0x258] sm:$0xff] }
 0x11e   : > { %848 = vmatmul.mubr.f32.gmra.mrb[56].mxu0 %v275_v54 }
 0x11f   : > { %1207 = vmatmul.mubr.f32.gmra.mrb[56].mxu1 %v275_v54  ;;  %853 = vmatprep.mubr.f32.mxu0 %v278_v56  ;;  %v293_v54 = vld [vmem:[%s3319_s30 + $0x250] sm:$0xff] }
 0x120   : > { %1212 = vmatprep.mubr.f32.mxu1 %v278_v56  ;;  %v296_v56 = vld [vmem:[%s3319_s30 + $0x268] sm:$0xff] }
 0x122   : > { %854 = vmatmul.mubr.f32.gmra.mrb[58].mxu0 %v277_v59 }
 0x123   : > { %1213 = vmatmul.mubr.f32.gmra.mrb[58].mxu1 %v277_v59  ;;  %859 = vmatprep.mubr.f32.mxu0 %v280_v60  ;;  %v295_v59 = vld [vmem:[%s3319_s30 + $0x260] sm:$0xff] }
 0x124   : > { %1218 = vmatprep.mubr.f32.mxu1 %v280_v60  ;;  %v298_v60 = vld [vmem:[%s3319_s30 + $0x278] sm:$0xff] }
 0x126   : > { %860 = vmatmul.mubr.f32.gmra.mrb[60].mxu0 %v279_v61 }
 0x127   : > { %1219 = vmatmul.mubr.f32.gmra.mrb[60].mxu1 %v279_v61  ;;  %865 = vmatprep.mubr.f32.mxu0 %v282_v62  ;;  %v297_v61 = vld [vmem:[%s3319_s30 + $0x270] sm:$0xff] }
 0x128   : > { %1224 = vmatprep.mubr.f32.mxu1 %v282_v62  ;;  %v300_v62 = vld [vmem:[%s3319_s30 + $0x288] sm:$0xff] }
 0x12a   : > { %866 = vmatmul.mubr.f32.gmra.mrb[62].mxu0 %v281_v63 }
 0x12b   : > { %1225 = vmatmul.mubr.f32.gmra.mrb[62].mxu1 %v281_v63  ;;  %871 = vmatprep.mubr.f32.mxu0 %v284_v0  ;;  %v299_v63 = vld [vmem:[%s3319_s30 + $0x280] sm:$0xff] }
 0x12c   : > { %1230 = vmatprep.mubr.f32.mxu1 %v284_v0  ;;  %v302_v0 = vld [vmem:[%s3319_s30 + $0x298] sm:$0xff] }
 0x12e   : > { %872 = vmatmul.mubr.f32.gmra.mrb[64].mxu0 %v283_v2 }
 0x12f   : > { %1231 = vmatmul.mubr.f32.gmra.mrb[64].mxu1 %v283_v2  ;;  %877 = vmatprep.mubr.f32.mxu0 %v286_v3  ;;  %v301_v2 = vld [vmem:[%s3319_s30 + $0x290] sm:$0xff] }
 0x130   : > { %1236 = vmatprep.mubr.f32.mxu1 %v286_v3  ;;  %v304_v3 = vld [vmem:[%s3319_s30 + $0x2a8] sm:$0xff] }
 0x132   : > { %878 = vmatmul.mubr.f32.gmra.mrb[66].mxu0 %v285_v6 }
 0x133   : > { %1237 = vmatmul.mubr.f32.gmra.mrb[66].mxu1 %v285_v6  ;;  %883 = vmatprep.mubr.f32.mxu0 %v288_v7  ;;  %v303_v6 = vld [vmem:[%s3319_s30 + $0x2a0] sm:$0xff] }
 0x134   : > { %1242 = vmatprep.mubr.f32.mxu1 %v288_v7  ;;  %v306_v7 = vld [vmem:[%s3319_s30 + $0x2b8] sm:$0xff] }
 0x136   : > { %884 = vmatmul.mubr.f32.gmra.mrb[68].mxu0 %v287_v39 }
 0x137   : > { %1243 = vmatmul.mubr.f32.gmra.mrb[68].mxu1 %v287_v39  ;;  %889 = vmatprep.mubr.f32.mxu0 %v290_v40  ;;  %v305_v39 = vld [vmem:[%s3319_s30 + $0x2b0] sm:$0xff] }
 0x138   : > { %1248 = vmatprep.mubr.f32.mxu1 %v290_v40  ;;  %v308_v40 = vld [vmem:[%s3319_s30 + $0x2c8] sm:$0xff] }
 0x13a   : > { %890 = vmatmul.mubr.f32.gmra.mrb[70].mxu0 %v289_v42 }
 0x13b   : > { %1249 = vmatmul.mubr.f32.gmra.mrb[70].mxu1 %v289_v42  ;;  %895 = vmatprep.mubr.f32.mxu0 %v292_v43  ;;  %v307_v42 = vld [vmem:[%s3319_s30 + $0x2c0] sm:$0xff] }
 0x13c   : > { %1254 = vmatprep.mubr.f32.mxu1 %v292_v43  ;;  %v310_v43 = vld [vmem:[%s3319_s30 + $0x2d8] sm:$0xff] }
 0x13e   : > { %896 = vmatmul.mubr.f32.gmra.mrb[72].mxu0 %v291_v47 }
 0x13f   : > { %1255 = vmatmul.mubr.f32.gmra.mrb[72].mxu1 %v291_v47  ;;  %901 = vmatprep.mubr.f32.mxu0 %v294_v48  ;;  %v309_v47 = vld [vmem:[%s3319_s30 + $0x2d0] sm:$0xff] }
 0x140   : > { %1260 = vmatprep.mubr.f32.mxu1 %v294_v48  ;;  %v312_v48 = vld [vmem:[%s3319_s30 + $0x2e8] sm:$0xff] }
 0x142   : > { %902 = vmatmul.mubr.f32.gmra.mrb[74].mxu0 %v293_v54 }
 0x143   : > { %1261 = vmatmul.mubr.f32.gmra.mrb[74].mxu1 %v293_v54  ;;  %907 = vmatprep.mubr.f32.mxu0 %v296_v56  ;;  %v311_v54 = vld [vmem:[%s3319_s30 + $0x2e0] sm:$0xff] }
 0x144   : > { %1266 = vmatprep.mubr.f32.mxu1 %v296_v56  ;;  %v314_v56 = vld [vmem:[%s3319_s30 + $0x2f8] sm:$0xff] }
 0x146   : > { %908 = vmatmul.mubr.f32.gmra.mrb[76].mxu0 %v295_v59 }
 0x147   : > { %1267 = vmatmul.mubr.f32.gmra.mrb[76].mxu1 %v295_v59  ;;  %913 = vmatprep.mubr.f32.mxu0 %v298_v60  ;;  %v313_v59 = vld [vmem:[%s3319_s30 + $0x2f0] sm:$0xff] }
 0x148   : > { %1272 = vmatprep.mubr.f32.mxu1 %v298_v60  ;;  %v316_v60 = vld [vmem:[%s3319_s30 + $0x308] sm:$0xff] }
 0x14a   : > { %914 = vmatmul.mubr.f32.gmra.mrb[78].mxu0 %v297_v61 }
 0x14b   : > { %1273 = vmatmul.mubr.f32.gmra.mrb[78].mxu1 %v297_v61  ;;  %919 = vmatprep.mubr.f32.mxu0 %v300_v62  ;;  %v315_v61 = vld [vmem:[%s3319_s30 + $0x300] sm:$0xff] }
 0x14c   : > { %1278 = vmatprep.mubr.f32.mxu1 %v300_v62  ;;  %v2902_v62 = vld [vmem:[%s3319_s30 + $0x8] sm:$0xff] }
 0x14e   : > { %920 = vmatmul.mubr.f32.gmra.mrb[80].mxu0 %v299_v63 }
 0x14f   : > { %1279 = vmatmul.mubr.f32.gmra.mrb[80].mxu1 %v299_v63  ;;  %925 = vmatprep.mubr.f32.mxu0 %v302_v0  ;;  %v2903_v63 = vld [vmem:[%s3319_s30] sm:$0xff] }
 0x150   : > { %1284 = vmatprep.mubr.f32.mxu1 %v302_v0  ;;  %v575_v0 = vlaneseq }
 0x152   : > { %926 = vmatmul.mubr.f32.gmra.mrb[82].mxu0 %v301_v2 }
 0x153   : > { %1285 = vmatmul.mubr.f32.gmra.mrb[82].mxu1 %v301_v2  ;;  %931 = vmatprep.mubr.f32.mxu0 %v304_v3  ;;  %v2904_v2 = vld [vmem:[%s3319_s30 + $0x18] sm:$0xff] }
 0x154   : > { %1290 = vmatprep.mubr.f32.mxu1 %v304_v3  ;;  %v2905_v3 = vld [vmem:[%s3319_s30 + $0x10] sm:$0xff] }
 0x156   : > { %932 = vmatmul.mubr.f32.gmra.mrb[84].mxu0 %v303_v6 }
 0x157   : > { %1291 = vmatmul.mubr.f32.gmra.mrb[84].mxu1 %v303_v6  ;;  %937 = vmatprep.mubr.f32.mxu0 %v306_v7  ;;  %v3615_v6 = vshrl.u32 %v575_v0, 7 }
 0x158   : > { %1296 = vmatprep.mubr.f32.mxu1 %v306_v7  ;;  %v2906_v7 = vld [vmem:[%s3319_s30 + $0x28] sm:$0xff] }
 0x15a   : > { %938 = vmatmul.mubr.f32.gmra.mrb[86].mxu0 %v305_v39 }
 0x15b   : > { %1297 = vmatmul.mubr.f32.gmra.mrb[86].mxu1 %v305_v39  ;;  %943 = vmatprep.mubr.f32.mxu0 %v308_v40  ;;  %v577_v39 = vsub.s32 0, %v3615_v6 }
 0x15c   : > { %1302 = vmatprep.mubr.f32.mxu1 %v308_v40  ;;  %v573_v40 = vld [vmem:[#allocation7] sm:$0xff] }
 0x15e   : > { %944 = vmatmul.mubr.f32.gmra.mrb[88].mxu0 %v307_v42 }
 0x15f   : > { %1303 = vmatmul.mubr.f32.gmra.mrb[88].mxu1 %v307_v42  ;;  %949 = vmatprep.mubr.f32.mxu0 %v310_v43  ;;  %v585_v42 = vsub.s32 2, %v3615_v6 }
 0x160   : > { %1308 = vmatprep.mubr.f32.mxu1 %v310_v43  ;;  %v581_v43 = vsub.s32 1, %v3615_v6 }
 0x162   : > { %950 = vmatmul.mubr.f32.gmra.mrb[90].mxu0 %v309_v47 }
 0x163   : > { %1309 = vmatmul.mubr.f32.gmra.mrb[90].mxu1 %v309_v47  ;;  %955 = vmatprep.mubr.f32.mxu0 %v312_v48  ;;  %v589_v47 = vsub.s32 3, %v3615_v6 }
 0x164   : > { %1314 = vmatprep.mubr.f32.mxu1 %v312_v48  ;;  %v3628_v48 = vrot.slane %v573_v40, %v577_v39 }
 0x166   : > { %956 = vmatmul.mubr.f32.gmra.mrb[92].mxu0 %v311_v54 }
 0x167   : > { %1315 = vmatmul.mubr.f32.gmra.mrb[92].mxu1 %v311_v54  ;;  %961 = vmatprep.mubr.f32.mxu0 %v314_v56  ;;  %v3631_v54 = vrot.slane %v573_v40, %v585_v42 }
 0x168   : > { %1320 = vmatprep.mubr.f32.mxu1 %v314_v56  ;;  %v3637_v56 = vrot.slane %v573_v40, %v589_v47 }
 0x16a   : > { %962 = vmatmul.mubr.f32.gmra.mrb[94].mxu0 %v313_v59 }
 0x16b   : > { %1321 = vmatmul.mubr.f32.gmra.mrb[94].mxu1 %v313_v59  ;;  %967 = vmatprep.mubr.f32.mxu0 %v316_v60 }
 0x16c   : > { %1326 = vmatprep.mubr.f32.mxu1 %v316_v60 }
 0x16e   : > { %968 = vmatmul.mubr.f32.gmra.mrb[96].mxu0 %v315_v61 }
 0x16f   : > { %1327 = vmatmul.mubr.f32.gmra.mrb[96].mxu1 %v315_v61  ;;  %1397 = vmatprep.mubr.f32.mxu0 %v2902_v62 }
 0x170   : > { %1756 = vmatprep.mubr.f32.mxu1 %v2902_v62 }
 0x172   : > { %1398 = vmatmul.mubr.f32.vlgmr.msra.gmra.mrb[98].mxu0 %v2903_v63 }
 0x173   : > { %1757 = vmatmul.mubr.f32.vlgmr.msra.gmra.mrb[98].mxu1 %v2903_v63  ;;  %1403 = vmatprep.mubr.f32.mxu0 %v2904_v2 }
 0x174   : > { %1762 = vmatprep.mubr.f32.mxu1 %v2904_v2 }
 0x176   : > { %1404 = vmatmul.mubr.f32.gmra.mrb[100].mxu0 %v2905_v3 }
 0x177   : > { %1763 = vmatmul.mubr.f32.gmra.mrb[100].mxu1 %v2905_v3  ;;  %1409 = vmatprep.mubr.f32.mxu0 %v2906_v7 }
 0x178   : > { %1768 = vmatprep.mubr.f32.mxu1 %v2906_v7 }
 0x17a   : > { %1410 = vmatmul.mubr.f32.gmra.mrb[102].mxu0 %v3335_v41 }
 0x17b   : > { %1769 = vmatmul.mubr.f32.gmra.mrb[102].mxu1 %v3335_v41  ;;  %1415 = vmatprep.mubr.f32.mxu0 %v3338_v44  ;;  %v3634_v41 = vrot.slane %v573_v40, %v581_v43 }
 0x17c   : > { %1774 = vmatprep.mubr.f32.mxu1 %v3338_v44 }
 0x17e   : > { %1416 = vmatmul.mubr.f32.gmra.mrb[104].mxu0 %v3344_v55 }
 0x17f   : > { %1775 = vmatmul.mubr.f32.gmra.mrb[104].mxu1 %v3344_v55  ;;  %1421 = vmatprep.mubr.f32.mxu0 %v3348_v58 }
 0x180   : > { %1780 = vmatprep.mubr.f32.mxu1 %v3348_v58 }
 0x181   : > { %v681_v44 = vpop.f32.mrb[0].mxu0 }
 0x182   : > { %v682_v59 = vadd.f32 %v681_v44, %v3628_v48  ;;  %v1040_v60 = vpop.f32.mrb[0].mxu1  ;;  %v683_v61 = vpop.f32.mrb[1].mxu0  ;;  %1422 = vmatmul.mubr.f32.gmra.mrb[106].mxu0 %v3354_v5 }
 0x183   : > { %v1041_v62 = vadd.f32 %v1040_v60, %v3631_v54  ;;  %v684_v55 = vadd.f32 %v683_v61, %v3634_v41  ;;  %v1042_v63 = vpop.f32.mrb[1].mxu1  ;;  %1781 = vmatmul.mubr.f32.gmra.mrb[106].mxu1 %v3354_v5  ;;  %1427 = vmatprep.mubr.f32.mxu0 %v3358_v8 }
 0x184   : > { %2051 = vst [vmem:[%s3645_s20] sm:$0xff] %v682_v59  ;;  %v1043_v58 = vadd.f32 %v1042_v63, %v3637_v56  ;;  %1786 = vmatprep.mubr.f32.mxu1 %v3358_v8 }
 0x185   : > { %2053 = vst [vmem:[%s3645_s20 + $0x10] sm:$0xff] %v1041_v62  ;;  %2052 = vst [vmem:[%s3645_s20 + $0x8] sm:$0xff] %v684_v55  ;;  %v687_v0 = vpop.f32.mrb[2].mxu0 }
 0x186   : > { %2054 = vst [vmem:[%s3645_s20 + $0x18] sm:$0xff] %v1043_v58  ;;  %v688_v5 = vadd.f32 %v687_v0, %v3628_v48  ;;  %v1046_v2 = vpop.f32.mrb[2].mxu1  ;;  %v689_v3 = vpop.f32.mrb[3].mxu0  ;;  %1428 = vmatmul.mubr.f32.gmra.mrb[108].mxu0 %v3364_v19 }
 0x187   : > { %v1047_v7 = vadd.f32 %v1046_v2, %v3631_v54  ;;  %v690_v39 = vadd.f32 %v689_v3, %v3634_v41  ;;  %v1048_v40 = vpop.f32.mrb[3].mxu1  ;;  %1787 = vmatmul.mubr.f32.gmra.mrb[108].mxu1 %v3364_v19  ;;  %1433 = vmatprep.mubr.f32.mxu0 %v3368_v22 }
 0x188   : > { %2059 = vst [vmem:[%s3645_s20 + $0x40] sm:$0xff] %v688_v5  ;;  %v1049_v8 = vadd.f32 %v1048_v40, %v3637_v56  ;;  %1792 = vmatprep.mubr.f32.mxu1 %v3368_v22 }
 0x189   : > { %2061 = vst [vmem:[%s3645_s20 + $0x50] sm:$0xff] %v1047_v7  ;;  %2060 = vst [vmem:[%s3645_s20 + $0x48] sm:$0xff] %v690_v39  ;;  %v693_v42 = vpop.f32.mrb[4].mxu0 }
 0x18a   : > { %2062 = vst [vmem:[%s3645_s20 + $0x58] sm:$0xff] %v1049_v8  ;;  %v694_v43 = vadd.f32 %v693_v42, %v3628_v48  ;;  %v1052_v47 = vpop.f32.mrb[4].mxu1  ;;  %v695_v44 = vpop.f32.mrb[5].mxu0  ;;  %1434 = vmatmul.mubr.f32.gmra.mrb[110].mxu0 %v3374_v33 }
 0x18b   : > { %v1053_v19 = vadd.f32 %v1052_v47, %v3631_v54  ;;  %v696_v59 = vadd.f32 %v695_v44, %v3634_v41  ;;  %v1054_v60 = vpop.f32.mrb[5].mxu1  ;;  %1793 = vmatmul.mubr.f32.gmra.mrb[110].mxu1 %v3374_v33  ;;  %1439 = vmatprep.mubr.f32.mxu0 %v3378_v36 }
 0x18c   : > { %2067 = vst [vmem:[%s3645_s20 + $0x80] sm:$0xff] %v694_v43  ;;  %v1055_v22 = vadd.f32 %v1054_v60, %v3637_v56  ;;  %1798 = vmatprep.mubr.f32.mxu1 %v3378_v36 }
 0x18d   : > { %2069 = vst [vmem:[%s3645_s20 + $0x90] sm:$0xff] %v1053_v19  ;;  %2068 = vst [vmem:[%s3645_s20 + $0x88] sm:$0xff] %v696_v59  ;;  %v699_v61 = vpop.f32.mrb[6].mxu0 }
 0x18e   : > { %2070 = vst [vmem:[%s3645_s20 + $0x98] sm:$0xff] %v1055_v22  ;;  %v700_v62 = vadd.f32 %v699_v61, %v3628_v48  ;;  %v1058_v55 = vpop.f32.mrb[6].mxu1  ;;  %v701_v63 = vpop.f32.mrb[7].mxu0  ;;  %1440 = vmatmul.mubr.f32.gmra.mrb[112].mxu0 %v3384_v49 }
 0x18f   : > { %v1059_v33 = vadd.f32 %v1058_v55, %v3631_v54  ;;  %v702_v58 = vadd.f32 %v701_v63, %v3634_v41  ;;  %v1060_v0 = vpop.f32.mrb[7].mxu1  ;;  %1799 = vmatmul.mubr.f32.gmra.mrb[112].mxu1 %v3384_v49  ;;  %1445 = vmatprep.mubr.f32.mxu0 %v3388_v52 }
 0x190   : > { %2075 = vst [vmem:[%s3645_s20 + $0xc0] sm:$0xff] %v700_v62  ;;  %v1061_v36 = vadd.f32 %v1060_v0, %v3637_v56  ;;  %1804 = vmatprep.mubr.f32.mxu1 %v3388_v52 }
 0x191   : > { %2077 = vst [vmem:[%s3645_s20 + $0xd0] sm:$0xff] %v1059_v33  ;;  %2076 = vst [vmem:[%s3645_s20 + $0xc8] sm:$0xff] %v702_v58  ;;  %v705_v5 = vpop.f32.mrb[8].mxu0 }
 0x192   : > { %2078 = vst [vmem:[%s3645_s20 + $0xd8] sm:$0xff] %v1061_v36  ;;  %v706_v2 = vadd.f32 %v705_v5, %v3628_v48  ;;  %v1064_v3 = vpop.f32.mrb[8].mxu1  ;;  %v707_v7 = vpop.f32.mrb[9].mxu0  ;;  %1446 = vmatmul.mubr.f32.gmra.mrb[114].mxu0 %v3394_v1 }
 0x193   : > { %v1065_v49 = vadd.f32 %v1064_v3, %v3631_v54  ;;  %v708_v39 = vadd.f32 %v707_v7, %v3634_v41  ;;  %v1066_v40 = vpop.f32.mrb[9].mxu1  ;;  %1805 = vmatmul.mubr.f32.gmra.mrb[114].mxu1 %v3394_v1  ;;  %1451 = vmatprep.mubr.f32.mxu0 %v3398_v4 }
 0x194   : > { %2083 = vst [vmem:[%s3645_s20 + $0x100] sm:$0xff] %v706_v2  ;;  %v1067_v52 = vadd.f32 %v1066_v40, %v3637_v56  ;;  %1810 = vmatprep.mubr.f32.mxu1 %v3398_v4 }
 0x195   : > { %2085 = vst [vmem:[%s3645_s20 + $0x110] sm:$0xff] %v1065_v49  ;;  %2084 = vst [vmem:[%s3645_s20 + $0x108] sm:$0xff] %v708_v39  ;;  %v711_v8 = vpop.f32.mrb[10].mxu0 }
 0x196   : > { %2086 = vst [vmem:[%s3645_s20 + $0x118] sm:$0xff] %v1067_v52  ;;  %v712_v42 = vadd.f32 %v711_v8, %v3628_v48  ;;  %v1070_v43 = vpop.f32.mrb[10].mxu1  ;;  %v713_v47 = vpop.f32.mrb[11].mxu0  ;;  %1452 = vmatmul.mubr.f32.gmra.mrb[116].mxu0 %v3404_v17 }
 0x197   : > { %v1071_v1 = vadd.f32 %v1070_v43, %v3631_v54  ;;  %v714_v44 = vadd.f32 %v713_v47, %v3634_v41  ;;  %v1072_v19 = vpop.f32.mrb[11].mxu1  ;;  %1811 = vmatmul.mubr.f32.gmra.mrb[116].mxu1 %v3404_v17  ;;  %1457 = vmatprep.mubr.f32.mxu0 %v3408_v21 }
 0x198   : > { %2091 = vst [vmem:[%s3645_s20 + $0x140] sm:$0xff] %v712_v42  ;;  %v1073_v4 = vadd.f32 %v1072_v19, %v3637_v56  ;;  %1816 = vmatprep.mubr.f32.mxu1 %v3408_v21 }
 0x199   : > { %2093 = vst [vmem:[%s3645_s20 + $0x150] sm:$0xff] %v1071_v1  ;;  %2092 = vst [vmem:[%s3645_s20 + $0x148] sm:$0xff] %v714_v44  ;;  %v717_v59 = vpop.f32.mrb[12].mxu0 }
 0x19a   : > { %2094 = vst [vmem:[%s3645_s20 + $0x158] sm:$0xff] %v1073_v4  ;;  %v718_v60 = vadd.f32 %v717_v59, %v3628_v48  ;;  %v1076_v22 = vpop.f32.mrb[12].mxu1  ;;  %v719_v61 = vpop.f32.mrb[13].mxu0  ;;  %1458 = vmatmul.mubr.f32.gmra.mrb[118].mxu0 %v3414_v34 }
 0x19b   : > { %v1077_v17 = vadd.f32 %v1076_v22, %v3631_v54  ;;  %v720_v62 = vadd.f32 %v719_v61, %v3634_v41  ;;  %v1078_v55 = vpop.f32.mrb[13].mxu1  ;;  %1817 = vmatmul.mubr.f32.gmra.mrb[118].mxu1 %v3414_v34  ;;  %1463 = vmatprep.mubr.f32.mxu0 %v3418_v38 }
 0x19c   : > { %2099 = vst [vmem:[%s3645_s20 + $0x180] sm:$0xff] %v718_v60  ;;  %v1079_v21 = vadd.f32 %v1078_v55, %v3637_v56  ;;  %1822 = vmatprep.mubr.f32.mxu1 %v3418_v38 }
 0x19d   : > { %2101 = vst [vmem:[%s3645_s20 + $0x190] sm:$0xff] %v1077_v17  ;;  %2100 = vst [vmem:[%s3645_s20 + $0x188] sm:$0xff] %v720_v62  ;;  %v723_v63 = vpop.f32.mrb[14].mxu0 }
 0x19e   : > { %2102 = vst [vmem:[%s3645_s20 + $0x198] sm:$0xff] %v1079_v21  ;;  %v724_v33 = vadd.f32 %v723_v63, %v3628_v48  ;;  %v1082_v58 = vpop.f32.mrb[14].mxu1  ;;  %v725_v0 = vpop.f32.mrb[15].mxu0  ;;  %1464 = vmatmul.mubr.f32.gmra.mrb[120].mxu0 %v3424_v53 }
 0x19f   : > { %v1083_v34 = vadd.f32 %v1082_v58, %v3631_v54  ;;  %v726_v36 = vadd.f32 %v725_v0, %v3634_v41  ;;  %v1084_v5 = vpop.f32.mrb[15].mxu1  ;;  %1823 = vmatmul.mubr.f32.gmra.mrb[120].mxu1 %v3424_v53  ;;  %1469 = vmatprep.mubr.f32.mxu0 %v3428_v57 }
 0x1a0   : > { %2107 = vst [vmem:[%s3645_s20 + $0x1c0] sm:$0xff] %v724_v33  ;;  %v1085_v38 = vadd.f32 %v1084_v5, %v3637_v56  ;;  %1828 = vmatprep.mubr.f32.mxu1 %v3428_v57 }
 0x1a1   : > { %2109 = vst [vmem:[%s3645_s20 + $0x1d0] sm:$0xff] %v1083_v34  ;;  %2108 = vst [vmem:[%s3645_s20 + $0x1c8] sm:$0xff] %v726_v36  ;;  %v729_v2 = vpop.f32.mrb[16].mxu0 }
 0x1a2   : > { %2110 = vst [vmem:[%s3645_s20 + $0x1d8] sm:$0xff] %v1085_v38  ;;  %v730_v3 = vadd.f32 %v729_v2, %v3628_v48  ;;  %v1088_v7 = vpop.f32.mrb[16].mxu1  ;;  %v731_v49 = vpop.f32.mrb[17].mxu0  ;;  %1470 = vmatmul.mubr.f32.gmra.mrb[122].mxu0 %v3434_v9 }
 0x1a3   : > { %v1089_v53 = vadd.f32 %v1088_v7, %v3631_v54  ;;  %v732_v39 = vadd.f32 %v731_v49, %v3634_v41  ;;  %v1090_v40 = vpop.f32.mrb[17].mxu1  ;;  %1829 = vmatmul.mubr.f32.gmra.mrb[122].mxu1 %v3434_v9  ;;  %1475 = vmatprep.mubr.f32.mxu0 %v3438_v12 }
 0x1a4   : > { %2115 = vst [vmem:[%s3645_s20 + $0x200] sm:$0xff] %v730_v3  ;;  %v1091_v57 = vadd.f32 %v1090_v40, %v3637_v56  ;;  %1834 = vmatprep.mubr.f32.mxu1 %v3438_v12 }
 0x1a5   : > { %2117 = vst [vmem:[%s3645_s20 + $0x210] sm:$0xff] %v1089_v53  ;;  %2116 = vst [vmem:[%s3645_s20 + $0x208] sm:$0xff] %v732_v39  ;;  %v735_v52 = vpop.f32.mrb[18].mxu0 }
 0x1a6   : > { %2118 = vst [vmem:[%s3645_s20 + $0x218] sm:$0xff] %v1091_v57  ;;  %v736_v8 = vadd.f32 %v735_v52, %v3628_v48  ;;  %v1094_v42 = vpop.f32.mrb[18].mxu1  ;;  %v737_v43 = vpop.f32.mrb[19].mxu0  ;;  %1476 = vmatmul.mubr.f32.gmra.mrb[124].mxu0 %v3444_v27 }
 0x1a7   : > { %v1095_v9 = vadd.f32 %v1094_v42, %v3631_v54  ;;  %v738_v47 = vadd.f32 %v737_v43, %v3634_v41  ;;  %v1096_v1 = vpop.f32.mrb[19].mxu1  ;;  %1835 = vmatmul.mubr.f32.gmra.mrb[124].mxu1 %v3444_v27  ;;  %1481 = vmatprep.mubr.f32.mxu0 %v3448_v30 }
 0x1a8   : > { %2123 = vst [vmem:[%s3645_s20 + $0x240] sm:$0xff] %v736_v8  ;;  %v1097_v12 = vadd.f32 %v1096_v1, %v3637_v56  ;;  %1840 = vmatprep.mubr.f32.mxu1 %v3448_v30 }
 0x1a9   : > { %2125 = vst [vmem:[%s3645_s20 + $0x250] sm:$0xff] %v1095_v9  ;;  %2124 = vst [vmem:[%s3645_s20 + $0x248] sm:$0xff] %v738_v47  ;;  %v741_v44 = vpop.f32.mrb[20].mxu0 }
 0x1aa   : > { %2126 = vst [vmem:[%s3645_s20 + $0x258] sm:$0xff] %v1097_v12  ;;  %v742_v19 = vadd.f32 %v741_v44, %v3628_v48  ;;  %v1100_v4 = vpop.f32.mrb[20].mxu1  ;;  %v743_v59 = vpop.f32.mrb[21].mxu0  ;;  %1482 = vmatmul.mubr.f32.gmra.mrb[126].mxu0 %v3454_v45 }
 0x1ab   : > { %v1101_v27 = vadd.f32 %v1100_v4, %v3631_v54  ;;  %v744_v60 = vadd.f32 %v743_v59, %v3634_v41  ;;  %v1102_v22 = vpop.f32.mrb[21].mxu1  ;;  %1841 = vmatmul.mubr.f32.gmra.mrb[126].mxu1 %v3454_v45  ;;  %1487 = vmatprep.mubr.f32.mxu0 %v3458_v46 }
 0x1ac   : > { %2131 = vst [vmem:[%s3645_s20 + $0x280] sm:$0xff] %v742_v19  ;;  %v1103_v30 = vadd.f32 %v1102_v22, %v3637_v56  ;;  %1846 = vmatprep.mubr.f32.mxu1 %v3458_v46 }
 0x1ad   : > { %2133 = vst [vmem:[%s3645_s20 + $0x290] sm:$0xff] %v1101_v27  ;;  %2132 = vst [vmem:[%s3645_s20 + $0x288] sm:$0xff] %v744_v60  ;;  %v747_v61 = vpop.f32.mrb[22].mxu0 }
 0x1ae   : > { %2134 = vst [vmem:[%s3645_s20 + $0x298] sm:$0xff] %v1103_v30  ;;  %v748_v17 = vadd.f32 %v747_v61, %v3628_v48  ;;  %v1106_v62 = vpop.f32.mrb[22].mxu1  ;;  %v749_v55 = vpop.f32.mrb[23].mxu0  ;;  %1488 = vmatmul.mubr.f32.gmra.mrb[128].mxu0 %v3462_v50 }
 0x1af   : > { %v1107_v45 = vadd.f32 %v1106_v62, %v3631_v54  ;;  %v750_v21 = vadd.f32 %v749_v55, %v3634_v41  ;;  %v1108_v63 = vpop.f32.mrb[23].mxu1  ;;  %1847 = vmatmul.mubr.f32.gmra.mrb[128].mxu1 %v3462_v50  ;;  %1493 = vmatprep.mubr.f32.mxu0 %v3465_v51 }
 0x1b0   : > { %2139 = vst [vmem:[%s3645_s20 + $0x2c0] sm:$0xff] %v748_v17  ;;  %v1109_v46 = vadd.f32 %v1108_v63, %v3637_v56  ;;  %1852 = vmatprep.mubr.f32.mxu1 %v3465_v51 }
 0x1b1   : > { %2141 = vst [vmem:[%s3645_s20 + $0x2d0] sm:$0xff] %v1107_v45  ;;  %2140 = vst [vmem:[%s3645_s20 + $0x2c8] sm:$0xff] %v750_v21  ;;  %v753_v33 = vpop.f32.mrb[24].mxu0 }
 0x1b2   : > { %2142 = vst [vmem:[%s3645_s20 + $0x2d8] sm:$0xff] %v1109_v46  ;;  %v754_v58 = vadd.f32 %v753_v33, %v3628_v48  ;;  %v1112_v0 = vpop.f32.mrb[24].mxu1  ;;  %v755_v34 = vpop.f32.mrb[25].mxu0  ;;  %1494 = vmatmul.mubr.f32.gmra.mrb[130].mxu0 %v3474_v10 }
 0x1b3   : > { %v1113_v50 = vadd.f32 %v1112_v0, %v3631_v54  ;;  %v756_v36 = vadd.f32 %v755_v34, %v3634_v41  ;;  %v1114_v5 = vpop.f32.mrb[25].mxu1  ;;  %1853 = vmatmul.mubr.f32.gmra.mrb[130].mxu1 %v3474_v10  ;;  %1499 = vmatprep.mubr.f32.mxu0 %v3478_v11 }
 0x1b4   : > { %2147 = vst [vmem:[%s3645_s20 + $0x300] sm:$0xff] %v754_v58  ;;  %v1115_v51 = vadd.f32 %v1114_v5, %v3637_v56  ;;  %1858 = vmatprep.mubr.f32.mxu1 %v3478_v11 }
 0x1b5   : > { %2149 = vst [vmem:[%s3645_s20 + $0x310] sm:$0xff] %v1113_v50  ;;  %2148 = vst [vmem:[%s3645_s20 + $0x308] sm:$0xff] %v756_v36  ;;  %v759_v38 = vpop.f32.mrb[26].mxu0 }
 0x1b6   : > { %2150 = vst [vmem:[%s3645_s20 + $0x318] sm:$0xff] %v1115_v51  ;;  %v760_v2 = vadd.f32 %v759_v38, %v3628_v48  ;;  %v1118_v3 = vpop.f32.mrb[26].mxu1  ;;  %v761_v7 = vpop.f32.mrb[27].mxu0  ;;  %1500 = vmatmul.mubr.f32.gmra.mrb[132].mxu0 %v3484_v13 }
 0x1b7   : > { %v1119_v10 = vadd.f32 %v1118_v3, %v3631_v54  ;;  %v762_v49 = vadd.f32 %v761_v7, %v3634_v41  ;;  %v1120_v53 = vpop.f32.mrb[27].mxu1  ;;  %1859 = vmatmul.mubr.f32.gmra.mrb[132].mxu1 %v3484_v13  ;;  %1505 = vmatprep.mubr.f32.mxu0 %v3488_v14 }
 0x1b8   : > { %2155 = vst [vmem:[%s3645_s20 + $0x340] sm:$0xff] %v760_v2  ;;  %v1121_v11 = vadd.f32 %v1120_v53, %v3637_v56  ;;  %1864 = vmatprep.mubr.f32.mxu1 %v3488_v14 }
 0x1b9   : > { %2157 = vst [vmem:[%s3645_s20 + $0x350] sm:$0xff] %v1119_v10  ;;  %2156 = vst [vmem:[%s3645_s20 + $0x348] sm:$0xff] %v762_v49  ;;  %v765_v39 = vpop.f32.mrb[28].mxu0 }
 0x1ba   : > { %2158 = vst [vmem:[%s3645_s20 + $0x358] sm:$0xff] %v1121_v11  ;;  %v766_v40 = vadd.f32 %v765_v39, %v3628_v48  ;;  %v1124_v57 = vpop.f32.mrb[28].mxu1  ;;  %v767_v52 = vpop.f32.mrb[29].mxu0  ;;  %1506 = vmatmul.mubr.f32.gmra.mrb[134].mxu0 %v3494_v15 }
 0x1bb   : > { %v1125_v13 = vadd.f32 %v1124_v57, %v3631_v54  ;;  %v768_v8 = vadd.f32 %v767_v52, %v3634_v41  ;;  %v1126_v42 = vpop.f32.mrb[29].mxu1  ;;  %1865 = vmatmul.mubr.f32.gmra.mrb[134].mxu1 %v3494_v15  ;;  %1511 = vmatprep.mubr.f32.mxu0 %v3498_v16  ;;  %v2907_v57 = vld [vmem:[%s3319_s30 + $0x190] sm:$0xff] }
 0x1bc   : > { %2163 = vst [vmem:[%s3645_s20 + $0x380] sm:$0xff] %v766_v40  ;;  %v1127_v14 = vadd.f32 %v1126_v42, %v3637_v56  ;;  %1870 = vmatprep.mubr.f32.mxu1 %v3498_v16 }
 0x1bd   : > { %2165 = vst [vmem:[%s3645_s20 + $0x390] sm:$0xff] %v1125_v13  ;;  %2164 = vst [vmem:[%s3645_s20 + $0x388] sm:$0xff] %v768_v8  ;;  %v771_v43 = vpop.f32.mrb[30].mxu0  ;;  %v2908_v8 = vld [vmem:[%s3319_s30 + $0x1a8] sm:$0xff] }
 0x1be   : > { %2166 = vst [vmem:[%s3645_s20 + $0x398] sm:$0xff] %v1127_v14  ;;  %v772_v9 = vadd.f32 %v771_v43, %v3628_v48  ;;  %v1130_v47 = vpop.f32.mrb[30].mxu1  ;;  %v773_v1 = vpop.f32.mrb[31].mxu0  ;;  %1512 = vmatmul.mubr.f32.gmra.mrb[136].mxu0 %v3504_v18 }
 0x1bf   : > { %v1131_v15 = vadd.f32 %v1130_v47, %v3631_v54  ;;  %v774_v12 = vadd.f32 %v773_v1, %v3634_v41  ;;  %v1132_v44 = vpop.f32.mrb[31].mxu1  ;;  %1871 = vmatmul.mubr.f32.gmra.mrb[136].mxu1 %v3504_v18  ;;  %1517 = vmatprep.mubr.f32.mxu0 %v3508_v20  ;;  %v2909_v1 = vld [vmem:[%s3319_s30 + $0x1a0] sm:$0xff] }
 0x1c0   : > { %2171 = vst [vmem:[%s3645_s20 + $0x3c0] sm:$0xff] %v772_v9  ;;  %v1133_v16 = vadd.f32 %v1132_v44, %v3637_v56  ;;  %1876 = vmatprep.mubr.f32.mxu1 %v3508_v20 }
 0x1c1   : > { %2173 = vst [vmem:[%s3645_s20 + $0x3d0] sm:$0xff] %v1131_v15  ;;  %2172 = vst [vmem:[%s3645_s20 + $0x3c8] sm:$0xff] %v774_v12  ;;  %v777_v19 = vpop.f32.mrb[32].mxu0 }
 0x1c2   : > { %2174 = vst [vmem:[%s3645_s20 + $0x3d8] sm:$0xff] %v1133_v16  ;;  %v778_v4 = vadd.f32 %v777_v19, %v3628_v48  ;;  %v1136_v59 = vpop.f32.mrb[32].mxu1  ;;  %v779_v27 = vpop.f32.mrb[33].mxu0  ;;  %1518 = vmatmul.mubr.f32.gmra.mrb[138].mxu0 %v3514_v23  ;;  %v2910_v16 = vld [vmem:[%s3319_s30 + $0x1b8] sm:$0xff] }
 0x1c3   : > { %v1137_v18 = vadd.f32 %v1136_v59, %v3631_v54  ;;  %v780_v60 = vadd.f32 %v779_v27, %v3634_v41  ;;  %v1138_v22 = vpop.f32.mrb[33].mxu1  ;;  %1877 = vmatmul.mubr.f32.gmra.mrb[138].mxu1 %v3514_v23  ;;  %1523 = vmatprep.mubr.f32.mxu0 %v3518_v24 }
 0x1c4   : > { %2179 = vst [vmem:[%s3645_s20 + $0x400] sm:$0xff] %v778_v4  ;;  %v1139_v20 = vadd.f32 %v1138_v22, %v3637_v56  ;;  %1882 = vmatprep.mubr.f32.mxu1 %v3518_v24 }
 0x1c5   : > { %2181 = vst [vmem:[%s3645_s20 + $0x410] sm:$0xff] %v1137_v18  ;;  %2180 = vst [vmem:[%s3645_s20 + $0x408] sm:$0xff] %v780_v60  ;;  %v783_v30 = vpop.f32.mrb[34].mxu0  ;;  %v2911_v60 = vld [vmem:[%s3319_s30 + $0x1b0] sm:$0xff] }
 0x1c6   : > { %2182 = vst [vmem:[%s3645_s20 + $0x418] sm:$0xff] %v1139_v20  ;;  %v784_v61 = vadd.f32 %v783_v30, %v3628_v48  ;;  %v1142_v17 = vpop.f32.mrb[34].mxu1  ;;  %v785_v62 = vpop.f32.mrb[35].mxu0  ;;  %1524 = vmatmul.mubr.f32.gmra.mrb[140].mxu0 %v3524_v25 }
 0x1c7   : > { %v1143_v23 = vadd.f32 %v1142_v17, %v3631_v54  ;;  %v786_v55 = vadd.f32 %v785_v62, %v3634_v41  ;;  %v1144_v45 = vpop.f32.mrb[35].mxu1  ;;  %1883 = vmatmul.mubr.f32.gmra.mrb[140].mxu1 %v3524_v25  ;;  %1529 = vmatprep.mubr.f32.mxu0 %v3528_v26 }
 0x1c8   : > { %2187 = vst [vmem:[%s3645_s20 + $0x440] sm:$0xff] %v784_v61  ;;  %v1145_v24 = vadd.f32 %v1144_v45, %v3637_v56  ;;  %1888 = vmatprep.mubr.f32.mxu1 %v3528_v26  ;;  %v2912_v61 = vld [vmem:[%s3319_s30 + $0x1c8] sm:$0xff] }
 0x1c9   : > { %2189 = vst [vmem:[%s3645_s20 + $0x450] sm:$0xff] %v1143_v23  ;;  %2188 = vst [vmem:[%s3645_s20 + $0x448] sm:$0xff] %v786_v55  ;;  %v789_v21 = vpop.f32.mrb[36].mxu0 }
 0x1ca   : > { %2190 = vst [vmem:[%s3645_s20 + $0x458] sm:$0xff] %v1145_v24  ;;  %v790_v63 = vadd.f32 %v789_v21, %v3628_v48  ;;  %v1148_v46 = vpop.f32.mrb[36].mxu1  ;;  %v791_v33 = vpop.f32.mrb[37].mxu0  ;;  %1530 = vmatmul.mubr.f32.gmra.mrb[142].mxu0 %v3534_v28  ;;  %v2913_v24 = vld [vmem:[%s3319_s30 + $0x1c0] sm:$0xff] }
 0x1cb   : > { %v1149_v25 = vadd.f32 %v1148_v46, %v3631_v54  ;;  %v792_v58 = vadd.f32 %v791_v33, %v3634_v41  ;;  %v1150_v0 = vpop.f32.mrb[37].mxu1  ;;  %1889 = vmatmul.mubr.f32.gmra.mrb[142].mxu1 %v3534_v28  ;;  %1535 = vmatprep.mubr.f32.mxu0 %v3538_v29  ;;  %v2914_v33 = vld [vmem:[%s3319_s30 + $0x1d8] sm:$0xff] }
 0x1cc   : > { %2195 = vst [vmem:[%s3645_s20 + $0x480] sm:$0xff] %v790_v63  ;;  %v1151_v26 = vadd.f32 %v1150_v0, %v3637_v56  ;;  %1894 = vmatprep.mubr.f32.mxu1 %v3538_v29 }
 0x1cd   : > { %2197 = vst [vmem:[%s3645_s20 + $0x490] sm:$0xff] %v1149_v25  ;;  %2196 = vst [vmem:[%s3645_s20 + $0x488] sm:$0xff] %v792_v58  ;;  %v795_v34 = vpop.f32.mrb[38].mxu0 }
 0x1ce   : > { %2198 = vst [vmem:[%s3645_s20 + $0x498] sm:$0xff] %v1151_v26  ;;  %v796_v50 = vadd.f32 %v795_v34, %v3628_v48  ;;  %v1154_v36 = vpop.f32.mrb[38].mxu1  ;;  %v797_v5 = vpop.f32.mrb[39].mxu0  ;;  %1536 = vmatmul.mubr.f32.gmra.mrb[144].mxu0 %v3544_v31 }
 0x1cf   : > { %v1155_v28 = vadd.f32 %v1154_v36, %v3631_v54  ;;  %v798_v51 = vadd.f32 %v797_v5, %v3634_v41  ;;  %v1156_v38 = vpop.f32.mrb[39].mxu1  ;;  %1895 = vmatmul.mubr.f32.gmra.mrb[144].mxu1 %v3544_v31  ;;  %1541 = vmatprep.mubr.f32.mxu0 %v3548_v32 }
 0x1d0   : > { %2203 = vst [vmem:[%s3645_s20 + $0x4c0] sm:$0xff] %v796_v50  ;;  %v1157_v29 = vadd.f32 %v1156_v38, %v3637_v56  ;;  %1900 = vmatprep.mubr.f32.mxu1 %v3548_v32  ;;  %v2915_v50 = vld [vmem:[%s3319_s30 + $0x1d0] sm:$0xff] }
 0x1d1   : > { %2205 = vst [vmem:[%s3645_s20 + $0x4d0] sm:$0xff] %v1155_v28  ;;  %2204 = vst [vmem:[%s3645_s20 + $0x4c8] sm:$0xff] %v798_v51  ;;  %v801_v2 = vpop.f32.mrb[40].mxu0  ;;  %v2916_v51 = vld [vmem:[%s3319_s30 + $0x1e8] sm:$0xff] }
 0x1d2   : > { %2206 = vst [vmem:[%s3645_s20 + $0x4d8] sm:$0xff] %v1157_v29  ;;  %v802_v3 = vadd.f32 %v801_v2, %v3628_v48  ;;  %v1160_v7 = vpop.f32.mrb[40].mxu1  ;;  %v803_v10 = vpop.f32.mrb[41].mxu0  ;;  %1542 = vmatmul.mubr.f32.gmra.mrb[146].mxu0 %v3554_v35 }
 0x1d3   : > { %v1161_v31 = vadd.f32 %v1160_v7, %v3631_v54  ;;  %v804_v49 = vadd.f32 %v803_v10, %v3634_v41  ;;  %v1162_v53 = vpop.f32.mrb[41].mxu1  ;;  %1901 = vmatmul.mubr.f32.gmra.mrb[146].mxu1 %v3554_v35  ;;  %1547 = vmatprep.mubr.f32.mxu0 %v3558_v37  ;;  %v2917_v10 = vld [vmem:[%s3319_s30 + $0x1e0] sm:$0xff] }
 0x1d4   : > { %2211 = vst [vmem:[%s3645_s20 + $0x500] sm:$0xff] %v802_v3  ;;  %v1163_v32 = vadd.f32 %v1162_v53, %v3637_v56  ;;  %1906 = vmatprep.mubr.f32.mxu1 %v3558_v37 }
 0x1d5   : > { %2213 = vst [vmem:[%s3645_s20 + $0x510] sm:$0xff] %v1161_v31  ;;  %2212 = vst [vmem:[%s3645_s20 + $0x508] sm:$0xff] %v804_v49  ;;  %v807_v11 = vpop.f32.mrb[42].mxu0 }
 0x1d6   : > { %2214 = vst [vmem:[%s3645_s20 + $0x518] sm:$0xff] %v1163_v32  ;;  %v808_v39 = vadd.f32 %v807_v11, %v3628_v48  ;;  %v1166_v40 = vpop.f32.mrb[42].mxu1  ;;  %v809_v35 = vpop.f32.mrb[43].mxu0  ;;  %1548 = vmatmul.mubr.f32.gmra.mrb[148].mxu0 %v2907_v57  ;;  %v2918_v32 = vld [vmem:[%s3319_s30 + $0x1f8] sm:$0xff] }
 0x1d7   : > { %v1167_v52 = vadd.f32 %v1166_v40, %v3631_v54  ;;  %v810_v13 = vadd.f32 %v809_v35, %v3634_v41  ;;  %v1168_v37 = vpop.f32.mrb[43].mxu1  ;;  %1907 = vmatmul.mubr.f32.gmra.mrb[148].mxu1 %v2907_v57  ;;  %1553 = vmatprep.mubr.f32.mxu0 %v2908_v8 }
 0x1d8   : > { %2219 = vst [vmem:[%s3645_s20 + $0x540] sm:$0xff] %v808_v39  ;;  %v1169_v42 = vadd.f32 %v1168_v37, %v3637_v56  ;;  %1912 = vmatprep.mubr.f32.mxu1 %v2908_v8 }
 0x1d9   : > { %2221 = vst [vmem:[%s3645_s20 + $0x550] sm:$0xff] %v1167_v52  ;;  %2220 = vst [vmem:[%s3645_s20 + $0x548] sm:$0xff] %v810_v13  ;;  %v813_v14 = vpop.f32.mrb[44].mxu0  ;;  %v2919_v52 = vld [vmem:[%s3319_s30 + $0x1f0] sm:$0xff] }
 0x1da   : > { %2222 = vst [vmem:[%s3645_s20 + $0x558] sm:$0xff] %v1169_v42  ;;  %v814_v43 = vadd.f32 %v813_v14, %v3628_v48  ;;  %v1172_v9 = vpop.f32.mrb[44].mxu1  ;;  %v815_v47 = vpop.f32.mrb[45].mxu0  ;;  %1554 = vmatmul.mubr.f32.gmra.mrb[150].mxu0 %v2909_v1  ;;  %v2920_v42 = vld [vmem:[%s3319_s30 + $0x208] sm:$0xff] }
 0x1db   : > { %v1173_v15 = vadd.f32 %v1172_v9, %v3631_v54  ;;  %v816_v12 = vadd.f32 %v815_v47, %v3634_v41  ;;  %v1174_v44 = vpop.f32.mrb[45].mxu1  ;;  %1913 = vmatmul.mubr.f32.gmra.mrb[150].mxu1 %v2909_v1  ;;  %1559 = vmatprep.mubr.f32.mxu0 %v2910_v16 }
 0x1dc   : > { %2227 = vst [vmem:[%s3645_s20 + $0x580] sm:$0xff] %v814_v43  ;;  %v1175_v19 = vadd.f32 %v1174_v44, %v3637_v56  ;;  %1918 = vmatprep.mubr.f32.mxu1 %v2910_v16 }
 0x1dd   : > { %2229 = vst [vmem:[%s3645_s20 + $0x590] sm:$0xff] %v1173_v15  ;;  %2228 = vst [vmem:[%s3645_s20 + $0x588] sm:$0xff] %v816_v12  ;;  %v819_v4 = vpop.f32.mrb[46].mxu0  ;;  %v2921_v15 = vld [vmem:[%s3319_s30 + $0x200] sm:$0xff] }
 0x1de   : > { %2230 = vst [vmem:[%s3645_s20 + $0x598] sm:$0xff] %v1175_v19  ;;  %v820_v59 = vadd.f32 %v819_v4, %v3628_v48  ;;  %v1178_v27 = vpop.f32.mrb[46].mxu1  ;;  %v821_v18 = vpop.f32.mrb[47].mxu0  ;;  %1560 = vmatmul.mubr.f32.gmra.mrb[152].mxu0 %v2911_v60  ;;  %v2922_v19 = vld [vmem:[%s3319_s30 + $0x218] sm:$0xff] }
 0x1df   : > { %v1179_v22 = vadd.f32 %v1178_v27, %v3631_v54  ;;  %v822_v20 = vadd.f32 %v821_v18, %v3634_v41  ;;  %v1180_v30 = vpop.f32.mrb[47].mxu1  ;;  %1919 = vmatmul.mubr.f32.gmra.mrb[152].mxu1 %v2911_v60  ;;  %1565 = vmatprep.mubr.f32.mxu0 %v2912_v61 }
 0x1e0   : > { %2235 = vst [vmem:[%s3645_s20 + $0x5c0] sm:$0xff] %v820_v59  ;;  %v1181_v17 = vadd.f32 %v1180_v30, %v3637_v56  ;;  %1924 = vmatprep.mubr.f32.mxu1 %v2912_v61 }
 0x1e1   : > { %2237 = vst [vmem:[%s3645_s20 + $0x5d0] sm:$0xff] %v1179_v22  ;;  %2236 = vst [vmem:[%s3645_s20 + $0x5c8] sm:$0xff] %v822_v20  ;;  %v825_v62 = vpop.f32.mrb[48].mxu0  ;;  %v2923_v22 = vld [vmem:[%s3319_s30 + $0x210] sm:$0xff] }
 0x1e2   : > { %2238 = vst [vmem:[%s3645_s20 + $0x5d8] sm:$0xff] %v1181_v17  ;;  %v826_v23 = vadd.f32 %v825_v62, %v3628_v48  ;;  %v1184_v55 = vpop.f32.mrb[48].mxu1  ;;  %v827_v45 = vpop.f32.mrb[49].mxu0  ;;  %1566 = vmatmul.mubr.f32.gmra.mrb[154].mxu0 %v2913_v24  ;;  %v2924_v17 = vld [vmem:[%s3319_s30 + $0x228] sm:$0xff] }
 0x1e3   : > { %v1185_v21 = vadd.f32 %v1184_v55, %v3631_v54  ;;  %v828_v63 = vadd.f32 %v827_v45, %v3634_v41  ;;  %v1186_v46 = vpop.f32.mrb[49].mxu1  ;;  %1925 = vmatmul.mubr.f32.gmra.mrb[154].mxu1 %v2913_v24  ;;  %1571 = vmatprep.mubr.f32.mxu0 %v2914_v33 }
 0x1e4   : > { %2243 = vst [vmem:[%s3645_s20 + $0x600] sm:$0xff] %v826_v23  ;;  %v1187_v25 = vadd.f32 %v1186_v46, %v3637_v56  ;;  %1930 = vmatprep.mubr.f32.mxu1 %v2914_v33 }
 0x1e5   : > { %2245 = vst [vmem:[%s3645_s20 + $0x610] sm:$0xff] %v1185_v21  ;;  %2244 = vst [vmem:[%s3645_s20 + $0x608] sm:$0xff] %v828_v63  ;;  %v831_v58 = vpop.f32.mrb[50].mxu0  ;;  %v2925_v21 = vld [vmem:[%s3319_s30 + $0x220] sm:$0xff] }
 0x1e6   : > { %2246 = vst [vmem:[%s3645_s20 + $0x618] sm:$0xff] %v1187_v25  ;;  %v832_v0 = vadd.f32 %v831_v58, %v3628_v48  ;;  %v1190_v26 = vpop.f32.mrb[50].mxu1  ;;  %v833_v34 = vpop.f32.mrb[51].mxu0  ;;  %1572 = vmatmul.mubr.f32.gmra.mrb[156].mxu0 %v2915_v50  ;;  %v2926_v25 = vld [vmem:[%s3319_s30 + $0x238] sm:$0xff] }
 0x1e7   : > { %v1191_v36 = vadd.f32 %v1190_v26, %v3631_v54  ;;  %v834_v5 = vadd.f32 %v833_v34, %v3634_v41  ;;  %v1192_v28 = vpop.f32.mrb[51].mxu1  ;;  %1931 = vmatmul.mubr.f32.gmra.mrb[156].mxu1 %v2915_v50  ;;  %1577 = vmatprep.mubr.f32.mxu0 %v2916_v51 }
 0x1e8   : > { %2251 = vst [vmem:[%s3645_s20 + $0x640] sm:$0xff] %v832_v0  ;;  %v1193_v38 = vadd.f32 %v1192_v28, %v3637_v56  ;;  %1936 = vmatprep.mubr.f32.mxu1 %v2916_v51 }
 0x1e9   : > { %2253 = vst [vmem:[%s3645_s20 + $0x650] sm:$0xff] %v1191_v36  ;;  %2252 = vst [vmem:[%s3645_s20 + $0x648] sm:$0xff] %v834_v5  ;;  %v837_v29 = vpop.f32.mrb[52].mxu0  ;;  %v2927_v36 = vld [vmem:[%s3319_s30 + $0x230] sm:$0xff] }
 0x1ea   : > { %2254 = vst [vmem:[%s3645_s20 + $0x658] sm:$0xff] %v1193_v38  ;;  %v838_v2 = vadd.f32 %v837_v29, %v3628_v48  ;;  %v1196_v3 = vpop.f32.mrb[52].mxu1  ;;  %v839_v7 = vpop.f32.mrb[53].mxu0  ;;  %1578 = vmatmul.mubr.f32.gmra.mrb[158].mxu0 %v2917_v10  ;;  %v2928_v38 = vld [vmem:[%s3319_s30 + $0x248] sm:$0xff] }
 0x1eb   : > { %v1197_v31 = vadd.f32 %v1196_v3, %v3631_v54  ;;  %v840_v49 = vadd.f32 %v839_v7, %v3634_v41  ;;  %v1198_v53 = vpop.f32.mrb[53].mxu1  ;;  %1937 = vmatmul.mubr.f32.gmra.mrb[158].mxu1 %v2917_v10  ;;  %1583 = vmatprep.mubr.f32.mxu0 %v2918_v32 }
 0x1ec   : > { %2259 = vst [vmem:[%s3645_s20 + $0x680] sm:$0xff] %v838_v2  ;;  %v1199_v11 = vadd.f32 %v1198_v53, %v3637_v56  ;;  %1942 = vmatprep.mubr.f32.mxu1 %v2918_v32 }
 0x1ed   : > { %2261 = vst [vmem:[%s3645_s20 + $0x690] sm:$0xff] %v1197_v31  ;;  %2260 = vst [vmem:[%s3645_s20 + $0x688] sm:$0xff] %v840_v49  ;;  %v843_v39 = vpop.f32.mrb[54].mxu0  ;;  %v2929_v31 = vld [vmem:[%s3319_s30 + $0x240] sm:$0xff] }
 0x1ee   : > { %2262 = vst [vmem:[%s3645_s20 + $0x698] sm:$0xff] %v1199_v11  ;;  %v844_v40 = vadd.f32 %v843_v39, %v3628_v48  ;;  %v1202_v35 = vpop.f32.mrb[54].mxu1  ;;  %v845_v57 = vpop.f32.mrb[55].mxu0  ;;  %1584 = vmatmul.mubr.f32.gmra.mrb[160].mxu0 %v2919_v52  ;;  %v2930_v11 = vld [vmem:[%s3319_s30 + $0x258] sm:$0xff] }
 0x1ef   : > { %v1203_v13 = vadd.f32 %v1202_v35, %v3631_v54  ;;  %v846_v37 = vadd.f32 %v845_v57, %v3634_v41  ;;  %v1204_v8 = vpop.f32.mrb[55].mxu1  ;;  %1943 = vmatmul.mubr.f32.gmra.mrb[160].mxu1 %v2919_v52  ;;  %1589 = vmatprep.mubr.f32.mxu0 %v2920_v42 }
 0x1f0   : > { %2267 = vst [vmem:[%s3645_s20 + $0x6c0] sm:$0xff] %v844_v40  ;;  %v1205_v14 = vadd.f32 %v1204_v8, %v3637_v56  ;;  %1948 = vmatprep.mubr.f32.mxu1 %v2920_v42 }
 0x1f1   : > { %2269 = vst [vmem:[%s3645_s20 + $0x6d0] sm:$0xff] %v1203_v13  ;;  %2268 = vst [vmem:[%s3645_s20 + $0x6c8] sm:$0xff] %v846_v37  ;;  %v849_v43 = vpop.f32.mrb[56].mxu0  ;;  %v2931_v13 = vld [vmem:[%s3319_s30 + $0x250] sm:$0xff] }
 0x1f2   : > { %2270 = vst [vmem:[%s3645_s20 + $0x6d8] sm:$0xff] %v1205_v14  ;;  %v850_v9 = vadd.f32 %v849_v43, %v3628_v48  ;;  %v1208_v47 = vpop.f32.mrb[56].mxu1  ;;  %v851_v1 = vpop.f32.mrb[57].mxu0  ;;  %1590 = vmatmul.mubr.f32.gmra.mrb[162].mxu0 %v2921_v15  ;;  %v2932_v14 = vld [vmem:[%s3319_s30 + $0x268] sm:$0xff] }
 0x1f3   : > { %v1209_v12 = vadd.f32 %v1208_v47, %v3631_v54  ;;  %v852_v44 = vadd.f32 %v851_v1, %v3634_v41  ;;  %v1210_v16 = vpop.f32.mrb[57].mxu1  ;;  %1949 = vmatmul.mubr.f32.gmra.mrb[162].mxu1 %v2921_v15  ;;  %1595 = vmatprep.mubr.f32.mxu0 %v2922_v19 }
 0x1f4   : > { %2275 = vst [vmem:[%s3645_s20 + $0x700] sm:$0xff] %v850_v9  ;;  %v1211_v4 = vadd.f32 %v1210_v16, %v3637_v56  ;;  %1954 = vmatprep.mubr.f32.mxu1 %v2922_v19 }
 0x1f5   : > { %2277 = vst [vmem:[%s3645_s20 + $0x710] sm:$0xff] %v1209_v12  ;;  %2276 = vst [vmem:[%s3645_s20 + $0x708] sm:$0xff] %v852_v44  ;;  %v855_v59 = vpop.f32.mrb[58].mxu0  ;;  %v2933_v12 = vld [vmem:[%s3319_s30 + $0x260] sm:$0xff] }
 0x1f6   : > { %2278 = vst [vmem:[%s3645_s20 + $0x718] sm:$0xff] %v1211_v4  ;;  %v856_v27 = vadd.f32 %v855_v59, %v3628_v48  ;;  %v1214_v18 = vpop.f32.mrb[58].mxu1  ;;  %v857_v60 = vpop.f32.mrb[59].mxu0  ;;  %1596 = vmatmul.mubr.f32.gmra.mrb[164].mxu0 %v2923_v22  ;;  %v2934_v4 = vld [vmem:[%s3319_s30 + $0x278] sm:$0xff] }
 0x1f7   : > { %v1215_v20 = vadd.f32 %v1214_v18, %v3631_v54  ;;  %v858_v30 = vadd.f32 %v857_v60, %v3634_v41  ;;  %v1216_v61 = vpop.f32.mrb[59].mxu1  ;;  %1955 = vmatmul.mubr.f32.gmra.mrb[164].mxu1 %v2923_v22  ;;  %1601 = vmatprep.mubr.f32.mxu0 %v2924_v17 }
 0x1f8   : > { %2283 = vst [vmem:[%s3645_s20 + $0x740] sm:$0xff] %v856_v27  ;;  %v1217_v62 = vadd.f32 %v1216_v61, %v3637_v56  ;;  %1960 = vmatprep.mubr.f32.mxu1 %v2924_v17 }
 0x1f9   : > { %2285 = vst [vmem:[%s3645_s20 + $0x750] sm:$0xff] %v1215_v20  ;;  %2284 = vst [vmem:[%s3645_s20 + $0x748] sm:$0xff] %v858_v30  ;;  %v861_v23 = vpop.f32.mrb[60].mxu0  ;;  %v2935_v20 = vld [vmem:[%s3319_s30 + $0x270] sm:$0xff] }
 0x1fa   : > { %2286 = vst [vmem:[%s3645_s20 + $0x758] sm:$0xff] %v1217_v62  ;;  %v862_v55 = vadd.f32 %v861_v23, %v3628_v48  ;;  %v1220_v45 = vpop.f32.mrb[60].mxu1  ;;  %v863_v24 = vpop.f32.mrb[61].mxu0  ;;  %1602 = vmatmul.mubr.f32.gmra.mrb[166].mxu0 %v2925_v21  ;;  %v2936_v62 = vld [vmem:[%s3319_s30 + $0x288] sm:$0xff] }
 0x1fb   : > { %v1221_v63 = vadd.f32 %v1220_v45, %v3631_v54  ;;  %v864_v46 = vadd.f32 %v863_v24, %v3634_v41  ;;  %v1222_v33 = vpop.f32.mrb[61].mxu1  ;;  %1961 = vmatmul.mubr.f32.gmra.mrb[166].mxu1 %v2925_v21  ;;  %1607 = vmatprep.mubr.f32.mxu0 %v2926_v25 }
 0x1fc   : > { %2291 = vst [vmem:[%s3645_s20 + $0x780] sm:$0xff] %v862_v55  ;;  %v1223_v58 = vadd.f32 %v1222_v33, %v3637_v56  ;;  %1966 = vmatprep.mubr.f32.mxu1 %v2926_v25 }
 0x1fd   : > { %2293 = vst [vmem:[%s3645_s20 + $0x790] sm:$0xff] %v1221_v63  ;;  %2292 = vst [vmem:[%s3645_s20 + $0x788] sm:$0xff] %v864_v46  ;;  %v867_v0 = vpop.f32.mrb[62].mxu0  ;;  %v2937_v63 = vld [vmem:[%s3319_s30 + $0x280] sm:$0xff] }
 0x1fe   : > { %2294 = vst [vmem:[%s3645_s20 + $0x798] sm:$0xff] %v1223_v58  ;;  %v868_v26 = vadd.f32 %v867_v0, %v3628_v48  ;;  %v1226_v34 = vpop.f32.mrb[62].mxu1  ;;  %v869_v50 = vpop.f32.mrb[63].mxu0  ;;  %1608 = vmatmul.mubr.f32.gmra.mrb[168].mxu0 %v2927_v36  ;;  %v2938_v58 = vld [vmem:[%s3319_s30 + $0x298] sm:$0xff] }
 0x1ff   : > { %v1227_v5 = vadd.f32 %v1226_v34, %v3631_v54  ;;  %v870_v28 = vadd.f32 %v869_v50, %v3634_v41  ;;  %v1228_v51 = vpop.f32.mrb[63].mxu1  ;;  %1967 = vmatmul.mubr.f32.gmra.mrb[168].mxu1 %v2927_v36  ;;  %1613 = vmatprep.mubr.f32.mxu0 %v2928_v38 }
 0x200   : > { %2299 = vst [vmem:[%s3645_s20 + $0x7c0] sm:$0xff] %v868_v26  ;;  %v1229_v29 = vadd.f32 %v1228_v51, %v3637_v56  ;;  %1972 = vmatprep.mubr.f32.mxu1 %v2928_v38 }
 0x201   : > { %2301 = vst [vmem:[%s3645_s20 + $0x7d0] sm:$0xff] %v1227_v5  ;;  %2300 = vst [vmem:[%s3645_s20 + $0x7c8] sm:$0xff] %v870_v28  ;;  %v873_v2 = vpop.f32.mrb[64].mxu0  ;;  %v2939_v5 = vld [vmem:[%s3319_s30 + $0x290] sm:$0xff] }
 0x202   : > { %2302 = vst [vmem:[%s3645_s20 + $0x7d8] sm:$0xff] %v1229_v29  ;;  %v874_v3 = vadd.f32 %v873_v2, %v3628_v48  ;;  %v1232_v7 = vpop.f32.mrb[64].mxu1  ;;  %v875_v10 = vpop.f32.mrb[65].mxu0  ;;  %1614 = vmatmul.mubr.f32.gmra.mrb[170].mxu0 %v2929_v31  ;;  %v2940_v29 = vld [vmem:[%s3319_s30 + $0x2a8] sm:$0xff] }
 0x203   : > { %v1233_v49 = vadd.f32 %v1232_v7, %v3631_v54  ;;  %v876_v53 = vadd.f32 %v875_v10, %v3634_v41  ;;  %v1234_v32 = vpop.f32.mrb[65].mxu1  ;;  %1973 = vmatmul.mubr.f32.gmra.mrb[170].mxu1 %v2929_v31  ;;  %1619 = vmatprep.mubr.f32.mxu0 %v2930_v11 }
 0x204   : > { %2307 = vst [vmem:[%s3645_s20 + $0x800] sm:$0xff] %v874_v3  ;;  %v1235_v39 = vadd.f32 %v1234_v32, %v3637_v56  ;;  %1978 = vmatprep.mubr.f32.mxu1 %v2930_v11 }
 0x205   : > { %2309 = vst [vmem:[%s3645_s20 + $0x810] sm:$0xff] %v1233_v49  ;;  %2308 = vst [vmem:[%s3645_s20 + $0x808] sm:$0xff] %v876_v53  ;;  %v879_v40 = vpop.f32.mrb[66].mxu0  ;;  %v2941_v49 = vld [vmem:[%s3319_s30 + $0x2a0] sm:$0xff] }
 0x206   : > { %2310 = vst [vmem:[%s3645_s20 + $0x818] sm:$0xff] %v1235_v39  ;;  %v880_v35 = vadd.f32 %v879_v40, %v3628_v48  ;;  %v1238_v57 = vpop.f32.mrb[66].mxu1  ;;  %v881_v52 = vpop.f32.mrb[67].mxu0  ;;  %1620 = vmatmul.mubr.f32.gmra.mrb[172].mxu0 %v2931_v13  ;;  %v2942_v39 = vld [vmem:[%s3319_s30 + $0x2b8] sm:$0xff] }
 0x207   : > { %v1239_v37 = vadd.f32 %v1238_v57, %v3631_v54  ;;  %v882_v8 = vadd.f32 %v881_v52, %v3634_v41  ;;  %v1240_v42 = vpop.f32.mrb[67].mxu1  ;;  %1979 = vmatmul.mubr.f32.gmra.mrb[172].mxu1 %v2931_v13  ;;  %1625 = vmatprep.mubr.f32.mxu0 %v2932_v14 }
 0x208   : > { %2315 = vst [vmem:[%s3645_s20 + $0x840] sm:$0xff] %v880_v35  ;;  %v1241_v43 = vadd.f32 %v1240_v42, %v3637_v56  ;;  %1984 = vmatprep.mubr.f32.mxu1 %v2932_v14 }
 0x209   : > { %2317 = vst [vmem:[%s3645_s20 + $0x850] sm:$0xff] %v1239_v37  ;;  %2316 = vst [vmem:[%s3645_s20 + $0x848] sm:$0xff] %v882_v8  ;;  %v885_v9 = vpop.f32.mrb[68].mxu0  ;;  %v2943_v37 = vld [vmem:[%s3319_s30 + $0x2b0] sm:$0xff] }
 0x20a   : > { %2318 = vst [vmem:[%s3645_s20 + $0x858] sm:$0xff] %v1241_v43  ;;  %v886_v47 = vadd.f32 %v885_v9, %v3628_v48  ;;  %v1244_v1 = vpop.f32.mrb[68].mxu1  ;;  %v887_v15 = vpop.f32.mrb[69].mxu0  ;;  %1626 = vmatmul.mubr.f32.gmra.mrb[174].mxu0 %v2933_v12  ;;  %v2944_v43 = vld [vmem:[%s3319_s30 + $0x2c8] sm:$0xff] }
 0x20b   : > { %v1245_v44 = vadd.f32 %v1244_v1, %v3631_v54  ;;  %v888_v16 = vadd.f32 %v887_v15, %v3634_v41  ;;  %v1246_v19 = vpop.f32.mrb[69].mxu1  ;;  %1985 = vmatmul.mubr.f32.gmra.mrb[174].mxu1 %v2933_v12  ;;  %1631 = vmatprep.mubr.f32.mxu0 %v2934_v4 }
 0x20c   : > { %2323 = vst [vmem:[%s3645_s20 + $0x880] sm:$0xff] %v886_v47  ;;  %v1247_v59 = vadd.f32 %v1246_v19, %v3637_v56  ;;  %1990 = vmatprep.mubr.f32.mxu1 %v2934_v4 }
 0x20d   : > { %2325 = vst [vmem:[%s3645_s20 + $0x890] sm:$0xff] %v1245_v44  ;;  %2324 = vst [vmem:[%s3645_s20 + $0x888] sm:$0xff] %v888_v16  ;;  %v891_v27 = vpop.f32.mrb[70].mxu0  ;;  %v2945_v44 = vld [vmem:[%s3319_s30 + $0x2c0] sm:$0xff] }
 0x20e   : > { %2326 = vst [vmem:[%s3645_s20 + $0x898] sm:$0xff] %v1247_v59  ;;  %v892_v18 = vadd.f32 %v891_v27, %v3628_v48  ;;  %v1250_v60 = vpop.f32.mrb[70].mxu1  ;;  %v893_v22 = vpop.f32.mrb[71].mxu0  ;;  %1632 = vmatmul.mubr.f32.gmra.mrb[176].mxu0 %v2935_v20  ;;  %v2946_v59 = vld [vmem:[%s3319_s30 + $0x2d8] sm:$0xff] }
 0x20f   : > { %v1251_v30 = vadd.f32 %v1250_v60, %v3631_v54  ;;  %v894_v61 = vadd.f32 %v893_v22, %v3634_v41  ;;  %v1252_v17 = vpop.f32.mrb[71].mxu1  ;;  %1991 = vmatmul.mubr.f32.gmra.mrb[176].mxu1 %v2935_v20  ;;  %1637 = vmatprep.mubr.f32.mxu0 %v2936_v62 }
 0x210   : > { %2331 = vst [vmem:[%s3645_s20 + $0x8c0] sm:$0xff] %v892_v18  ;;  %v1253_v23 = vadd.f32 %v1252_v17, %v3637_v56  ;;  %1996 = vmatprep.mubr.f32.mxu1 %v2936_v62 }
 0x211   : > { %2333 = vst [vmem:[%s3645_s20 + $0x8d0] sm:$0xff] %v1251_v30  ;;  %2332 = vst [vmem:[%s3645_s20 + $0x8c8] sm:$0xff] %v894_v61  ;;  %v897_v55 = vpop.f32.mrb[72].mxu0  ;;  %v2947_v30 = vld [vmem:[%s3319_s30 + $0x2d0] sm:$0xff] }
 0x212   : > { %2334 = vst [vmem:[%s3645_s20 + $0x8d8] sm:$0xff] %v1253_v23  ;;  %v898_v45 = vadd.f32 %v897_v55, %v3628_v48  ;;  %v1256_v24 = vpop.f32.mrb[72].mxu1  ;;  %v899_v21 = vpop.f32.mrb[73].mxu0  ;;  %1638 = vmatmul.mubr.f32.gmra.mrb[178].mxu0 %v2937_v63  ;;  %v2948_v23 = vld [vmem:[%s3319_s30 + $0x2e8] sm:$0xff] }
 0x213   : > { %v1257_v46 = vadd.f32 %v1256_v24, %v3631_v54  ;;  %v900_v33 = vadd.f32 %v899_v21, %v3634_v41  ;;  %v1258_v25 = vpop.f32.mrb[73].mxu1  ;;  %1997 = vmatmul.mubr.f32.gmra.mrb[178].mxu1 %v2937_v63  ;;  %1643 = vmatprep.mubr.f32.mxu0 %v2938_v58 }
 0x214   : > { %2339 = vst [vmem:[%s3645_s20 + $0x900] sm:$0xff] %v898_v45  ;;  %v1259_v0 = vadd.f32 %v1258_v25, %v3637_v56  ;;  %2002 = vmatprep.mubr.f32.mxu1 %v2938_v58 }
 0x215   : > { %2341 = vst [vmem:[%s3645_s20 + $0x910] sm:$0xff] %v1257_v46  ;;  %2340 = vst [vmem:[%s3645_s20 + $0x908] sm:$0xff] %v900_v33  ;;  %v903_v26 = vpop.f32.mrb[74].mxu0  ;;  %v2949_v46 = vld [vmem:[%s3319_s30 + $0x2e0] sm:$0xff] }
 0x216   : > { %2342 = vst [vmem:[%s3645_s20 + $0x918] sm:$0xff] %v1259_v0  ;;  %v904_v34 = vadd.f32 %v903_v26, %v3628_v48  ;;  %v1262_v50 = vpop.f32.mrb[74].mxu1  ;;  %v905_v36 = vpop.f32.mrb[75].mxu0  ;;  %1644 = vmatmul.mubr.f32.gmra.mrb[180].mxu0 %v2939_v5  ;;  %v2950_v0 = vld [vmem:[%s3319_s30 + $0x2f8] sm:$0xff] }
 0x217   : > { %v1263_v28 = vadd.f32 %v1262_v50, %v3631_v54  ;;  %v906_v51 = vadd.f32 %v905_v36, %v3634_v41  ;;  %v1264_v38 = vpop.f32.mrb[75].mxu1  ;;  %2003 = vmatmul.mubr.f32.gmra.mrb[180].mxu1 %v2939_v5  ;;  %1649 = vmatprep.mubr.f32.mxu0 %v2940_v29 }
 0x218   : > { %2347 = vst [vmem:[%s3645_s20 + $0x940] sm:$0xff] %v904_v34  ;;  %v1265_v2 = vadd.f32 %v1264_v38, %v3637_v56  ;;  %2008 = vmatprep.mubr.f32.mxu1 %v2940_v29 }
 0x219   : > { %2349 = vst [vmem:[%s3645_s20 + $0x950] sm:$0xff] %v1263_v28  ;;  %2348 = vst [vmem:[%s3645_s20 + $0x948] sm:$0xff] %v906_v51  ;;  %v909_v3 = vpop.f32.mrb[76].mxu0  ;;  %v2951_v28 = vld [vmem:[%s3319_s30 + $0x2f0] sm:$0xff] }
 0x21a   : > { %2350 = vst [vmem:[%s3645_s20 + $0x958] sm:$0xff] %v1265_v2  ;;  %v910_v7 = vadd.f32 %v909_v3, %v3628_v48  ;;  %v1268_v10 = vpop.f32.mrb[76].mxu1  ;;  %v911_v31 = vpop.f32.mrb[77].mxu0  ;;  %1650 = vmatmul.mubr.f32.gmra.mrb[182].mxu0 %v2941_v49  ;;  %v2952_v2 = vld [vmem:[%s3319_s30 + $0x308] sm:$0xff] }
 0x21b   : > { %v1269_v53 = vadd.f32 %v1268_v10, %v3631_v54  ;;  %v912_v32 = vadd.f32 %v911_v31, %v3634_v41  ;;  %v1270_v11 = vpop.f32.mrb[77].mxu1  ;;  %2009 = vmatmul.mubr.f32.gmra.mrb[182].mxu1 %v2941_v49  ;;  %1655 = vmatprep.mubr.f32.mxu0 %v2942_v39 }
 0x21c   : > { %2355 = vst [vmem:[%s3645_s20 + $0x980] sm:$0xff] %v910_v7  ;;  %v1271_v40 = vadd.f32 %v1270_v11, %v3637_v56  ;;  %2014 = vmatprep.mubr.f32.mxu1 %v2942_v39 }
 0x21d   : > { %2357 = vst [vmem:[%s3645_s20 + $0x990] sm:$0xff] %v1269_v53  ;;  %2356 = vst [vmem:[%s3645_s20 + $0x988] sm:$0xff] %v912_v32  ;;  %v915_v35 = vpop.f32.mrb[78].mxu0  ;;  %v2953_v53 = vld [vmem:[%s3319_s30 + $0x300] sm:$0xff] }
 0x21e   : > { %2358 = vst [vmem:[%s3645_s20 + $0x998] sm:$0xff] %v1271_v40  ;;  %v916_v57 = vadd.f32 %v915_v35, %v3628_v48  ;;  %v1274_v52 = vpop.f32.mrb[78].mxu1  ;;  %v917_v13 = vpop.f32.mrb[79].mxu0  ;;  %1656 = vmatmul.mubr.f32.gmra.mrb[184].mxu0 %v2943_v37 }
 0x21f   : > { %v1275_v8 = vadd.f32 %v1274_v52, %v3631_v54  ;;  %v918_v42 = vadd.f32 %v917_v13, %v3634_v41  ;;  %v1276_v14 = vpop.f32.mrb[79].mxu1  ;;  %2015 = vmatmul.mubr.f32.gmra.mrb[184].mxu1 %v2943_v37  ;;  %1661 = vmatprep.mubr.f32.mxu0 %v2944_v43 }
 0x220   : > { %2363 = vst [vmem:[%s3645_s20 + $0x9c0] sm:$0xff] %v916_v57  ;;  %v1277_v9 = vadd.f32 %v1276_v14, %v3637_v56  ;;  %2020 = vmatprep.mubr.f32.mxu1 %v2944_v43 }
 0x221   : > { %2365 = vst [vmem:[%s3645_s20 + $0x9d0] sm:$0xff] %v1275_v8  ;;  %2364 = vst [vmem:[%s3645_s20 + $0x9c8] sm:$0xff] %v918_v42  ;;  %v921_v47 = vpop.f32.mrb[80].mxu0 }
 0x222   : > { %2366 = vst [vmem:[%s3645_s20 + $0x9d8] sm:$0xff] %v1277_v9  ;;  %v922_v1 = vadd.f32 %v921_v47, %v3628_v48  ;;  %v1280_v15 = vpop.f32.mrb[80].mxu1  ;;  %v923_v12 = vpop.f32.mrb[81].mxu0  ;;  %1662 = vmatmul.mubr.f32.gmra.mrb[186].mxu0 %v2945_v44 }
 0x223   : > { %v1281_v16 = vadd.f32 %v1280_v15, %v3631_v54  ;;  %v924_v19 = vadd.f32 %v923_v12, %v3634_v41  ;;  %v1282_v4 = vpop.f32.mrb[81].mxu1  ;;  %2021 = vmatmul.mubr.f32.gmra.mrb[186].mxu1 %v2945_v44  ;;  %1667 = vmatprep.mubr.f32.mxu0 %v2946_v59 }
 0x224   : > { %2371 = vst [vmem:[%s3645_s20 + $0xa00] sm:$0xff] %v922_v1  ;;  %v1283_v27 = vadd.f32 %v1282_v4, %v3637_v56  ;;  %2026 = vmatprep.mubr.f32.mxu1 %v2946_v59 }
 0x225   : > { %2373 = vst [vmem:[%s3645_s20 + $0xa10] sm:$0xff] %v1281_v16  ;;  %2372 = vst [vmem:[%s3645_s20 + $0xa08] sm:$0xff] %v924_v19  ;;  %v927_v18 = vpop.f32.mrb[82].mxu0 }
 0x226   : > { %2374 = vst [vmem:[%s3645_s20 + $0xa18] sm:$0xff] %v1283_v27  ;;  %v928_v60 = vadd.f32 %v927_v18, %v3628_v48  ;;  %v1286_v22 = vpop.f32.mrb[82].mxu1  ;;  %v929_v20 = vpop.f32.mrb[83].mxu0  ;;  %1668 = vmatmul.mubr.f32.gmra.mrb[188].mxu0 %v2947_v30  ;;  %v593_v18 = vsub.s32 4, %v3615_v6 }
 0x227   : > { %v1287_v61 = vadd.f32 %v1286_v22, %v3631_v54  ;;  %v930_v17 = vadd.f32 %v929_v20, %v3634_v41  ;;  %v1288_v62 = vpop.f32.mrb[83].mxu1  ;;  %2027 = vmatmul.mubr.f32.gmra.mrb[188].mxu1 %v2947_v30  ;;  %1673 = vmatprep.mubr.f32.mxu0 %v2948_v23  ;;  %v601_v30 = vsub.s32 6, %v3615_v6 }
 0x228   : > { %2379 = vst [vmem:[%s3645_s20 + $0xa40] sm:$0xff] %v928_v60  ;;  %v1289_v55 = vadd.f32 %v1288_v62, %v3637_v56  ;;  %2032 = vmatprep.mubr.f32.mxu1 %v2948_v23  ;;  %v605_v62 = vsub.s32 7, %v3615_v6 }
 0x229   : > { %2381 = vst [vmem:[%s3645_s20 + $0xa50] sm:$0xff] %v1287_v61  ;;  %2380 = vst [vmem:[%s3645_s20 + $0xa48] sm:$0xff] %v930_v17  ;;  %v933_v45 = vpop.f32.mrb[84].mxu0  ;;  %v597_v61 = vsub.s32 5, %v3615_v6 }
 0x22a   : > { %2382 = vst [vmem:[%s3645_s20 + $0xa58] sm:$0xff] %v1289_v55  ;;  %v934_v24 = vadd.f32 %v933_v45, %v3628_v48  ;;  %v1292_v21 = vpop.f32.mrb[84].mxu1  ;;  %v935_v63 = vpop.f32.mrb[85].mxu0  ;;  %1674 = vmatmul.mubr.f32.gmra.mrb[190].mxu0 %v2949_v46 }
 0x22b   : > { %v1293_v33 = vadd.f32 %v1292_v21, %v3631_v54  ;;  %v936_v25 = vadd.f32 %v935_v63, %v3634_v41  ;;  %v1294_v58 = vpop.f32.mrb[85].mxu1  ;;  %2033 = vmatmul.mubr.f32.gmra.mrb[190].mxu1 %v2949_v46  ;;  %1679 = vmatprep.mubr.f32.mxu0 %v2950_v0  ;;  %v2954_v21 = vld [vmem:[#allocation7] sm:$0xff] }
 0x22c   : > { %2387 = vst [vmem:[%s3645_s20 + $0xa80] sm:$0xff] %v934_v24  ;;  %v1295_v26 = vadd.f32 %v1294_v58, %v3637_v56  ;;  %2038 = vmatprep.mubr.f32.mxu1 %v2950_v0  ;;  %v4161_v63 = vrot.slane %v2954_v21, %v593_v18  ;;  %v4165_v6 = vrot.slane %v2954_v21, %v601_v30 }
 0x22d   : > { %2389 = vst [vmem:[%s3645_s20 + $0xa90] sm:$0xff] %v1293_v33  ;;  %2388 = vst [vmem:[%s3645_s20 + $0xa88] sm:$0xff] %v936_v25  ;;  %v939_v34 = vpop.f32.mrb[86].mxu0  ;;  %v4167_v58 = vrot.slane %v2954_v21, %v597_v61  ;;  %v4171_v0 = vrot.slane %v2954_v21, %v605_v62 }
 0x22e   : > { %2390 = vst [vmem:[%s3645_s20 + $0xa98] sm:$0xff] %v1295_v26  ;;  %v940_v50 = vadd.f32 %v939_v34, %v3628_v48  ;;  %v1298_v36 = vpop.f32.mrb[86].mxu1  ;;  %v941_v5 = vpop.f32.mrb[87].mxu0  ;;  %1680 = vmatmul.mubr.f32.gmra.mrb[192].mxu0 %v2951_v28 }
 0x22f   : > { %v1299_v51 = vadd.f32 %v1298_v36, %v3631_v54  ;;  %v942_v38 = vadd.f32 %v941_v5, %v3634_v41  ;;  %v1300_v29 = vpop.f32.mrb[87].mxu1  ;;  %2039 = vmatmul.mubr.f32.gmra.mrb[192].mxu1 %v2951_v28  ;;  %1685 = vmatprep.mubr.f32.mxu0 %v2952_v2 }
 0x230   : > { %2395 = vst [vmem:[%s3645_s20 + $0xac0] sm:$0xff] %v940_v50  ;;  %v1301_v3 = vadd.f32 %v1300_v29, %v3637_v56  ;;  %2044 = vmatprep.mubr.f32.mxu1 %v2952_v2 }
 0x231   : > { %2397 = vst [vmem:[%s3645_s20 + $0xad0] sm:$0xff] %v1299_v51  ;;  %2396 = vst [vmem:[%s3645_s20 + $0xac8] sm:$0xff] %v942_v38  ;;  %v945_v7 = vpop.f32.mrb[88].mxu0 }
 0x232   : > { %2398 = vst [vmem:[%s3645_s20 + $0xad8] sm:$0xff] %v1301_v3  ;;  %v946_v10 = vadd.f32 %v945_v7, %v3628_v48  ;;  %v1304_v31 = vpop.f32.mrb[88].mxu1  ;;  %v947_v49 = vpop.f32.mrb[89].mxu0  ;;  %1686 = vmatmul.mubr.f32.gmra.mrb[194].mxu0 %v2953_v53 }
 0x233   : > { %v1305_v32 = vadd.f32 %v1304_v31, %v3631_v54  ;;  %v948_v11 = vadd.f32 %v947_v49, %v3634_v41  ;;  %v1306_v39 = vpop.f32.mrb[89].mxu1  ;;  %2045 = vmatmul.mubr.f32.gmra.mrb[194].mxu1 %v2953_v53 }
 0x234   : > { %2403 = vst [vmem:[%s3645_s20 + $0xb00] sm:$0xff] %v946_v10  ;;  %v1307_v40 = vadd.f32 %v1306_v39, %v3637_v56 }
 0x235   : > { %2405 = vst [vmem:[%s3645_s20 + $0xb10] sm:$0xff] %v1305_v32  ;;  %2404 = vst [vmem:[%s3645_s20 + $0xb08] sm:$0xff] %v948_v11  ;;  %v951_v35 = vpop.f32.mrb[90].mxu0 }
 0x236   : > { %2406 = vst [vmem:[%s3645_s20 + $0xb18] sm:$0xff] %v1307_v40  ;;  %v952_v57 = vadd.f32 %v951_v35, %v3628_v48  ;;  %v1310_v52 = vpop.f32.mrb[90].mxu1  ;;  %v953_v13 = vpop.f32.mrb[91].mxu0 }
 0x237   : > { %v1311_v37 = vadd.f32 %v1310_v52, %v3631_v54  ;;  %v954_v8 = vadd.f32 %v953_v13, %v3634_v41  ;;  %v1312_v42 = vpop.f32.mrb[91].mxu1 }
 0x238   : > { %2411 = vst [vmem:[%s3645_s20 + $0xb40] sm:$0xff] %v952_v57  ;;  %v1313_v14 = vadd.f32 %v1312_v42, %v3637_v56 }
 0x239   : > { %2413 = vst [vmem:[%s3645_s20 + $0xb50] sm:$0xff] %v1311_v37  ;;  %2412 = vst [vmem:[%s3645_s20 + $0xb48] sm:$0xff] %v954_v8  ;;  %v957_v43 = vpop.f32.mrb[92].mxu0 }
 0x23a   : > { %2414 = vst [vmem:[%s3645_s20 + $0xb58] sm:$0xff] %v1313_v14  ;;  %v958_v9 = vadd.f32 %v957_v43, %v3628_v48  ;;  %v1316_v47 = vpop.f32.mrb[92].mxu1  ;;  %v959_v1 = vpop.f32.mrb[93].mxu0 }
 0x23b   : > { %v1317_v15 = vadd.f32 %v1316_v47, %v3631_v54  ;;  %v960_v12 = vadd.f32 %v959_v1, %v3634_v41  ;;  %v1318_v44 = vpop.f32.mrb[93].mxu1 }
 0x23c   : > { %2419 = vst [vmem:[%s3645_s20 + $0xb80] sm:$0xff] %v958_v9  ;;  %v1319_v16 = vadd.f32 %v1318_v44, %v3637_v56 }
 0x23d   : > { %2421 = vst [vmem:[%s3645_s20 + $0xb90] sm:$0xff] %v1317_v15  ;;  %2420 = vst [vmem:[%s3645_s20 + $0xb88] sm:$0xff] %v960_v12  ;;  %v963_v19 = vpop.f32.mrb[94].mxu0 }
 0x23e   : > { %2422 = vst [vmem:[%s3645_s20 + $0xb98] sm:$0xff] %v1319_v16  ;;  %v964_v4 = vadd.f32 %v963_v19, %v3628_v48  ;;  %v1322_v59 = vpop.f32.mrb[94].mxu1  ;;  %v965_v27 = vpop.f32.mrb[95].mxu0 }
 0x23f   : > { %v1323_v60 = vadd.f32 %v1322_v59, %v3631_v54  ;;  %v966_v22 = vadd.f32 %v965_v27, %v3634_v41  ;;  %v1324_v20 = vpop.f32.mrb[95].mxu1 }
 0x240   : > { %2427 = vst [vmem:[%s3645_s20 + $0xbc0] sm:$0xff] %v964_v4  ;;  %v1325_v17 = vadd.f32 %v1324_v20, %v3637_v56 }
 0x241   : > { %2429 = vst [vmem:[%s3645_s20 + $0xbd0] sm:$0xff] %v1323_v60  ;;  %2428 = vst [vmem:[%s3645_s20 + $0xbc8] sm:$0xff] %v966_v22  ;;  %v969_v23 = vpop.f32.mrb[96].mxu0 }
 0x242   : > { %2430 = vst [vmem:[%s3645_s20 + $0xbd8] sm:$0xff] %v1325_v17  ;;  %v970_v55 = vadd.f32 %v969_v23, %v3628_v48  ;;  %v1328_v45 = vpop.f32.mrb[96].mxu1  ;;  %v971_v24 = vpop.f32.mrb[97].mxu0 }
 0x243   : > { %v1329_v46 = vadd.f32 %v1328_v45, %v3631_v54  ;;  %v972_v33 = vadd.f32 %v971_v24, %v3634_v41  ;;  %v1330_v25 = vpop.f32.mrb[97].mxu1 }
 0x244   : > { %2435 = vst [vmem:[%s3645_s20 + $0xc00] sm:$0xff] %v970_v55  ;;  %v1331_v48 = vadd.f32 %v1330_v25, %v3637_v56 }
 0x245   : > { %2437 = vst [vmem:[%s3645_s20 + $0xc10] sm:$0xff] %v1329_v46  ;;  %2436 = vst [vmem:[%s3645_s20 + $0xc08] sm:$0xff] %v972_v33  ;;  %v1399_v26 = vpop.f32.mrb[98].mxu0 }
 0x246   : > { %2438 = vst [vmem:[%s3645_s20 + $0xc18] sm:$0xff] %v1331_v48  ;;  %v1400_v54 = vadd.f32 %v1399_v26, %v4161_v63  ;;  %v1758_v41 = vpop.f32.mrb[98].mxu1  ;;  %v1401_v34 = vpop.f32.mrb[99].mxu0 }
 0x247   : > { %v1759_v50 = vadd.f32 %v1758_v41, %v4165_v6  ;;  %v1402_v36 = vadd.f32 %v1401_v34, %v4167_v58  ;;  %v1760_v5 = vpop.f32.mrb[99].mxu1 }
 0x248   : > { %2055 = vst [vmem:[%s3645_s20 + $0x20] sm:$0xff] %v1400_v54  ;;  %v1761_v56 = vadd.f32 %v1760_v5, %v4171_v0 }
 0x249   : > { %2057 = vst [vmem:[%s3645_s20 + $0x30] sm:$0xff] %v1759_v50  ;;  %2056 = vst [vmem:[%s3645_s20 + $0x28] sm:$0xff] %v1402_v36  ;;  %v1405_v28 = vpop.f32.mrb[100].mxu0 }
 0x24a   : > { %2058 = vst [vmem:[%s3645_s20 + $0x38] sm:$0xff] %v1761_v56  ;;  %v1406_v51 = vadd.f32 %v1405_v28, %v4161_v63  ;;  %v1764_v38 = vpop.f32.mrb[100].mxu1  ;;  %v1407_v29 = vpop.f32.mrb[101].mxu0 }
 0x24b   : > { %v1765_v2 = vadd.f32 %v1764_v38, %v4165_v6  ;;  %v1408_v3 = vadd.f32 %v1407_v29, %v4167_v58  ;;  %v1766_v7 = vpop.f32.mrb[101].mxu1 }
 0x24c   : > { %2063 = vst [vmem:[%s3645_s20 + $0x60] sm:$0xff] %v1406_v51  ;;  %v1767_v10 = vadd.f32 %v1766_v7, %v4171_v0 }
 0x24d   : > { %2065 = vst [vmem:[%s3645_s20 + $0x70] sm:$0xff] %v1765_v2  ;;  %2064 = vst [vmem:[%s3645_s20 + $0x68] sm:$0xff] %v1408_v3  ;;  %v1411_v31 = vpop.f32.mrb[102].mxu0 }
 0x24e   : > { %2066 = vst [vmem:[%s3645_s20 + $0x78] sm:$0xff] %v1767_v10  ;;  %v1412_v49 = vadd.f32 %v1411_v31, %v4161_v63  ;;  %v1770_v53 = vpop.f32.mrb[102].mxu1  ;;  %v1413_v32 = vpop.f32.mrb[103].mxu0 }
 0x24f   : > { %v1771_v11 = vadd.f32 %v1770_v53, %v4165_v6  ;;  %v1414_v39 = vadd.f32 %v1413_v32, %v4167_v58  ;;  %v1772_v40 = vpop.f32.mrb[103].mxu1 }
 0x250   : > { %2071 = vst [vmem:[%s3645_s20 + $0xa0] sm:$0xff] %v1412_v49  ;;  %v1773_v35 = vadd.f32 %v1772_v40, %v4171_v0 }
 0x251   : > { %2073 = vst [vmem:[%s3645_s20 + $0xb0] sm:$0xff] %v1771_v11  ;;  %2072 = vst [vmem:[%s3645_s20 + $0xa8] sm:$0xff] %v1414_v39  ;;  %v1417_v57 = vpop.f32.mrb[104].mxu0 }
 0x252   : > { %2074 = vst [vmem:[%s3645_s20 + $0xb8] sm:$0xff] %v1773_v35  ;;  %v1418_v52 = vadd.f32 %v1417_v57, %v4161_v63  ;;  %v1776_v13 = vpop.f32.mrb[104].mxu1  ;;  %v1419_v37 = vpop.f32.mrb[105].mxu0 }
 0x253   : > { %v1777_v8 = vadd.f32 %v1776_v13, %v4165_v6  ;;  %v1420_v42 = vadd.f32 %v1419_v37, %v4167_v58  ;;  %v1778_v14 = vpop.f32.mrb[105].mxu1 }
 0x254   : > { %2079 = vst [vmem:[%s3645_s20 + $0xe0] sm:$0xff] %v1418_v52  ;;  %v1779_v43 = vadd.f32 %v1778_v14, %v4171_v0 }
 0x255   : > { %2081 = vst [vmem:[%s3645_s20 + $0xf0] sm:$0xff] %v1777_v8  ;;  %2080 = vst [vmem:[%s3645_s20 + $0xe8] sm:$0xff] %v1420_v42  ;;  %v1423_v9 = vpop.f32.mrb[106].mxu0 }
 0x256   : > { %2082 = vst [vmem:[%s3645_s20 + $0xf8] sm:$0xff] %v1779_v43  ;;  %v1424_v47 = vadd.f32 %v1423_v9, %v4161_v63  ;;  %v1782_v1 = vpop.f32.mrb[106].mxu1  ;;  %v1425_v15 = vpop.f32.mrb[107].mxu0 }
 0x257   : > { %v1783_v12 = vadd.f32 %v1782_v1, %v4165_v6  ;;  %v1426_v44 = vadd.f32 %v1425_v15, %v4167_v58  ;;  %v1784_v16 = vpop.f32.mrb[107].mxu1 }
 0x258   : > { %2087 = vst [vmem:[%s3645_s20 + $0x120] sm:$0xff] %v1424_v47  ;;  %v1785_v19 = vadd.f32 %v1784_v16, %v4171_v0 }
 0x259   : > { %2089 = vst [vmem:[%s3645_s20 + $0x130] sm:$0xff] %v1783_v12  ;;  %2088 = vst [vmem:[%s3645_s20 + $0x128] sm:$0xff] %v1426_v44  ;;  %v1429_v4 = vpop.f32.mrb[108].mxu0 }
 0x25a   : > { %2090 = vst [vmem:[%s3645_s20 + $0x138] sm:$0xff] %v1785_v19  ;;  %v1430_v59 = vadd.f32 %v1429_v4, %v4161_v63  ;;  %v1788_v27 = vpop.f32.mrb[108].mxu1  ;;  %v1431_v18 = vpop.f32.mrb[109].mxu0 }
 0x25b   : > { %v1789_v60 = vadd.f32 %v1788_v27, %v4165_v6  ;;  %v1432_v22 = vadd.f32 %v1431_v18, %v4167_v58  ;;  %v1790_v20 = vpop.f32.mrb[109].mxu1 }
 0x25c   : > { %2095 = vst [vmem:[%s3645_s20 + $0x160] sm:$0xff] %v1430_v59  ;;  %v1791_v30 = vadd.f32 %v1790_v20, %v4171_v0 }
 0x25d   : > { %2097 = vst [vmem:[%s3645_s20 + $0x170] sm:$0xff] %v1789_v60  ;;  %2096 = vst [vmem:[%s3645_s20 + $0x168] sm:$0xff] %v1432_v22  ;;  %v1435_v61 = vpop.f32.mrb[110].mxu0 }
 0x25e   : > { %2098 = vst [vmem:[%s3645_s20 + $0x178] sm:$0xff] %v1791_v30  ;;  %v1436_v17 = vadd.f32 %v1435_v61, %v4161_v63  ;;  %v1794_v62 = vpop.f32.mrb[110].mxu1  ;;  %v1437_v23 = vpop.f32.mrb[111].mxu0 }
 0x25f   : > { %v1795_v55 = vadd.f32 %v1794_v62, %v4165_v6  ;;  %v1438_v45 = vadd.f32 %v1437_v23, %v4167_v58  ;;  %v1796_v24 = vpop.f32.mrb[111].mxu1 }
 0x260   : > { %2103 = vst [vmem:[%s3645_s20 + $0x1a0] sm:$0xff] %v1436_v17  ;;  %v1797_v21 = vadd.f32 %v1796_v24, %v4171_v0 }
 0x261   : > { %2105 = vst [vmem:[%s3645_s20 + $0x1b0] sm:$0xff] %v1795_v55  ;;  %2104 = vst [vmem:[%s3645_s20 + $0x1a8] sm:$0xff] %v1438_v45  ;;  %v1441_v46 = vpop.f32.mrb[112].mxu0 }
 0x262   : > { %2106 = vst [vmem:[%s3645_s20 + $0x1b8] sm:$0xff] %v1797_v21  ;;  %v1442_v33 = vadd.f32 %v1441_v46, %v4161_v63  ;;  %v1800_v25 = vpop.f32.mrb[112].mxu1  ;;  %v1443_v48 = vpop.f32.mrb[113].mxu0 }
 0x263   : > { %v1801_v26 = vadd.f32 %v1800_v25, %v4165_v6  ;;  %v1444_v54 = vadd.f32 %v1443_v48, %v4167_v58  ;;  %v1802_v41 = vpop.f32.mrb[113].mxu1 }
 0x264   : > { %2111 = vst [vmem:[%s3645_s20 + $0x1e0] sm:$0xff] %v1442_v33  ;;  %v1803_v34 = vadd.f32 %v1802_v41, %v4171_v0 }
 0x265   : > { %2113 = vst [vmem:[%s3645_s20 + $0x1f0] sm:$0xff] %v1801_v26  ;;  %2112 = vst [vmem:[%s3645_s20 + $0x1e8] sm:$0xff] %v1444_v54  ;;  %v1447_v50 = vpop.f32.mrb[114].mxu0 }
 0x266   : > { %2114 = vst [vmem:[%s3645_s20 + $0x1f8] sm:$0xff] %v1803_v34  ;;  %v1448_v36 = vadd.f32 %v1447_v50, %v4161_v63  ;;  %v1806_v5 = vpop.f32.mrb[114].mxu1  ;;  %v1449_v56 = vpop.f32.mrb[115].mxu0 }
 0x267   : > { %v1807_v28 = vadd.f32 %v1806_v5, %v4165_v6  ;;  %v1450_v51 = vadd.f32 %v1449_v56, %v4167_v58  ;;  %v1808_v38 = vpop.f32.mrb[115].mxu1 }
 0x268   : > { %2119 = vst [vmem:[%s3645_s20 + $0x220] sm:$0xff] %v1448_v36  ;;  %v1809_v29 = vadd.f32 %v1808_v38, %v4171_v0 }
 0x269   : > { %2121 = vst [vmem:[%s3645_s20 + $0x230] sm:$0xff] %v1807_v28  ;;  %2120 = vst [vmem:[%s3645_s20 + $0x228] sm:$0xff] %v1450_v51  ;;  %v1453_v2 = vpop.f32.mrb[116].mxu0 }
 0x26a   : > { %2122 = vst [vmem:[%s3645_s20 + $0x238] sm:$0xff] %v1809_v29  ;;  %v1454_v3 = vadd.f32 %v1453_v2, %v4161_v63  ;;  %v1812_v7 = vpop.f32.mrb[116].mxu1  ;;  %v1455_v10 = vpop.f32.mrb[117].mxu0 }
 0x26b   : > { %v1813_v31 = vadd.f32 %v1812_v7, %v4165_v6  ;;  %v1456_v49 = vadd.f32 %v1455_v10, %v4167_v58  ;;  %v1814_v53 = vpop.f32.mrb[117].mxu1 }
 0x26c   : > { %2127 = vst [vmem:[%s3645_s20 + $0x260] sm:$0xff] %v1454_v3  ;;  %v1815_v32 = vadd.f32 %v1814_v53, %v4171_v0 }
 0x26d   : > { %2129 = vst [vmem:[%s3645_s20 + $0x270] sm:$0xff] %v1813_v31  ;;  %2128 = vst [vmem:[%s3645_s20 + $0x268] sm:$0xff] %v1456_v49  ;;  %v1459_v11 = vpop.f32.mrb[118].mxu0 }
 0x26e   : > { %2130 = vst [vmem:[%s3645_s20 + $0x278] sm:$0xff] %v1815_v32  ;;  %v1460_v39 = vadd.f32 %v1459_v11, %v4161_v63  ;;  %v1818_v40 = vpop.f32.mrb[118].mxu1  ;;  %v1461_v35 = vpop.f32.mrb[119].mxu0 }
 0x26f   : > { %v1819_v57 = vadd.f32 %v1818_v40, %v4165_v6  ;;  %v1462_v52 = vadd.f32 %v1461_v35, %v4167_v58  ;;  %v1820_v13 = vpop.f32.mrb[119].mxu1 }
 0x270   : > { %2135 = vst [vmem:[%s3645_s20 + $0x2a0] sm:$0xff] %v1460_v39  ;;  %v1821_v37 = vadd.f32 %v1820_v13, %v4171_v0 }
 0x271   : > { %2137 = vst [vmem:[%s3645_s20 + $0x2b0] sm:$0xff] %v1819_v57  ;;  %2136 = vst [vmem:[%s3645_s20 + $0x2a8] sm:$0xff] %v1462_v52  ;;  %v1465_v8 = vpop.f32.mrb[120].mxu0 }
 0x272   : > { %2138 = vst [vmem:[%s3645_s20 + $0x2b8] sm:$0xff] %v1821_v37  ;;  %v1466_v42 = vadd.f32 %v1465_v8, %v4161_v63  ;;  %v1824_v14 = vpop.f32.mrb[120].mxu1  ;;  %v1467_v43 = vpop.f32.mrb[121].mxu0 }
 0x273   : > { %v1825_v9 = vadd.f32 %v1824_v14, %v4165_v6  ;;  %v1468_v47 = vadd.f32 %v1467_v43, %v4167_v58  ;;  %v1826_v1 = vpop.f32.mrb[121].mxu1 }
 0x274   : > { %2143 = vst [vmem:[%s3645_s20 + $0x2e0] sm:$0xff] %v1466_v42  ;;  %v1827_v15 = vadd.f32 %v1826_v1, %v4171_v0 }
 0x275   : > { %2145 = vst [vmem:[%s3645_s20 + $0x2f0] sm:$0xff] %v1825_v9  ;;  %2144 = vst [vmem:[%s3645_s20 + $0x2e8] sm:$0xff] %v1468_v47  ;;  %v1471_v12 = vpop.f32.mrb[122].mxu0 }
 0x276   : > { %2146 = vst [vmem:[%s3645_s20 + $0x2f8] sm:$0xff] %v1827_v15  ;;  %v1472_v44 = vadd.f32 %v1471_v12, %v4161_v63  ;;  %v1830_v16 = vpop.f32.mrb[122].mxu1  ;;  %v1473_v19 = vpop.f32.mrb[123].mxu0 }
 0x277   : > { %v1831_v4 = vadd.f32 %v1830_v16, %v4165_v6  ;;  %v1474_v59 = vadd.f32 %v1473_v19, %v4167_v58  ;;  %v1832_v27 = vpop.f32.mrb[123].mxu1 }
 0x278   : > { %2151 = vst [vmem:[%s3645_s20 + $0x320] sm:$0xff] %v1472_v44  ;;  %v1833_v18 = vadd.f32 %v1832_v27, %v4171_v0 }
 0x279   : > { %2153 = vst [vmem:[%s3645_s20 + $0x330] sm:$0xff] %v1831_v4  ;;  %2152 = vst [vmem:[%s3645_s20 + $0x328] sm:$0xff] %v1474_v59  ;;  %v1477_v60 = vpop.f32.mrb[124].mxu0 }
 0x27a   : > { %2154 = vst [vmem:[%s3645_s20 + $0x338] sm:$0xff] %v1833_v18  ;;  %v1478_v22 = vadd.f32 %v1477_v60, %v4161_v63  ;;  %v1836_v20 = vpop.f32.mrb[124].mxu1  ;;  %v1479_v30 = vpop.f32.mrb[125].mxu0 }
 0x27b   : > { %v1837_v61 = vadd.f32 %v1836_v20, %v4165_v6  ;;  %v1480_v17 = vadd.f32 %v1479_v30, %v4167_v58  ;;  %v1838_v62 = vpop.f32.mrb[125].mxu1 }
 0x27c   : > { %2159 = vst [vmem:[%s3645_s20 + $0x360] sm:$0xff] %v1478_v22  ;;  %v1839_v23 = vadd.f32 %v1838_v62, %v4171_v0 }
 0x27d   : > { %2161 = vst [vmem:[%s3645_s20 + $0x370] sm:$0xff] %v1837_v61  ;;  %2160 = vst [vmem:[%s3645_s20 + $0x368] sm:$0xff] %v1480_v17  ;;  %v1483_v55 = vpop.f32.mrb[126].mxu0 }
 0x27e   : > { %2162 = vst [vmem:[%s3645_s20 + $0x378] sm:$0xff] %v1839_v23  ;;  %v1484_v45 = vadd.f32 %v1483_v55, %v4161_v63  ;;  %v1842_v24 = vpop.f32.mrb[126].mxu1  ;;  %v1485_v21 = vpop.f32.mrb[127].mxu0 }
 0x27f   : > { %v1843_v46 = vadd.f32 %v1842_v24, %v4165_v6  ;;  %v1486_v33 = vadd.f32 %v1485_v21, %v4167_v58  ;;  %v1844_v25 = vpop.f32.mrb[127].mxu1 }
 0x280   : > { %2167 = vst [vmem:[%s3645_s20 + $0x3a0] sm:$0xff] %v1484_v45  ;;  %v1845_v48 = vadd.f32 %v1844_v25, %v4171_v0 }
 0x281   : > { %2169 = vst [vmem:[%s3645_s20 + $0x3b0] sm:$0xff] %v1843_v46  ;;  %2168 = vst [vmem:[%s3645_s20 + $0x3a8] sm:$0xff] %v1486_v33  ;;  %v1489_v26 = vpop.f32.mrb[128].mxu0 }
 0x282   : > { %2170 = vst [vmem:[%s3645_s20 + $0x3b8] sm:$0xff] %v1845_v48  ;;  %v1490_v54 = vadd.f32 %v1489_v26, %v4161_v63  ;;  %v1848_v41 = vpop.f32.mrb[128].mxu1  ;;  %v1491_v34 = vpop.f32.mrb[129].mxu0 }
 0x283   : > { %v1849_v50 = vadd.f32 %v1848_v41, %v4165_v6  ;;  %v1492_v36 = vadd.f32 %v1491_v34, %v4167_v58  ;;  %v1850_v5 = vpop.f32.mrb[129].mxu1 }
 0x284   : > { %2175 = vst [vmem:[%s3645_s20 + $0x3e0] sm:$0xff] %v1490_v54  ;;  %v1851_v56 = vadd.f32 %v1850_v5, %v4171_v0 }
 0x285   : > { %2177 = vst [vmem:[%s3645_s20 + $0x3f0] sm:$0xff] %v1849_v50  ;;  %2176 = vst [vmem:[%s3645_s20 + $0x3e8] sm:$0xff] %v1492_v36  ;;  %v1495_v28 = vpop.f32.mrb[130].mxu0 }
 0x286   : > { %2178 = vst [vmem:[%s3645_s20 + $0x3f8] sm:$0xff] %v1851_v56  ;;  %v1496_v51 = vadd.f32 %v1495_v28, %v4161_v63  ;;  %v1854_v38 = vpop.f32.mrb[130].mxu1  ;;  %v1497_v29 = vpop.f32.mrb[131].mxu0 }
 0x287   : > { %v1855_v2 = vadd.f32 %v1854_v38, %v4165_v6  ;;  %v1498_v3 = vadd.f32 %v1497_v29, %v4167_v58  ;;  %v1856_v7 = vpop.f32.mrb[131].mxu1 }
 0x288   : > { %2183 = vst [vmem:[%s3645_s20 + $0x420] sm:$0xff] %v1496_v51  ;;  %v1857_v10 = vadd.f32 %v1856_v7, %v4171_v0 }
 0x289   : > { %2185 = vst [vmem:[%s3645_s20 + $0x430] sm:$0xff] %v1855_v2  ;;  %2184 = vst [vmem:[%s3645_s20 + $0x428] sm:$0xff] %v1498_v3  ;;  %v1501_v31 = vpop.f32.mrb[132].mxu0 }
 0x28a   : > { %2186 = vst [vmem:[%s3645_s20 + $0x438] sm:$0xff] %v1857_v10  ;;  %v1502_v49 = vadd.f32 %v1501_v31, %v4161_v63  ;;  %v1860_v53 = vpop.f32.mrb[132].mxu1  ;;  %v1503_v32 = vpop.f32.mrb[133].mxu0 }
 0x28b   : > { %v1861_v11 = vadd.f32 %v1860_v53, %v4165_v6  ;;  %v1504_v39 = vadd.f32 %v1503_v32, %v4167_v58  ;;  %v1862_v40 = vpop.f32.mrb[133].mxu1 }
 0x28c   : > { %2191 = vst [vmem:[%s3645_s20 + $0x460] sm:$0xff] %v1502_v49  ;;  %v1863_v35 = vadd.f32 %v1862_v40, %v4171_v0 }
 0x28d   : > { %2193 = vst [vmem:[%s3645_s20 + $0x470] sm:$0xff] %v1861_v11  ;;  %2192 = vst [vmem:[%s3645_s20 + $0x468] sm:$0xff] %v1504_v39  ;;  %v1507_v57 = vpop.f32.mrb[134].mxu0 }
 0x28e   : > { %2194 = vst [vmem:[%s3645_s20 + $0x478] sm:$0xff] %v1863_v35  ;;  %v1508_v52 = vadd.f32 %v1507_v57, %v4161_v63  ;;  %v1866_v13 = vpop.f32.mrb[134].mxu1  ;;  %v1509_v37 = vpop.f32.mrb[135].mxu0 }
 0x28f   : > { %v1867_v8 = vadd.f32 %v1866_v13, %v4165_v6  ;;  %v1510_v42 = vadd.f32 %v1509_v37, %v4167_v58  ;;  %v1868_v14 = vpop.f32.mrb[135].mxu1 }
 0x290   : > { %2199 = vst [vmem:[%s3645_s20 + $0x4a0] sm:$0xff] %v1508_v52  ;;  %v1869_v43 = vadd.f32 %v1868_v14, %v4171_v0 }
 0x291   : > { %2201 = vst [vmem:[%s3645_s20 + $0x4b0] sm:$0xff] %v1867_v8  ;;  %2200 = vst [vmem:[%s3645_s20 + $0x4a8] sm:$0xff] %v1510_v42  ;;  %v1513_v9 = vpop.f32.mrb[136].mxu0 }
 0x292   : > { %2202 = vst [vmem:[%s3645_s20 + $0x4b8] sm:$0xff] %v1869_v43  ;;  %v1514_v47 = vadd.f32 %v1513_v9, %v4161_v63  ;;  %v1872_v1 = vpop.f32.mrb[136].mxu1  ;;  %v1515_v15 = vpop.f32.mrb[137].mxu0 }
 0x293   : > { %v1873_v12 = vadd.f32 %v1872_v1, %v4165_v6  ;;  %v1516_v44 = vadd.f32 %v1515_v15, %v4167_v58  ;;  %v1874_v16 = vpop.f32.mrb[137].mxu1 }
 0x294   : > { %2207 = vst [vmem:[%s3645_s20 + $0x4e0] sm:$0xff] %v1514_v47  ;;  %v1875_v19 = vadd.f32 %v1874_v16, %v4171_v0 }
 0x295   : > { %2209 = vst [vmem:[%s3645_s20 + $0x4f0] sm:$0xff] %v1873_v12  ;;  %2208 = vst [vmem:[%s3645_s20 + $0x4e8] sm:$0xff] %v1516_v44  ;;  %v1519_v4 = vpop.f32.mrb[138].mxu0 }
 0x296   : > { %2210 = vst [vmem:[%s3645_s20 + $0x4f8] sm:$0xff] %v1875_v19  ;;  %v1520_v59 = vadd.f32 %v1519_v4, %v4161_v63  ;;  %v1878_v27 = vpop.f32.mrb[138].mxu1  ;;  %v1521_v18 = vpop.f32.mrb[139].mxu0 }
 0x297   : > { %v1879_v60 = vadd.f32 %v1878_v27, %v4165_v6  ;;  %v1522_v22 = vadd.f32 %v1521_v18, %v4167_v58  ;;  %v1880_v20 = vpop.f32.mrb[139].mxu1 }
 0x298   : > { %2215 = vst [vmem:[%s3645_s20 + $0x520] sm:$0xff] %v1520_v59  ;;  %v1881_v30 = vadd.f32 %v1880_v20, %v4171_v0 }
 0x299   : > { %2217 = vst [vmem:[%s3645_s20 + $0x530] sm:$0xff] %v1879_v60  ;;  %2216 = vst [vmem:[%s3645_s20 + $0x528] sm:$0xff] %v1522_v22  ;;  %v1525_v61 = vpop.f32.mrb[140].mxu0 }
 0x29a   : > { %2218 = vst [vmem:[%s3645_s20 + $0x538] sm:$0xff] %v1881_v30  ;;  %v1526_v17 = vadd.f32 %v1525_v61, %v4161_v63  ;;  %v1884_v62 = vpop.f32.mrb[140].mxu1  ;;  %v1527_v23 = vpop.f32.mrb[141].mxu0 }
 0x29b   : > { %v1885_v55 = vadd.f32 %v1884_v62, %v4165_v6  ;;  %v1528_v45 = vadd.f32 %v1527_v23, %v4167_v58  ;;  %v1886_v24 = vpop.f32.mrb[141].mxu1 }
 0x29c   : > { %2223 = vst [vmem:[%s3645_s20 + $0x560] sm:$0xff] %v1526_v17  ;;  %v1887_v21 = vadd.f32 %v1886_v24, %v4171_v0 }
 0x29d   : > { %2225 = vst [vmem:[%s3645_s20 + $0x570] sm:$0xff] %v1885_v55  ;;  %2224 = vst [vmem:[%s3645_s20 + $0x568] sm:$0xff] %v1528_v45  ;;  %v1531_v46 = vpop.f32.mrb[142].mxu0 }
 0x29e   : > { %2226 = vst [vmem:[%s3645_s20 + $0x578] sm:$0xff] %v1887_v21  ;;  %v1532_v33 = vadd.f32 %v1531_v46, %v4161_v63  ;;  %v1890_v25 = vpop.f32.mrb[142].mxu1  ;;  %v1533_v48 = vpop.f32.mrb[143].mxu0 }
 0x29f   : > { %v1891_v26 = vadd.f32 %v1890_v25, %v4165_v6  ;;  %v1534_v54 = vadd.f32 %v1533_v48, %v4167_v58  ;;  %v1892_v41 = vpop.f32.mrb[143].mxu1 }
 0x2a0   : > { %2231 = vst [vmem:[%s3645_s20 + $0x5a0] sm:$0xff] %v1532_v33  ;;  %v1893_v34 = vadd.f32 %v1892_v41, %v4171_v0 }
 0x2a1   : > { %2233 = vst [vmem:[%s3645_s20 + $0x5b0] sm:$0xff] %v1891_v26  ;;  %2232 = vst [vmem:[%s3645_s20 + $0x5a8] sm:$0xff] %v1534_v54  ;;  %v1537_v50 = vpop.f32.mrb[144].mxu0 }
 0x2a2   : > { %2234 = vst [vmem:[%s3645_s20 + $0x5b8] sm:$0xff] %v1893_v34  ;;  %v1538_v36 = vadd.f32 %v1537_v50, %v4161_v63  ;;  %v1896_v5 = vpop.f32.mrb[144].mxu1  ;;  %v1539_v56 = vpop.f32.mrb[145].mxu0 }
 0x2a3   : > { %v1897_v28 = vadd.f32 %v1896_v5, %v4165_v6  ;;  %v1540_v51 = vadd.f32 %v1539_v56, %v4167_v58  ;;  %v1898_v38 = vpop.f32.mrb[145].mxu1 }
 0x2a4   : > { %2239 = vst [vmem:[%s3645_s20 + $0x5e0] sm:$0xff] %v1538_v36  ;;  %v1899_v29 = vadd.f32 %v1898_v38, %v4171_v0 }
 0x2a5   : > { %2241 = vst [vmem:[%s3645_s20 + $0x5f0] sm:$0xff] %v1897_v28  ;;  %2240 = vst [vmem:[%s3645_s20 + $0x5e8] sm:$0xff] %v1540_v51  ;;  %v1543_v2 = vpop.f32.mrb[146].mxu0 }
 0x2a6   : > { %2242 = vst [vmem:[%s3645_s20 + $0x5f8] sm:$0xff] %v1899_v29  ;;  %v1544_v3 = vadd.f32 %v1543_v2, %v4161_v63  ;;  %v1902_v7 = vpop.f32.mrb[146].mxu1  ;;  %v1545_v10 = vpop.f32.mrb[147].mxu0 }
 0x2a7   : > { %v1903_v31 = vadd.f32 %v1902_v7, %v4165_v6  ;;  %v1546_v49 = vadd.f32 %v1545_v10, %v4167_v58  ;;  %v1904_v53 = vpop.f32.mrb[147].mxu1 }
 0x2a8   : > { %2247 = vst [vmem:[%s3645_s20 + $0x620] sm:$0xff] %v1544_v3  ;;  %v1905_v32 = vadd.f32 %v1904_v53, %v4171_v0 }
 0x2a9   : > { %2249 = vst [vmem:[%s3645_s20 + $0x630] sm:$0xff] %v1903_v31  ;;  %2248 = vst [vmem:[%s3645_s20 + $0x628] sm:$0xff] %v1546_v49  ;;  %v1549_v11 = vpop.f32.mrb[148].mxu0 }
 0x2aa   : > { %2250 = vst [vmem:[%s3645_s20 + $0x638] sm:$0xff] %v1905_v32  ;;  %v1550_v39 = vadd.f32 %v1549_v11, %v4161_v63  ;;  %v1908_v40 = vpop.f32.mrb[148].mxu1  ;;  %v1551_v35 = vpop.f32.mrb[149].mxu0 }
 0x2ab   : > { %v1909_v57 = vadd.f32 %v1908_v40, %v4165_v6  ;;  %v1552_v52 = vadd.f32 %v1551_v35, %v4167_v58  ;;  %v1910_v13 = vpop.f32.mrb[149].mxu1 }
 0x2ac   : > { %2255 = vst [vmem:[%s3645_s20 + $0x660] sm:$0xff] %v1550_v39  ;;  %v1911_v37 = vadd.f32 %v1910_v13, %v4171_v0 }
 0x2ad   : > { %2257 = vst [vmem:[%s3645_s20 + $0x670] sm:$0xff] %v1909_v57  ;;  %2256 = vst [vmem:[%s3645_s20 + $0x668] sm:$0xff] %v1552_v52  ;;  %v1555_v8 = vpop.f32.mrb[150].mxu0 }
 0x2ae   : > { %2258 = vst [vmem:[%s3645_s20 + $0x678] sm:$0xff] %v1911_v37  ;;  %v1556_v42 = vadd.f32 %v1555_v8, %v4161_v63  ;;  %v1914_v14 = vpop.f32.mrb[150].mxu1  ;;  %v1557_v43 = vpop.f32.mrb[151].mxu0 }
 0x2af   : > { %v1915_v9 = vadd.f32 %v1914_v14, %v4165_v6  ;;  %v1558_v47 = vadd.f32 %v1557_v43, %v4167_v58  ;;  %v1916_v1 = vpop.f32.mrb[151].mxu1 }
 0x2b0   : > { %2263 = vst [vmem:[%s3645_s20 + $0x6a0] sm:$0xff] %v1556_v42  ;;  %v1917_v15 = vadd.f32 %v1916_v1, %v4171_v0 }
 0x2b1   : > { %2265 = vst [vmem:[%s3645_s20 + $0x6b0] sm:$0xff] %v1915_v9  ;;  %2264 = vst [vmem:[%s3645_s20 + $0x6a8] sm:$0xff] %v1558_v47  ;;  %v1561_v12 = vpop.f32.mrb[152].mxu0 }
 0x2b2   : > { %2266 = vst [vmem:[%s3645_s20 + $0x6b8] sm:$0xff] %v1917_v15  ;;  %v1562_v44 = vadd.f32 %v1561_v12, %v4161_v63  ;;  %v1920_v16 = vpop.f32.mrb[152].mxu1  ;;  %v1563_v19 = vpop.f32.mrb[153].mxu0 }
 0x2b3   : > { %v1921_v4 = vadd.f32 %v1920_v16, %v4165_v6  ;;  %v1564_v59 = vadd.f32 %v1563_v19, %v4167_v58  ;;  %v1922_v27 = vpop.f32.mrb[153].mxu1 }
 0x2b4   : > { %2271 = vst [vmem:[%s3645_s20 + $0x6e0] sm:$0xff] %v1562_v44  ;;  %v1923_v18 = vadd.f32 %v1922_v27, %v4171_v0 }
 0x2b5   : > { %2273 = vst [vmem:[%s3645_s20 + $0x6f0] sm:$0xff] %v1921_v4  ;;  %2272 = vst [vmem:[%s3645_s20 + $0x6e8] sm:$0xff] %v1564_v59  ;;  %v1567_v60 = vpop.f32.mrb[154].mxu0 }
 0x2b6   : > { %2274 = vst [vmem:[%s3645_s20 + $0x6f8] sm:$0xff] %v1923_v18  ;;  %v1568_v22 = vadd.f32 %v1567_v60, %v4161_v63  ;;  %v1926_v20 = vpop.f32.mrb[154].mxu1  ;;  %v1569_v30 = vpop.f32.mrb[155].mxu0 }
 0x2b7   : > { %v1927_v61 = vadd.f32 %v1926_v20, %v4165_v6  ;;  %v1570_v17 = vadd.f32 %v1569_v30, %v4167_v58  ;;  %v1928_v62 = vpop.f32.mrb[155].mxu1 }
 0x2b8   : > { %2279 = vst [vmem:[%s3645_s20 + $0x720] sm:$0xff] %v1568_v22  ;;  %v1929_v23 = vadd.f32 %v1928_v62, %v4171_v0 }
 0x2b9   : > { %2281 = vst [vmem:[%s3645_s20 + $0x730] sm:$0xff] %v1927_v61  ;;  %2280 = vst [vmem:[%s3645_s20 + $0x728] sm:$0xff] %v1570_v17  ;;  %v1573_v55 = vpop.f32.mrb[156].mxu0 }
 0x2ba   : > { %2282 = vst [vmem:[%s3645_s20 + $0x738] sm:$0xff] %v1929_v23  ;;  %v1574_v45 = vadd.f32 %v1573_v55, %v4161_v63  ;;  %v1932_v24 = vpop.f32.mrb[156].mxu1  ;;  %v1575_v21 = vpop.f32.mrb[157].mxu0 }
 0x2bb   : > { %v1933_v46 = vadd.f32 %v1932_v24, %v4165_v6  ;;  %v1576_v33 = vadd.f32 %v1575_v21, %v4167_v58  ;;  %v1934_v25 = vpop.f32.mrb[157].mxu1 }
 0x2bc   : > { %2287 = vst [vmem:[%s3645_s20 + $0x760] sm:$0xff] %v1574_v45  ;;  %v1935_v48 = vadd.f32 %v1934_v25, %v4171_v0 }
 0x2bd   : > { %2289 = vst [vmem:[%s3645_s20 + $0x770] sm:$0xff] %v1933_v46  ;;  %2288 = vst [vmem:[%s3645_s20 + $0x768] sm:$0xff] %v1576_v33  ;;  %v1579_v26 = vpop.f32.mrb[158].mxu0 }
 0x2be   : > { %2290 = vst [vmem:[%s3645_s20 + $0x778] sm:$0xff] %v1935_v48  ;;  %v1580_v54 = vadd.f32 %v1579_v26, %v4161_v63  ;;  %v1938_v41 = vpop.f32.mrb[158].mxu1  ;;  %v1581_v34 = vpop.f32.mrb[159].mxu0 }
 0x2bf   : > { %v1939_v50 = vadd.f32 %v1938_v41, %v4165_v6  ;;  %v1582_v36 = vadd.f32 %v1581_v34, %v4167_v58  ;;  %v1940_v5 = vpop.f32.mrb[159].mxu1 }
 0x2c0   : > { %2295 = vst [vmem:[%s3645_s20 + $0x7a0] sm:$0xff] %v1580_v54  ;;  %v1941_v56 = vadd.f32 %v1940_v5, %v4171_v0 }
 0x2c1   : > { %2297 = vst [vmem:[%s3645_s20 + $0x7b0] sm:$0xff] %v1939_v50  ;;  %2296 = vst [vmem:[%s3645_s20 + $0x7a8] sm:$0xff] %v1582_v36  ;;  %v1585_v28 = vpop.f32.mrb[160].mxu0 }
 0x2c2   : > { %2298 = vst [vmem:[%s3645_s20 + $0x7b8] sm:$0xff] %v1941_v56  ;;  %v1586_v51 = vadd.f32 %v1585_v28, %v4161_v63  ;;  %v1944_v38 = vpop.f32.mrb[160].mxu1  ;;  %v1587_v29 = vpop.f32.mrb[161].mxu0 }
 0x2c3   : > { %v1945_v2 = vadd.f32 %v1944_v38, %v4165_v6  ;;  %v1588_v3 = vadd.f32 %v1587_v29, %v4167_v58  ;;  %v1946_v7 = vpop.f32.mrb[161].mxu1 }
 0x2c4   : > { %2303 = vst [vmem:[%s3645_s20 + $0x7e0] sm:$0xff] %v1586_v51  ;;  %v1947_v10 = vadd.f32 %v1946_v7, %v4171_v0 }
 0x2c5   : > { %2305 = vst [vmem:[%s3645_s20 + $0x7f0] sm:$0xff] %v1945_v2  ;;  %2304 = vst [vmem:[%s3645_s20 + $0x7e8] sm:$0xff] %v1588_v3  ;;  %v1591_v31 = vpop.f32.mrb[162].mxu0 }
 0x2c6   : > { %2306 = vst [vmem:[%s3645_s20 + $0x7f8] sm:$0xff] %v1947_v10  ;;  %v1592_v49 = vadd.f32 %v1591_v31, %v4161_v63  ;;  %v1950_v53 = vpop.f32.mrb[162].mxu1  ;;  %v1593_v32 = vpop.f32.mrb[163].mxu0 }
 0x2c7   : > { %v1951_v11 = vadd.f32 %v1950_v53, %v4165_v6  ;;  %v1594_v39 = vadd.f32 %v1593_v32, %v4167_v58  ;;  %v1952_v40 = vpop.f32.mrb[163].mxu1 }
 0x2c8   : > { %2311 = vst [vmem:[%s3645_s20 + $0x820] sm:$0xff] %v1592_v49  ;;  %v1953_v35 = vadd.f32 %v1952_v40, %v4171_v0 }
 0x2c9   : > { %2313 = vst [vmem:[%s3645_s20 + $0x830] sm:$0xff] %v1951_v11  ;;  %2312 = vst [vmem:[%s3645_s20 + $0x828] sm:$0xff] %v1594_v39  ;;  %v1597_v57 = vpop.f32.mrb[164].mxu0 }
 0x2ca   : > { %2314 = vst [vmem:[%s3645_s20 + $0x838] sm:$0xff] %v1953_v35  ;;  %v1598_v52 = vadd.f32 %v1597_v57, %v4161_v63  ;;  %v1956_v13 = vpop.f32.mrb[164].mxu1  ;;  %v1599_v37 = vpop.f32.mrb[165].mxu0 }
 0x2cb   : > { %v1957_v8 = vadd.f32 %v1956_v13, %v4165_v6  ;;  %v1600_v42 = vadd.f32 %v1599_v37, %v4167_v58  ;;  %v1958_v14 = vpop.f32.mrb[165].mxu1 }
 0x2cc   : > { %2319 = vst [vmem:[%s3645_s20 + $0x860] sm:$0xff] %v1598_v52  ;;  %v1959_v43 = vadd.f32 %v1958_v14, %v4171_v0 }
 0x2cd   : > { %2321 = vst [vmem:[%s3645_s20 + $0x870] sm:$0xff] %v1957_v8  ;;  %2320 = vst [vmem:[%s3645_s20 + $0x868] sm:$0xff] %v1600_v42  ;;  %v1603_v9 = vpop.f32.mrb[166].mxu0 }
 0x2ce   : > { %2322 = vst [vmem:[%s3645_s20 + $0x878] sm:$0xff] %v1959_v43  ;;  %v1604_v47 = vadd.f32 %v1603_v9, %v4161_v63  ;;  %v1962_v1 = vpop.f32.mrb[166].mxu1  ;;  %v1605_v15 = vpop.f32.mrb[167].mxu0 }
 0x2cf   : > { %v1963_v12 = vadd.f32 %v1962_v1, %v4165_v6  ;;  %v1606_v44 = vadd.f32 %v1605_v15, %v4167_v58  ;;  %v1964_v16 = vpop.f32.mrb[167].mxu1 }
 0x2d0   : > { %2327 = vst [vmem:[%s3645_s20 + $0x8a0] sm:$0xff] %v1604_v47  ;;  %v1965_v19 = vadd.f32 %v1964_v16, %v4171_v0 }
 0x2d1   : > { %2329 = vst [vmem:[%s3645_s20 + $0x8b0] sm:$0xff] %v1963_v12  ;;  %2328 = vst [vmem:[%s3645_s20 + $0x8a8] sm:$0xff] %v1606_v44  ;;  %v1609_v4 = vpop.f32.mrb[168].mxu0 }
 0x2d2   : > { %2330 = vst [vmem:[%s3645_s20 + $0x8b8] sm:$0xff] %v1965_v19  ;;  %v1610_v59 = vadd.f32 %v1609_v4, %v4161_v63  ;;  %v1968_v27 = vpop.f32.mrb[168].mxu1  ;;  %v1611_v18 = vpop.f32.mrb[169].mxu0 }
 0x2d3   : > { %v1969_v60 = vadd.f32 %v1968_v27, %v4165_v6  ;;  %v1612_v22 = vadd.f32 %v1611_v18, %v4167_v58  ;;  %v1970_v20 = vpop.f32.mrb[169].mxu1 }
 0x2d4   : > { %2335 = vst [vmem:[%s3645_s20 + $0x8e0] sm:$0xff] %v1610_v59  ;;  %v1971_v30 = vadd.f32 %v1970_v20, %v4171_v0 }
 0x2d5   : > { %2337 = vst [vmem:[%s3645_s20 + $0x8f0] sm:$0xff] %v1969_v60  ;;  %2336 = vst [vmem:[%s3645_s20 + $0x8e8] sm:$0xff] %v1612_v22  ;;  %v1615_v61 = vpop.f32.mrb[170].mxu0 }
 0x2d6   : > { %2338 = vst [vmem:[%s3645_s20 + $0x8f8] sm:$0xff] %v1971_v30  ;;  %v1616_v17 = vadd.f32 %v1615_v61, %v4161_v63  ;;  %v1974_v62 = vpop.f32.mrb[170].mxu1  ;;  %v1617_v23 = vpop.f32.mrb[171].mxu0 }
 0x2d7   : > { %v1975_v55 = vadd.f32 %v1974_v62, %v4165_v6  ;;  %v1618_v45 = vadd.f32 %v1617_v23, %v4167_v58  ;;  %v1976_v24 = vpop.f32.mrb[171].mxu1 }
 0x2d8   : > { %2343 = vst [vmem:[%s3645_s20 + $0x920] sm:$0xff] %v1616_v17  ;;  %v1977_v21 = vadd.f32 %v1976_v24, %v4171_v0 }
 0x2d9   : > { %2345 = vst [vmem:[%s3645_s20 + $0x930] sm:$0xff] %v1975_v55  ;;  %2344 = vst [vmem:[%s3645_s20 + $0x928] sm:$0xff] %v1618_v45  ;;  %v1621_v46 = vpop.f32.mrb[172].mxu0 }
 0x2da   : > { %2346 = vst [vmem:[%s3645_s20 + $0x938] sm:$0xff] %v1977_v21  ;;  %v1622_v33 = vadd.f32 %v1621_v46, %v4161_v63  ;;  %v1980_v25 = vpop.f32.mrb[172].mxu1  ;;  %v1623_v48 = vpop.f32.mrb[173].mxu0 }
 0x2db   : > { %v1981_v26 = vadd.f32 %v1980_v25, %v4165_v6  ;;  %v1624_v54 = vadd.f32 %v1623_v48, %v4167_v58  ;;  %v1982_v41 = vpop.f32.mrb[173].mxu1 }
 0x2dc   : > { %2351 = vst [vmem:[%s3645_s20 + $0x960] sm:$0xff] %v1622_v33  ;;  %v1983_v34 = vadd.f32 %v1982_v41, %v4171_v0 }
 0x2dd   : > { %2353 = vst [vmem:[%s3645_s20 + $0x970] sm:$0xff] %v1981_v26  ;;  %2352 = vst [vmem:[%s3645_s20 + $0x968] sm:$0xff] %v1624_v54  ;;  %v1627_v50 = vpop.f32.mrb[174].mxu0 }
 0x2de   : > { %2354 = vst [vmem:[%s3645_s20 + $0x978] sm:$0xff] %v1983_v34  ;;  %v1628_v36 = vadd.f32 %v1627_v50, %v4161_v63  ;;  %v1986_v5 = vpop.f32.mrb[174].mxu1  ;;  %v1629_v56 = vpop.f32.mrb[175].mxu0 }
 0x2df   : > { %v1987_v28 = vadd.f32 %v1986_v5, %v4165_v6  ;;  %v1630_v51 = vadd.f32 %v1629_v56, %v4167_v58  ;;  %v1988_v38 = vpop.f32.mrb[175].mxu1 }
 0x2e0   : > { %2359 = vst [vmem:[%s3645_s20 + $0x9a0] sm:$0xff] %v1628_v36  ;;  %v1989_v29 = vadd.f32 %v1988_v38, %v4171_v0 }
 0x2e1   : > { %2361 = vst [vmem:[%s3645_s20 + $0x9b0] sm:$0xff] %v1987_v28  ;;  %2360 = vst [vmem:[%s3645_s20 + $0x9a8] sm:$0xff] %v1630_v51  ;;  %v1633_v2 = vpop.f32.mrb[176].mxu0 }
 0x2e2   : > { %2362 = vst [vmem:[%s3645_s20 + $0x9b8] sm:$0xff] %v1989_v29  ;;  %v1634_v3 = vadd.f32 %v1633_v2, %v4161_v63  ;;  %v1992_v7 = vpop.f32.mrb[176].mxu1  ;;  %v1635_v10 = vpop.f32.mrb[177].mxu0 }
 0x2e3   : > { %v1993_v31 = vadd.f32 %v1992_v7, %v4165_v6  ;;  %v1636_v49 = vadd.f32 %v1635_v10, %v4167_v58  ;;  %v1994_v53 = vpop.f32.mrb[177].mxu1 }
 0x2e4   : > { %2367 = vst [vmem:[%s3645_s20 + $0x9e0] sm:$0xff] %v1634_v3  ;;  %v1995_v32 = vadd.f32 %v1994_v53, %v4171_v0 }
 0x2e5   : > { %2369 = vst [vmem:[%s3645_s20 + $0x9f0] sm:$0xff] %v1993_v31  ;;  %2368 = vst [vmem:[%s3645_s20 + $0x9e8] sm:$0xff] %v1636_v49  ;;  %v1639_v11 = vpop.f32.mrb[178].mxu0 }
 0x2e6   : > { %2370 = vst [vmem:[%s3645_s20 + $0x9f8] sm:$0xff] %v1995_v32  ;;  %v1640_v39 = vadd.f32 %v1639_v11, %v4161_v63  ;;  %v1998_v40 = vpop.f32.mrb[178].mxu1  ;;  %v1641_v35 = vpop.f32.mrb[179].mxu0 }
 0x2e7   : > { %v1999_v57 = vadd.f32 %v1998_v40, %v4165_v6  ;;  %v1642_v52 = vadd.f32 %v1641_v35, %v4167_v58  ;;  %v2000_v13 = vpop.f32.mrb[179].mxu1 }
 0x2e8   : > { %2375 = vst [vmem:[%s3645_s20 + $0xa20] sm:$0xff] %v1640_v39  ;;  %v2001_v37 = vadd.f32 %v2000_v13, %v4171_v0 }
 0x2e9   : > { %2377 = vst [vmem:[%s3645_s20 + $0xa30] sm:$0xff] %v1999_v57  ;;  %2376 = vst [vmem:[%s3645_s20 + $0xa28] sm:$0xff] %v1642_v52  ;;  %v1645_v8 = vpop.f32.mrb[180].mxu0 }
 0x2ea   : > { %2378 = vst [vmem:[%s3645_s20 + $0xa38] sm:$0xff] %v2001_v37  ;;  %v1646_v42 = vadd.f32 %v1645_v8, %v4161_v63  ;;  %v2004_v14 = vpop.f32.mrb[180].mxu1  ;;  %v1647_v43 = vpop.f32.mrb[181].mxu0 }
 0x2eb   : > { %v2005_v9 = vadd.f32 %v2004_v14, %v4165_v6  ;;  %v1648_v47 = vadd.f32 %v1647_v43, %v4167_v58  ;;  %v2006_v1 = vpop.f32.mrb[181].mxu1 }
 0x2ec   : > { %2383 = vst [vmem:[%s3645_s20 + $0xa60] sm:$0xff] %v1646_v42  ;;  %v2007_v15 = vadd.f32 %v2006_v1, %v4171_v0 }
 0x2ed   : > { %2385 = vst [vmem:[%s3645_s20 + $0xa70] sm:$0xff] %v2005_v9  ;;  %2384 = vst [vmem:[%s3645_s20 + $0xa68] sm:$0xff] %v1648_v47  ;;  %v1651_v12 = vpop.f32.mrb[182].mxu0 }
 0x2ee   : > { %2386 = vst [vmem:[%s3645_s20 + $0xa78] sm:$0xff] %v2007_v15  ;;  %v1652_v44 = vadd.f32 %v1651_v12, %v4161_v63  ;;  %v2010_v16 = vpop.f32.mrb[182].mxu1  ;;  %v1653_v19 = vpop.f32.mrb[183].mxu0 }
 0x2ef   : > { %v2011_v4 = vadd.f32 %v2010_v16, %v4165_v6  ;;  %v1654_v59 = vadd.f32 %v1653_v19, %v4167_v58  ;;  %v2012_v27 = vpop.f32.mrb[183].mxu1 }
 0x2f0   : > { %2391 = vst [vmem:[%s3645_s20 + $0xaa0] sm:$0xff] %v1652_v44  ;;  %v2013_v18 = vadd.f32 %v2012_v27, %v4171_v0 }
 0x2f1   : > { %2393 = vst [vmem:[%s3645_s20 + $0xab0] sm:$0xff] %v2011_v4  ;;  %2392 = vst [vmem:[%s3645_s20 + $0xaa8] sm:$0xff] %v1654_v59  ;;  %v1657_v60 = vpop.f32.mrb[184].mxu0 }
 0x2f2   : > { %2394 = vst [vmem:[%s3645_s20 + $0xab8] sm:$0xff] %v2013_v18  ;;  %v1658_v22 = vadd.f32 %v1657_v60, %v4161_v63  ;;  %v2016_v20 = vpop.f32.mrb[184].mxu1  ;;  %v1659_v30 = vpop.f32.mrb[185].mxu0 }
 0x2f3   : > { %v2017_v61 = vadd.f32 %v2016_v20, %v4165_v6  ;;  %v1660_v17 = vadd.f32 %v1659_v30, %v4167_v58  ;;  %v2018_v62 = vpop.f32.mrb[185].mxu1 }
 0x2f4   : > { %2399 = vst [vmem:[%s3645_s20 + $0xae0] sm:$0xff] %v1658_v22  ;;  %v2019_v23 = vadd.f32 %v2018_v62, %v4171_v0 }
 0x2f5   : > { %2401 = vst [vmem:[%s3645_s20 + $0xaf0] sm:$0xff] %v2017_v61  ;;  %2400 = vst [vmem:[%s3645_s20 + $0xae8] sm:$0xff] %v1660_v17  ;;  %v1663_v55 = vpop.f32.mrb[186].mxu0 }
 0x2f6   : > { %2402 = vst [vmem:[%s3645_s20 + $0xaf8] sm:$0xff] %v2019_v23  ;;  %v1664_v45 = vadd.f32 %v1663_v55, %v4161_v63  ;;  %v2022_v24 = vpop.f32.mrb[186].mxu1  ;;  %v1665_v21 = vpop.f32.mrb[187].mxu0 }
 0x2f7   : > { %v2023_v46 = vadd.f32 %v2022_v24, %v4165_v6  ;;  %v1666_v33 = vadd.f32 %v1665_v21, %v4167_v58  ;;  %v2024_v25 = vpop.f32.mrb[187].mxu1 }
 0x2f8   : > { %2407 = vst [vmem:[%s3645_s20 + $0xb20] sm:$0xff] %v1664_v45  ;;  %v2025_v48 = vadd.f32 %v2024_v25, %v4171_v0 }
 0x2f9   : > { %2409 = vst [vmem:[%s3645_s20 + $0xb30] sm:$0xff] %v2023_v46  ;;  %2408 = vst [vmem:[%s3645_s20 + $0xb28] sm:$0xff] %v1666_v33  ;;  %v1669_v26 = vpop.f32.mrb[188].mxu0 }
 0x2fa   : > { %2410 = vst [vmem:[%s3645_s20 + $0xb38] sm:$0xff] %v2025_v48  ;;  %v1670_v54 = vadd.f32 %v1669_v26, %v4161_v63  ;;  %v2028_v41 = vpop.f32.mrb[188].mxu1  ;;  %v1671_v34 = vpop.f32.mrb[189].mxu0 }
 0x2fb   : > { %v2029_v50 = vadd.f32 %v2028_v41, %v4165_v6  ;;  %v1672_v36 = vadd.f32 %v1671_v34, %v4167_v58  ;;  %v2030_v5 = vpop.f32.mrb[189].mxu1 }
 0x2fc   : > { %2415 = vst [vmem:[%s3645_s20 + $0xb60] sm:$0xff] %v1670_v54  ;;  %v2031_v56 = vadd.f32 %v2030_v5, %v4171_v0 }
 0x2fd   : > { %2417 = vst [vmem:[%s3645_s20 + $0xb70] sm:$0xff] %v2029_v50  ;;  %2416 = vst [vmem:[%s3645_s20 + $0xb68] sm:$0xff] %v1672_v36  ;;  %v1675_v28 = vpop.f32.mrb[190].mxu0 }
 0x2fe   : > { %2418 = vst [vmem:[%s3645_s20 + $0xb78] sm:$0xff] %v2031_v56  ;;  %v1676_v51 = vadd.f32 %v1675_v28, %v4161_v63  ;;  %v2034_v38 = vpop.f32.mrb[190].mxu1  ;;  %v1677_v29 = vpop.f32.mrb[191].mxu0 }
 0x2ff   : > { %v2035_v2 = vadd.f32 %v2034_v38, %v4165_v6  ;;  %v1678_v3 = vadd.f32 %v1677_v29, %v4167_v58  ;;  %v2036_v7 = vpop.f32.mrb[191].mxu1 }
 0x300   : > { %2423 = vst [vmem:[%s3645_s20 + $0xba0] sm:$0xff] %v1676_v51  ;;  %v2037_v10 = vadd.f32 %v2036_v7, %v4171_v0 }
 0x301   : > { %2425 = vst [vmem:[%s3645_s20 + $0xbb0] sm:$0xff] %v2035_v2  ;;  %2424 = vst [vmem:[%s3645_s20 + $0xba8] sm:$0xff] %v1678_v3  ;;  %v1681_v31 = vpop.f32.mrb[192].mxu0 }
 0x302   : > { %2426 = vst [vmem:[%s3645_s20 + $0xbb8] sm:$0xff] %v2037_v10  ;;  %v1682_v49 = vadd.f32 %v1681_v31, %v4161_v63  ;;  %v2040_v53 = vpop.f32.mrb[192].mxu1  ;;  %v1683_v32 = vpop.f32.mrb[193].mxu0 }
 0x303   : > { %v2041_v11 = vadd.f32 %v2040_v53, %v4165_v6  ;;  %v1684_v39 = vadd.f32 %v1683_v32, %v4167_v58  ;;  %v2042_v40 = vpop.f32.mrb[193].mxu1 }
 0x304   : > { %2431 = vst [vmem:[%s3645_s20 + $0xbe0] sm:$0xff] %v1682_v49  ;;  %v2043_v35 = vadd.f32 %v2042_v40, %v4171_v0 }
 0x305   : > { %2433 = vst [vmem:[%s3645_s20 + $0xbf0] sm:$0xff] %v2041_v11  ;;  %2432 = vst [vmem:[%s3645_s20 + $0xbe8] sm:$0xff] %v1684_v39  ;;  %v1687_v57 = vpop.f32.mrb[194].mxu0 }
 0x306   : > { %2434 = vst [vmem:[%s3645_s20 + $0xbf8] sm:$0xff] %v2043_v35  ;;  %v1688_v52 = vadd.f32 %v1687_v57, %v4161_v63  ;;  %v2046_v13 = vpop.f32.mrb[194].mxu1  ;;  %v1689_v37 = vpop.f32.mrb[195].mxu0 }
 0x307   : > { %v2047_v8 = vadd.f32 %v2046_v13, %v4165_v6  ;;  %v1690_v42 = vadd.f32 %v1689_v37, %v4167_v58  ;;  %v2048_v14 = vpop.f32.mrb[195].mxu1 }
 0x308   : > { %2439 = vst [vmem:[%s3645_s20 + $0xc20] sm:$0xff] %v1688_v52  ;;  %v2049_v63 = vadd.f32 %v2048_v14, %v4171_v0 }
 0x309   : > { %2441 = vst [vmem:[%s3645_s20 + $0xc30] sm:$0xff] %v2047_v8  ;;  %2440 = vst [vmem:[%s3645_s20 + $0xc28] sm:$0xff] %v1690_v42 }
 0x30a   : > { %2442 = vst [vmem:[%s3645_s20 + $0xc38] sm:$0xff] %v2049_v63 }
 0x30b   : > { %3054 = shalt.err (!%p3051_p2)
}
 0x30c   : > { %s3055_s11 = scalar_lea.hbm %s4568_s27, 50176  ;;  %s3059_s22 = scalar_lea.hbm %s4622_s3, 100352 }
 0x30d   : > { %p3056_p13 = scmp.ne.s32.totalorder %s4568_s27, %s3055_s11  ;;  %p3060_p4 = scmp.lt.u32.totalorder %s4568_s27, %s4622_s3 }
 0x30e   : > { %p3061_p5 = scmp.lt.u32.totalorder %s3059_s22, %s3055_s11  ;;  %p3063_p11 = scmp.lt.u32.totalorder %s3055_s11, %s4568_s27 }
 0x30f   : > { %p3057_p6 = pnand %p3056_p13, %p4636_p0 }
 0x310   : > { %p3062_p8 = por %p3061_p5, %p3060_p4 }
 0x311   : > { %p3058_p10 = pneg %p3057_p6 }
 0x312   : > { %p3064_p1 = por %p3063_p11, %p3062_p8 }
 0x314   : > { %p3065_p3 = pnand %p3064_p1, %p3058_p10 }
 0x316   : > { %3068 = shalt.err (!%p3065_p3)
}
 0x317   : > { %s3121_s18 = smov 1024   ;;  %s3122_s20 = smov 64  }
 0x318   : > { %2839 = dma.vmem_to_hbm [thread:$0]  (%p4636_p0), %s4570_s21, 50176, %s4568_s27, %s2444_s23, %s3121_s18, %s3121_s18, %s3122_s20  }
 0x319 PF: > { %s2473_s10 = sand.u32 1, %s3099_s12   ;;  %p4637_p7 = scmp.ne.s32.totalorder %s4627_s19, 0 }
 0x31a   : > { %p4638_p9 = scmp.ge.s32.totalorder %s3111_s15, 2  ;;  %s2474_s16 = scalar_lea.sflag [#allocation4], %s2473_s10 }
 0x31c   : > { %p2853_p12 = pnand %p4638_p9, %p4637_p7 }
 0x31e   : > { %3094 = dma.done.wait (!%p2853_p12), %s2474_s16, 50176  }
 0x31f   : > { %3096 = vsyncadd (!%p2853_p12), %s2474_s16, 4294917120  ;;  %p17_p2 = scmp.ge.s32.totalorder %s3253_s4, 4   ;;  %s4639_s12 = smov %s3103_s13 }
 0x320   : > { %s4640_s13 = smov %s3107_s14  ;;  %s4641_s14 = smov %s3269_s7 }
 0x321   : > { %s4642_s15 = smov %s3253_s4  ;;  %19 = sbr.rel (!%p17_p2) target bundleno = 6 (0x6), region = 85 }
 0x328   :  { %2479 = vsyncpa [#allocation3], 1 }
 0x329   :  { %2481 = vsyncpa [#allocation3 + $0x1], 1 }
 0x32a   :  { %2482 = vsyncpa [#allocation6], 1 }
 0x32b   :  { %2483 = vsyncpa [#allocation4], 1 }
 0x32c   :  { %2485 = vsyncpa [#allocation4 + $0x1], 1 }

</bundles_post_ra>
